<compile_context>
chip_gen: v5e
topology: v5e:2x2
jax: 0.10.0
libtpu: 0.0.40
codegen_flags: <defaults>
</compile_context>

<pallas_src>
import functools

import jax
import jax.numpy as jnp
from jax.experimental import pallas as pl
from jax.experimental.pallas import tpu as pltpu

C_MID = 32  # Conv2d out_channels, fixed by the module


def _prob_block_kernel(x_ref, w1_ref, shift_ref, w2_ref, b2_ref, o_ref, feat_ref,
                       *, c_in, hw):
    """Fused 1x1-conv + BN(eval) + ReLU + Linear + Softmax for one batch tile.

    x_ref:     (C_in, tile_n, HW)    bf16  channel-major input tile (VMEM)
    w1_ref:    (32*C_in,)            f32   conv weight * BN scale, flat (SMEM)
    shift_ref: (32,)                 f32   conv bias + BN shift, folded (SMEM)
    w2_ref:    (32*HW, A_pad)        bf16  linear weight, Flatten (c,hw) K-order (VMEM, resident)
    b2_ref:    (1, A_pad)            f32   linear bias; padded entries = -1e30 (VMEM, resident)
    o_ref:     (tile_n, A_pad)       f32   softmax probabilities
    feat_ref:  (tile_n, 32*HW)       bf16  VMEM scratch (intermediate never hits HBM)
    """
    # --- Phase 1: 1x1 conv (+ folded BN) + ReLU on the VPU, one output channel
    # at a time.  Each channel writes a lane-aligned (tile_n, HW) slab into the
    # flattened feature scratch, matching PyTorch's Flatten (c, h, w) order.
    for c in range(C_MID):  # static unroll (32); bodies are independent stores
        acc = x_ref[0].astype(jnp.float32) * w1_ref[c * c_in + 0]
        for ci in range(1, c_in):
            acc = acc + x_ref[ci].astype(jnp.float32) * w1_ref[c * c_in + ci]
        acc = jnp.maximum(acc + shift_ref[c], 0.0)
        feat_ref[:, pl.ds(c * hw, hw)] = acc.astype(feat_ref.dtype)

    # --- Phase 2: one lane-dense (tile_n, 32*HW) x (32*HW, A_pad) MXU matmul ---
    logits = jnp.dot(feat_ref[...], w2_ref[...],
                     preferred_element_type=jnp.float32) + b2_ref[...]

    # --- Softmax (f32); padded action columns carry a -1e30 bias -> exactly 0 --
    m = jnp.max(logits, axis=-1, keepdims=True)
    e = jnp.exp(logits - m)
    s = jnp.sum(e, axis=-1, keepdims=True)
    o_ref[...] = e * pl.reciprocal(s, approx=True)


def probability_block_forward(x_nchw, params, *, tile_n_max=128):
    """ProbabilityBlock forward: NCHW input -> (N, action_size) probabilities."""
    N, C_in, H, W = x_nchw.shape
    HW = H * W
    eps = 1e-5

    # ---------------- parameter folding / layout prep (tiny, one-time) --------
    conv_w = params["conv_w"].reshape(C_MID, C_in).astype(jnp.float32)
    conv_b = params["conv_b"].astype(jnp.float32)
    gamma = params["bn_gamma"].astype(jnp.float32)
    beta = params["bn_beta"].astype(jnp.float32)
    rmean = params["bn_mean"].astype(jnp.float32)
    rvar = params["bn_var"].astype(jnp.float32)
    lin_w, lin_b = params["lin_w"], params["lin_b"]          # (A, 32*HW), (A,)
    A = lin_w.shape[0]
    A_pad = ((A + 127) // 128) * 128                         # lane-dense output

    bn_scale = gamma * jax.lax.rsqrt(rvar + eps)                       # (32,)
    w1 = (conv_w * bn_scale[:, None]).reshape(-1)                      # (32*C_in,) SMEM
    shift = (conv_b - rmean) * bn_scale + beta                         # (32,)     SMEM

    # Linear weight: PyTorch Flatten order is (c, h, w) == (c, hw).  Keep that
    # order as the K axis of a single (32*HW, A_pad) matmul; pad the action dim
    # to a lane-dense multiple of 128 and cast to bf16 (MXU-native, halves the
    # resident-weight VMEM footprint).
    w2 = jnp.transpose(lin_w.reshape(A, C_MID * HW))                   # (32*HW, A)
    w2 = jnp.pad(w2, ((0, 0), (0, A_pad - A))).astype(jnp.bfloat16)
    b2 = jnp.pad(lin_b.astype(jnp.float32), (0, A_pad - A),
                 constant_values=-1e30).reshape(1, A_pad)

    # Channel-major bf16 input: (N, C_in, H, W) -> (C_in, N, HW).  One fused
    # XLA transpose+cast pass; halves the kernel's input DMA traffic vs f32
    # NCHW and gives the kernel contiguous per-channel (tile_n, HW) slabs.
    x_cm = jnp.transpose(x_nchw.reshape(N, C_in, HW), (1, 0, 2)).astype(jnp.bfloat16)

    if N <= tile_n_max:
        tile_n, n_pad = N, N            # single grid step, no batch padding
    else:
        tile_n = tile_n_max
        n_pad = pl.cdiv(N, tile_n) * tile_n
        if n_pad != N:
            # TODO(synk): a ragged last tile (BoundedSlice / in-kernel mask)
            # would avoid this extra HBM pass over at most tile_n-1 rows.
            x_cm = jnp.pad(x_cm, ((0, 0), (0, n_pad - N), (0, 0)))

    # VMEM budget from actual buffer sizes (double-buffer inputs/outputs, the
    # resident weights budgeted at 2 buffers too) + generous headroom.
    tn_bf16 = max(tile_n, 16)           # bf16 sublane padding for tiny tiles
    tn_f32 = max(tile_n, 8)             # f32 sublane padding for tiny tiles
    vmem_bytes = (2 * C_in * tn_bf16 * HW * 2          # x blocks (bf16)
                  + 2 * tn_f32 * A_pad * 4             # out blocks (f32)
                  + 2 * C_MID * HW * A_pad * 2         # w2 (bf16, resident)
                  + 2 * 8 * A_pad * 4                  # b2 (padded, f32)
                  + tn_bf16 * C_MID * HW * 2)          # feat scratch (bf16)
    vmem_limit = int(min(max(vmem_bytes + (8 << 20), 16 << 20), 64 << 20))

    kernel = functools.partial(_prob_block_kernel, c_in=C_in, hw=HW)

    out = pl.pallas_call(
        kernel,
        out_shape=jax.ShapeDtypeStruct((n_pad, A_pad), jnp.float32),
        grid=(n_pad // tile_n,),
        in_specs=[
            pl.BlockSpec((C_in, tile_n, HW), lambda i: (0, i, 0)),        # x (streamed)
            pl.BlockSpec(memory_space=pltpu.MemorySpace.SMEM),            # w1 (scalars)
            pl.BlockSpec(memory_space=pltpu.MemorySpace.SMEM),            # shift (scalars)
            pl.BlockSpec((C_MID * HW, A_pad), lambda i: (0, 0)),          # w2 (resident)
            pl.BlockSpec((1, A_pad), lambda i: (0, 0)),                   # b2 (resident)
        ],
        out_specs=pl.BlockSpec((tile_n, A_pad), lambda i: (i, 0)),
        scratch_shapes=[pltpu.VMEM((tile_n, C_MID * HW), jnp.bfloat16)],
        compiler_params=pltpu.CompilerParams(
            dimension_semantics=("parallel",),
            vmem_limit_bytes=vmem_limit,
        ),
    )(x_cm, w1, shift, w2, b2)

    return out[:N, :A]


# ----------------- pure-JAX f32 reference (for the sanity check) -------------
def probability_block_reference(x_nchw, params):
    N, C_in, H, W = x_nchw.shape
    eps = 1e-5
    conv_w = params["conv_w"].reshape(C_MID, C_in)
    y = jnp.einsum("nchw,oc->nohw", x_nchw, conv_w) + params["conv_b"][None, :, None, None]
    y = (y - params["bn_mean"][None, :, None, None]) / jnp.sqrt(
        params["bn_var"][None, :, None, None] + eps)
    y = y * params["bn_gamma"][None, :, None, None] + params["bn_beta"][None, :, None, None]
    y = jnp.maximum(y, 0.0)
    y = y.reshape(N, -1)                       # NCHW flatten (c, h, w)
    logits = y @ params["lin_w"].T + params["lin_b"]
    return jax.nn.softmax(logits, axis=1)


if __name__ == "__main__":
    N, C_in = 2, 4
    H = W = 16
    action_size = 10
    F = C_MID * H * W

    key = jax.random.PRNGKey(0)
    ks = jax.random.split(key, 9)
    params = {
        "conv_w": 0.1 * jax.random.normal(ks[0], (C_MID, C_in, 1, 1), jnp.float32),
        "conv_b": 0.1 * jax.random.normal(ks[1], (C_MID,), jnp.float32),
        "bn_gamma": 1.0 + 0.05 * jax.random.normal(ks[2], (C_MID,), jnp.float32),
        "bn_beta": 0.05 * jax.random.normal(ks[3], (C_MID,), jnp.float32),
        "bn_mean": 0.05 * jax.random.normal(ks[4], (C_MID,), jnp.float32),
        "bn_var": jnp.abs(1.0 + 0.05 * jax.random.normal(ks[5], (C_MID,), jnp.float32)),
        "lin_w": 0.05 * jax.random.normal(ks[6], (action_size, F), jnp.float32),
        "lin_b": 0.05 * jax.random.normal(ks[7], (action_size,), jnp.float32),
    }
    x = jax.random.normal(ks[8], (N, C_in, H, W), jnp.float32)

    fwd = jax.jit(probability_block_forward)
    out = jax.block_until_ready(fwd(x, params))

    ref = probability_block_reference(x, params)
    assert out.shape == (N, action_size), out.shape
    assert bool(jnp.all(jnp.isfinite(out)))
    assert jnp.allclose(jnp.sum(out, axis=1), 1.0, atol=1e-2), jnp.sum(out, axis=1)
    assert jnp.allclose(out, ref, atol=2e-2, rtol=2e-2), float(jnp.max(jnp.abs(out - ref)))

    print("KERNEL_OK")
</pallas_src>

<mosaic_0001>
module attributes {stable_mosaic.version = 11 : i64} {
  func.func @_prob_block_kernel(%arg0: i32, %arg1: memref<4x2x256xbf16, #tpu.memory_space<vmem>>, %arg2: memref<128xf32, #tpu.memory_space<smem>>, %arg3: memref<32xf32, #tpu.memory_space<smem>>, %arg4: memref<8192x128xbf16, #tpu.memory_space<vmem>>, %arg5: memref<1x128xf32, #tpu.memory_space<vmem>>, %arg6: memref<2x128xf32, #tpu.memory_space<vmem>>, %arg7: memref<2x8192xbf16, #tpu.memory_space<vmem>>) attributes {dimension_semantics = [#tpu.dimension_semantics<parallel>], iteration_bounds = array<i64: 1>, scalar_prefetch = 0 : i64, scratch_operands = 1 : i64, tpu.core_type = #tpu.core_type<tc>, window_params = [{transform_indices = @transform_0, window_bounds = array<i64: 4, 2, 256>}, {transform_indices = @transform_1, window_bounds = array<i64: 128>}, {transform_indices = @transform_2, window_bounds = array<i64: 32>}, {pipeline_mode = #tpu.pipeline_mode<synchronous>, transform_indices = @transform_3, window_bounds = array<i64: 8192, 128>}, {pipeline_mode = #tpu.pipeline_mode<synchronous>, transform_indices = @transform_4, window_bounds = array<i64: 1, 128>}, {transform_indices = @transform_5, window_bounds = array<i64: 2, 128>}]} {
    %c0 = arith.constant 0 : index
    %c0_0 = arith.constant 0 : index
    %c0_1 = arith.constant 0 : index
    %0 = vector.load %arg1[%c0, %c0_0, %c0_1] : memref<4x2x256xbf16, #tpu.memory_space<vmem>>, vector<1x2x256xbf16>
    %1 = vector.shape_cast %0 : vector<1x2x256xbf16> to vector<2x256xbf16>
    %2 = arith.extf %1 : vector<2x256xbf16> to vector<2x256xf32>
    %c0_2 = arith.constant 0 : index
    %3 = memref.load %arg2[%c0_2] : memref<128xf32, #tpu.memory_space<smem>>
    %4 = vector.broadcast %3 : f32 to vector<2x256xf32>
    %5 = arith.mulf %2, %4 : vector<2x256xf32>
    %c1 = arith.constant 1 : index
    %c0_3 = arith.constant 0 : index
    %c0_4 = arith.constant 0 : index
    %6 = vector.load %arg1[%c1, %c0_3, %c0_4] : memref<4x2x256xbf16, #tpu.memory_space<vmem>>, vector<1x2x256xbf16>
    %7 = vector.shape_cast %6 : vector<1x2x256xbf16> to vector<2x256xbf16>
    %8 = arith.extf %7 : vector<2x256xbf16> to vector<2x256xf32>
    %c1_5 = arith.constant 1 : index
    %9 = memref.load %arg2[%c1_5] : memref<128xf32, #tpu.memory_space<smem>>
    %10 = vector.broadcast %9 : f32 to vector<2x256xf32>
    %11 = arith.mulf %8, %10 : vector<2x256xf32>
    %12 = arith.addf %5, %11 : vector<2x256xf32>
    %c2 = arith.constant 2 : index
    %c0_6 = arith.constant 0 : index
    %c0_7 = arith.constant 0 : index
    %13 = vector.load %arg1[%c2, %c0_6, %c0_7] : memref<4x2x256xbf16, #tpu.memory_space<vmem>>, vector<1x2x256xbf16>
    %14 = vector.shape_cast %13 : vector<1x2x256xbf16> to vector<2x256xbf16>
    %15 = arith.extf %14 : vector<2x256xbf16> to vector<2x256xf32>
    %c2_8 = arith.constant 2 : index
    %16 = memref.load %arg2[%c2_8] : memref<128xf32, #tpu.memory_space<smem>>
    %17 = vector.broadcast %16 : f32 to vector<2x256xf32>
    %18 = arith.mulf %15, %17 : vector<2x256xf32>
    %19 = arith.addf %12, %18 : vector<2x256xf32>
    %c3 = arith.constant 3 : index
    %c0_9 = arith.constant 0 : index
    %c0_10 = arith.constant 0 : index
    %20 = vector.load %arg1[%c3, %c0_9, %c0_10] : memref<4x2x256xbf16, #tpu.memory_space<vmem>>, vector<1x2x256xbf16>
    %21 = vector.shape_cast %20 : vector<1x2x256xbf16> to vector<2x256xbf16>
    %22 = arith.extf %21 : vector<2x256xbf16> to vector<2x256xf32>
    %c3_11 = arith.constant 3 : index
    %23 = memref.load %arg2[%c3_11] : memref<128xf32, #tpu.memory_space<smem>>
    %24 = vector.broadcast %23 : f32 to vector<2x256xf32>
    %25 = arith.mulf %22, %24 : vector<2x256xf32>
    %26 = arith.addf %19, %25 : vector<2x256xf32>
    %c0_12 = arith.constant 0 : index
    %27 = memref.load %arg3[%c0_12] : memref<32xf32, #tpu.memory_space<smem>>
    %28 = vector.broadcast %27 : f32 to vector<2x256xf32>
    %29 = arith.addf %26, %28 : vector<2x256xf32>
    %cst = arith.constant 0.000000e+00 : f32
    %30 = vector.broadcast %cst : f32 to vector<2x256xf32>
    %31 = arith.maximumf %29, %30 : vector<2x256xf32>
    %32 = arith.truncf %31 : vector<2x256xf32> to vector<2x256xbf16>
    %c0_13 = arith.constant 0 : index
    %c0_14 = arith.constant 0 : index
    %33 = vector.load %arg7[%c0_13, %c0_14] : memref<2x8192xbf16, #tpu.memory_space<vmem>>, vector<2x256xbf16>
    tpu.vector_store %arg7[%c0_13, %c0_14], %32 {strides = array<i32>} : memref<2x8192xbf16, #tpu.memory_space<vmem>>, vector<2x256xbf16>,
    %c0_15 = arith.constant 0 : index
    %c0_16 = arith.constant 0 : index
    %c0_17 = arith.constant 0 : index
    %34 = vector.load %arg1[%c0_15, %c0_16, %c0_17] : memref<4x2x256xbf16, #tpu.memory_space<vmem>>, vector<1x2x256xbf16>
    %35 = vector.shape_cast %34 : vector<1x2x256xbf16> to vector<2x256xbf16>
    %36 = arith.extf %35 : vector<2x256xbf16> to vector<2x256xf32>
    %c4 = arith.constant 4 : index
    %37 = memref.load %arg2[%c4] : memref<128xf32, #tpu.memory_space<smem>>
    %38 = vector.broadcast %37 : f32 to vector<2x256xf32>
    %39 = arith.mulf %36, %38 : vector<2x256xf32>
    %c1_18 = arith.constant 1 : index
    %c0_19 = arith.constant 0 : index
    %c0_20 = arith.constant 0 : index
    %40 = vector.load %arg1[%c1_18, %c0_19, %c0_20] : memref<4x2x256xbf16, #tpu.memory_space<vmem>>, vector<1x2x256xbf16>
    %41 = vector.shape_cast %40 : vector<1x2x256xbf16> to vector<2x256xbf16>
    %42 = arith.extf %41 : vector<2x256xbf16> to vector<2x256xf32>
    %c5 = arith.constant 5 : index
    %43 = memref.load %arg2[%c5] : memref<128xf32, #tpu.memory_space<smem>>
    %44 = vector.broadcast %43 : f32 to vector<2x256xf32>
    %45 = arith.mulf %42, %44 : vector<2x256xf32>
    %46 = arith.addf %39, %45 : vector<2x256xf32>
    %c2_21 = arith.constant 2 : index
    %c0_22 = arith.constant 0 : index
    %c0_23 = arith.constant 0 : index
    %47 = vector.load %arg1[%c2_21, %c0_22, %c0_23] : memref<4x2x256xbf16, #tpu.memory_space<vmem>>, vector<1x2x256xbf16>
    %48 = vector.shape_cast %47 : vector<1x2x256xbf16> to vector<2x256xbf16>
    %49 = arith.extf %48 : vector<2x256xbf16> to vector<2x256xf32>
    %c6 = arith.constant 6 : index
    %50 = memref.load %arg2[%c6] : memref<128xf32, #tpu.memory_space<smem>>
    %51 = vector.broadcast %50 : f32 to vector<2x256xf32>
    %52 = arith.mulf %49, %51 : vector<2x256xf32>
    %53 = arith.addf %46, %52 : vector<2x256xf32>
    %c3_24 = arith.constant 3 : index
    %c0_25 = arith.constant 0 : index
    %c0_26 = arith.constant 0 : index
    %54 = vector.load %arg1[%c3_24, %c0_25, %c0_26] : memref<4x2x256xbf16, #tpu.memory_space<vmem>>, vector<1x2x256xbf16>
    %55 = vector.shape_cast %54 : vector<1x2x256xbf16> to vector<2x256xbf16>
    %56 = arith.extf %55 : vector<2x256xbf16> to vector<2x256xf32>
    %c7 = arith.constant 7 : index
    %57 = memref.load %arg2[%c7] : memref<128xf32, #tpu.memory_space<smem>>
    %58 = vector.broadcast %57 : f32 to vector<2x256xf32>
    %59 = arith.mulf %56, %58 : vector<2x256xf32>
    %60 = arith.addf %53, %59 : vector<2x256xf32>
    %c1_27 = arith.constant 1 : index
    %61 = memref.load %arg3[%c1_27] : memref<32xf32, #tpu.memory_space<smem>>
    %62 = vector.broadcast %61 : f32 to vector<2x256xf32>
    %63 = arith.addf %60, %62 : vector<2x256xf32>
    %cst_28 = arith.constant 0.000000e+00 : f32
    %64 = vector.broadcast %cst_28 : f32 to vector<2x256xf32>
    %65 = arith.maximumf %63, %64 : vector<2x256xf32>
    %66 = arith.truncf %65 : vector<2x256xf32> to vector<2x256xbf16>
    %c0_29 = arith.constant 0 : index
    %c256 = arith.constant 256 : index
    %67 = vector.load %arg7[%c0_29, %c256] : memref<2x8192xbf16, #tpu.memory_space<vmem>>, vector<2x256xbf16>
    tpu.vector_store %arg7[%c0_29, %c256], %66 {strides = array<i32>} : memref<2x8192xbf16, #tpu.memory_space<vmem>>, vector<2x256xbf16>,
    %c0_30 = arith.constant 0 : index
    %c0_31 = arith.constant 0 : index
    %c0_32 = arith.constant 0 : index
    %68 = vector.load %arg1[%c0_30, %c0_31, %c0_32] : memref<4x2x256xbf16, #tpu.memory_space<vmem>>, vector<1x2x256xbf16>
    %69 = vector.shape_cast %68 : vector<1x2x256xbf16> to vector<2x256xbf16>
    %70 = arith.extf %69 : vector<2x256xbf16> to vector<2x256xf32>
    %c8 = arith.constant 8 : index
    %71 = memref.load %arg2[%c8] : memref<128xf32, #tpu.memory_space<smem>>
    %72 = vector.broadcast %71 : f32 to vector<2x256xf32>
    %73 = arith.mulf %70, %72 : vector<2x256xf32>
    %c1_33 = arith.constant 1 : index
    %c0_34 = arith.constant 0 : index
    %c0_35 = arith.constant 0 : index
    %74 = vector.load %arg1[%c1_33, %c0_34, %c0_35] : memref<4x2x256xbf16, #tpu.memory_space<vmem>>, vector<1x2x256xbf16>
    %75 = vector.shape_cast %74 : vector<1x2x256xbf16> to vector<2x256xbf16>
    %76 = arith.extf %75 : vector<2x256xbf16> to vector<2x256xf32>
    %c9 = arith.constant 9 : index
    %77 = memref.load %arg2[%c9] : memref<128xf32, #tpu.memory_space<smem>>
    %78 = vector.broadcast %77 : f32 to vector<2x256xf32>
    %79 = arith.mulf %76, %78 : vector<2x256xf32>
    %80 = arith.addf %73, %79 : vector<2x256xf32>
    %c2_36 = arith.constant 2 : index
    %c0_37 = arith.constant 0 : index
    %c0_38 = arith.constant 0 : index
    %81 = vector.load %arg1[%c2_36, %c0_37, %c0_38] : memref<4x2x256xbf16, #tpu.memory_space<vmem>>, vector<1x2x256xbf16>
    %82 = vector.shape_cast %81 : vector<1x2x256xbf16> to vector<2x256xbf16>
    %83 = arith.extf %82 : vector<2x256xbf16> to vector<2x256xf32>
    %c10 = arith.constant 10 : index
    %84 = memref.load %arg2[%c10] : memref<128xf32, #tpu.memory_space<smem>>
    %85 = vector.broadcast %84 : f32 to vector<2x256xf32>
    %86 = arith.mulf %83, %85 : vector<2x256xf32>
    %87 = arith.addf %80, %86 : vector<2x256xf32>
    %c3_39 = arith.constant 3 : index
    %c0_40 = arith.constant 0 : index
    %c0_41 = arith.constant 0 : index
    %88 = vector.load %arg1[%c3_39, %c0_40, %c0_41] : memref<4x2x256xbf16, #tpu.memory_space<vmem>>, vector<1x2x256xbf16>
    %89 = vector.shape_cast %88 : vector<1x2x256xbf16> to vector<2x256xbf16>
    %90 = arith.extf %89 : vector<2x256xbf16> to vector<2x256xf32>
    %c11 = arith.constant 11 : index
    %91 = memref.load %arg2[%c11] : memref<128xf32, #tpu.memory_space<smem>>
    %92 = vector.broadcast %91 : f32 to vector<2x256xf32>
    %93 = arith.mulf %90, %92 : vector<2x256xf32>
    %94 = arith.addf %87, %93 : vector<2x256xf32>
    %c2_42 = arith.constant 2 : index
    %95 = memref.load %arg3[%c2_42] : memref<32xf32, #tpu.memory_space<smem>>
    %96 = vector.broadcast %95 : f32 to vector<2x256xf32>
    %97 = arith.addf %94, %96 : vector<2x256xf32>
    %cst_43 = arith.constant 0.000000e+00 : f32
    %98 = vector.broadcast %cst_43 : f32 to vector<2x256xf32>
    %99 = arith.maximumf %97, %98 : vector<2x256xf32>
    %100 = arith.truncf %99 : vector<2x256xf32> to vector<2x256xbf16>
    %c0_44 = arith.constant 0 : index
    %c512 = arith.constant 512 : index
    %101 = vector.load %arg7[%c0_44, %c512] : memref<2x8192xbf16, #tpu.memory_space<vmem>>, vector<2x256xbf16>
    tpu.vector_store %arg7[%c0_44, %c512], %100 {strides = array<i32>} : memref<2x8192xbf16, #tpu.memory_space<vmem>>, vector<2x256xbf16>,
    %c0_45 = arith.constant 0 : index
    %c0_46 = arith.constant 0 : index
    %c0_47 = arith.constant 0 : index
    %102 = vector.load %arg1[%c0_45, %c0_46, %c0_47] : memref<4x2x256xbf16, #tpu.memory_space<vmem>>, vector<1x2x256xbf16>
    %103 = vector.shape_cast %102 : vector<1x2x256xbf16> to vector<2x256xbf16>
    %104 = arith.extf %103 : vector<2x256xbf16> to vector<2x256xf32>
    %c12 = arith.constant 12 : index
    %105 = memref.load %arg2[%c12] : memref<128xf32, #tpu.memory_space<smem>>
    %106 = vector.broadcast %105 : f32 to vector<2x256xf32>
    %107 = arith.mulf %104, %106 : vector<2x256xf32>
    %c1_48 = arith.constant 1 : index
    %c0_49 = arith.constant 0 : index
    %c0_50 = arith.constant 0 : index
    %108 = vector.load %arg1[%c1_48, %c0_49, %c0_50] : memref<4x2x256xbf16, #tpu.memory_space<vmem>>, vector<1x2x256xbf16>
    %109 = vector.shape_cast %108 : vector<1x2x256xbf16> to vector<2x256xbf16>
    %110 = arith.extf %109 : vector<2x256xbf16> to vector<2x256xf32>
    %c13 = arith.constant 13 : index
    %111 = memref.load %arg2[%c13] : memref<128xf32, #tpu.memory_space<smem>>
    %112 = vector.broadcast %111 : f32 to vector<2x256xf32>
    %113 = arith.mulf %110, %112 : vector<2x256xf32>
    %114 = arith.addf %107, %113 : vector<2x256xf32>
    %c2_51 = arith.constant 2 : index
    %c0_52 = arith.constant 0 : index
    %c0_53 = arith.constant 0 : index
    %115 = vector.load %arg1[%c2_51, %c0_52, %c0_53] : memref<4x2x256xbf16, #tpu.memory_space<vmem>>, vector<1x2x256xbf16>
    %116 = vector.shape_cast %115 : vector<1x2x256xbf16> to vector<2x256xbf16>
    %117 = arith.extf %116 : vector<2x256xbf16> to vector<2x256xf32>
    %c14 = arith.constant 14 : index
    %118 = memref.load %arg2[%c14] : memref<128xf32, #tpu.memory_space<smem>>
    %119 = vector.broadcast %118 : f32 to vector<2x256xf32>
    %120 = arith.mulf %117, %119 : vector<2x256xf32>
    %121 = arith.addf %114, %120 : vector<2x256xf32>
    %c3_54 = arith.constant 3 : index
    %c0_55 = arith.constant 0 : index
    %c0_56 = arith.constant 0 : index
    %122 = vector.load %arg1[%c3_54, %c0_55, %c0_56] : memref<4x2x256xbf16, #tpu.memory_space<vmem>>, vector<1x2x256xbf16>
    %123 = vector.shape_cast %122 : vector<1x2x256xbf16> to vector<2x256xbf16>
    %124 = arith.extf %123 : vector<2x256xbf16> to vector<2x256xf32>
    %c15 = arith.constant 15 : index
    %125 = memref.load %arg2[%c15] : memref<128xf32, #tpu.memory_space<smem>>
    %126 = vector.broadcast %125 : f32 to vector<2x256xf32>
    %127 = arith.mulf %124, %126 : vector<2x256xf32>
    %128 = arith.addf %121, %127 : vector<2x256xf32>
    %c3_57 = arith.constant 3 : index
    %129 = memref.load %arg3[%c3_57] : memref<32xf32, #tpu.memory_space<smem>>
    %130 = vector.broadcast %129 : f32 to vector<2x256xf32>
    %131 = arith.addf %128, %130 : vector<2x256xf32>
    %cst_58 = arith.constant 0.000000e+00 : f32
    %132 = vector.broadcast %cst_58 : f32 to vector<2x256xf32>
    %133 = arith.maximumf %131, %132 : vector<2x256xf32>
    %134 = arith.truncf %133 : vector<2x256xf32> to vector<2x256xbf16>
    %c0_59 = arith.constant 0 : index
    %c768 = arith.constant 768 : index
    %135 = vector.load %arg7[%c0_59, %c768] : memref<2x8192xbf16, #tpu.memory_space<vmem>>, vector<2x256xbf16>
    tpu.vector_store %arg7[%c0_59, %c768], %134 {strides = array<i32>} : memref<2x8192xbf16, #tpu.memory_space<vmem>>, vector<2x256xbf16>,
    %c0_60 = arith.constant 0 : index
    %c0_61 = arith.constant 0 : index
    %c0_62 = arith.constant 0 : index
    %136 = vector.load %arg1[%c0_60, %c0_61, %c0_62] : memref<4x2x256xbf16, #tpu.memory_space<vmem>>, vector<1x2x256xbf16>
    %137 = vector.shape_cast %136 : vector<1x2x256xbf16> to vector<2x256xbf16>
    %138 = arith.extf %137 : vector<2x256xbf16> to vector<2x256xf32>
    %c16 = arith.constant 16 : index
    %139 = memref.load %arg2[%c16] : memref<128xf32, #tpu.memory_space<smem>>
    %140 = vector.broadcast %139 : f32 to vector<2x256xf32>
    %141 = arith.mulf %138, %140 : vector<2x256xf32>
    %c1_63 = arith.constant 1 : index
    %c0_64 = arith.constant 0 : index
    %c0_65 = arith.constant 0 : index
    %142 = vector.load %arg1[%c1_63, %c0_64, %c0_65] : memref<4x2x256xbf16, #tpu.memory_space<vmem>>, vector<1x2x256xbf16>
    %143 = vector.shape_cast %142 : vector<1x2x256xbf16> to vector<2x256xbf16>
    %144 = arith.extf %143 : vector<2x256xbf16> to vector<2x256xf32>
    %c17 = arith.constant 17 : index
    %145 = memref.load %arg2[%c17] : memref<128xf32, #tpu.memory_space<smem>>
    %146 = vector.broadcast %145 : f32 to vector<2x256xf32>
    %147 = arith.mulf %144, %146 : vector<2x256xf32>
    %148 = arith.addf %141, %147 : vector<2x256xf32>
    %c2_66 = arith.constant 2 : index
    %c0_67 = arith.constant 0 : index
    %c0_68 = arith.constant 0 : index
    %149 = vector.load %arg1[%c2_66, %c0_67, %c0_68] : memref<4x2x256xbf16, #tpu.memory_space<vmem>>, vector<1x2x256xbf16>
    %150 = vector.shape_cast %149 : vector<1x2x256xbf16> to vector<2x256xbf16>
    %151 = arith.extf %150 : vector<2x256xbf16> to vector<2x256xf32>
    %c18 = arith.constant 18 : index
    %152 = memref.load %arg2[%c18] : memref<128xf32, #tpu.memory_space<smem>>
    %153 = vector.broadcast %152 : f32 to vector<2x256xf32>
    %154 = arith.mulf %151, %153 : vector<2x256xf32>
    %155 = arith.addf %148, %154 : vector<2x256xf32>
    %c3_69 = arith.constant 3 : index
    %c0_70 = arith.constant 0 : index
    %c0_71 = arith.constant 0 : index
    %156 = vector.load %arg1[%c3_69, %c0_70, %c0_71] : memref<4x2x256xbf16, #tpu.memory_space<vmem>>, vector<1x2x256xbf16>
    %157 = vector.shape_cast %156 : vector<1x2x256xbf16> to vector<2x256xbf16>
    %158 = arith.extf %157 : vector<2x256xbf16> to vector<2x256xf32>
    %c19 = arith.constant 19 : index
    %159 = memref.load %arg2[%c19] : memref<128xf32, #tpu.memory_space<smem>>
    %160 = vector.broadcast %159 : f32 to vector<2x256xf32>
    %161 = arith.mulf %158, %160 : vector<2x256xf32>
    %162 = arith.addf %155, %161 : vector<2x256xf32>
    %c4_72 = arith.constant 4 : index
    %163 = memref.load %arg3[%c4_72] : memref<32xf32, #tpu.memory_space<smem>>
    %164 = vector.broadcast %163 : f32 to vector<2x256xf32>
    %165 = arith.addf %162, %164 : vector<2x256xf32>
    %cst_73 = arith.constant 0.000000e+00 : f32
    %166 = vector.broadcast %cst_73 : f32 to vector<2x256xf32>
    %167 = arith.maximumf %165, %166 : vector<2x256xf32>
    %168 = arith.truncf %167 : vector<2x256xf32> to vector<2x256xbf16>
    %c0_74 = arith.constant 0 : index
    %c1024 = arith.constant 1024 : index
    %169 = vector.load %arg7[%c0_74, %c1024] : memref<2x8192xbf16, #tpu.memory_space<vmem>>, vector<2x256xbf16>
    tpu.vector_store %arg7[%c0_74, %c1024], %168 {strides = array<i32>} : memref<2x8192xbf16, #tpu.memory_space<vmem>>, vector<2x256xbf16>,
    %c0_75 = arith.constant 0 : index
    %c0_76 = arith.constant 0 : index
    %c0_77 = arith.constant 0 : index
    %170 = vector.load %arg1[%c0_75, %c0_76, %c0_77] : memref<4x2x256xbf16, #tpu.memory_space<vmem>>, vector<1x2x256xbf16>
    %171 = vector.shape_cast %170 : vector<1x2x256xbf16> to vector<2x256xbf16>
    %172 = arith.extf %171 : vector<2x256xbf16> to vector<2x256xf32>
    %c20 = arith.constant 20 : index
    %173 = memref.load %arg2[%c20] : memref<128xf32, #tpu.memory_space<smem>>
    %174 = vector.broadcast %173 : f32 to vector<2x256xf32>
    %175 = arith.mulf %172, %174 : vector<2x256xf32>
    %c1_78 = arith.constant 1 : index
    %c0_79 = arith.constant 0 : index
    %c0_80 = arith.constant 0 : index
    %176 = vector.load %arg1[%c1_78, %c0_79, %c0_80] : memref<4x2x256xbf16, #tpu.memory_space<vmem>>, vector<1x2x256xbf16>
    %177 = vector.shape_cast %176 : vector<1x2x256xbf16> to vector<2x256xbf16>
    %178 = arith.extf %177 : vector<2x256xbf16> to vector<2x256xf32>
    %c21 = arith.constant 21 : index
    %179 = memref.load %arg2[%c21] : memref<128xf32, #tpu.memory_space<smem>>
    %180 = vector.broadcast %179 : f32 to vector<2x256xf32>
    %181 = arith.mulf %178, %180 : vector<2x256xf32>
    %182 = arith.addf %175, %181 : vector<2x256xf32>
    %c2_81 = arith.constant 2 : index
    %c0_82 = arith.constant 0 : index
    %c0_83 = arith.constant 0 : index
    %183 = vector.load %arg1[%c2_81, %c0_82, %c0_83] : memref<4x2x256xbf16, #tpu.memory_space<vmem>>, vector<1x2x256xbf16>
    %184 = vector.shape_cast %183 : vector<1x2x256xbf16> to vector<2x256xbf16>
    %185 = arith.extf %184 : vector<2x256xbf16> to vector<2x256xf32>
    %c22 = arith.constant 22 : index
    %186 = memref.load %arg2[%c22] : memref<128xf32, #tpu.memory_space<smem>>
    %187 = vector.broadcast %186 : f32 to vector<2x256xf32>
    %188 = arith.mulf %185, %187 : vector<2x256xf32>
    %189 = arith.addf %182, %188 : vector<2x256xf32>
    %c3_84 = arith.constant 3 : index
    %c0_85 = arith.constant 0 : index
    %c0_86 = arith.constant 0 : index
    %190 = vector.load %arg1[%c3_84, %c0_85, %c0_86] : memref<4x2x256xbf16, #tpu.memory_space<vmem>>, vector<1x2x256xbf16>
    %191 = vector.shape_cast %190 : vector<1x2x256xbf16> to vector<2x256xbf16>
    %192 = arith.extf %191 : vector<2x256xbf16> to vector<2x256xf32>
    %c23 = arith.constant 23 : index
    %193 = memref.load %arg2[%c23] : memref<128xf32, #tpu.memory_space<smem>>
    %194 = vector.broadcast %193 : f32 to vector<2x256xf32>
    %195 = arith.mulf %192, %194 : vector<2x256xf32>
    %196 = arith.addf %189, %195 : vector<2x256xf32>
    %c5_87 = arith.constant 5 : index
    %197 = memref.load %arg3[%c5_87] : memref<32xf32, #tpu.memory_space<smem>>
    %198 = vector.broadcast %197 : f32 to vector<2x256xf32>
    %199 = arith.addf %196, %198 : vector<2x256xf32>
    %cst_88 = arith.constant 0.000000e+00 : f32
    %200 = vector.broadcast %cst_88 : f32 to vector<2x256xf32>
    %201 = arith.maximumf %199, %200 : vector<2x256xf32>
    %202 = arith.truncf %201 : vector<2x256xf32> to vector<2x256xbf16>
    %c0_89 = arith.constant 0 : index
    %c1280 = arith.constant 1280 : index
    %203 = vector.load %arg7[%c0_89, %c1280] : memref<2x8192xbf16, #tpu.memory_space<vmem>>, vector<2x256xbf16>
    tpu.vector_store %arg7[%c0_89, %c1280], %202 {strides = array<i32>} : memref<2x8192xbf16, #tpu.memory_space<vmem>>, vector<2x256xbf16>,
    %c0_90 = arith.constant 0 : index
    %c0_91 = arith.constant 0 : index
    %c0_92 = arith.constant 0 : index
    %204 = vector.load %arg1[%c0_90, %c0_91, %c0_92] : memref<4x2x256xbf16, #tpu.memory_space<vmem>>, vector<1x2x256xbf16>
    %205 = vector.shape_cast %204 : vector<1x2x256xbf16> to vector<2x256xbf16>
    %206 = arith.extf %205 : vector<2x256xbf16> to vector<2x256xf32>
    %c24 = arith.constant 24 : index
    %207 = memref.load %arg2[%c24] : memref<128xf32, #tpu.memory_space<smem>>
    %208 = vector.broadcast %207 : f32 to vector<2x256xf32>
    %209 = arith.mulf %206, %208 : vector<2x256xf32>
    %c1_93 = arith.constant 1 : index
    %c0_94 = arith.constant 0 : index
    %c0_95 = arith.constant 0 : index
    %210 = vector.load %arg1[%c1_93, %c0_94, %c0_95] : memref<4x2x256xbf16, #tpu.memory_space<vmem>>, vector<1x2x256xbf16>
    %211 = vector.shape_cast %210 : vector<1x2x256xbf16> to vector<2x256xbf16>
    %212 = arith.extf %211 : vector<2x256xbf16> to vector<2x256xf32>
    %c25 = arith.constant 25 : index
    %213 = memref.load %arg2[%c25] : memref<128xf32, #tpu.memory_space<smem>>
    %214 = vector.broadcast %213 : f32 to vector<2x256xf32>
    %215 = arith.mulf %212, %214 : vector<2x256xf32>
    %216 = arith.addf %209, %215 : vector<2x256xf32>
    %c2_96 = arith.constant 2 : index
    %c0_97 = arith.constant 0 : index
    %c0_98 = arith.constant 0 : index
    %217 = vector.load %arg1[%c2_96, %c0_97, %c0_98] : memref<4x2x256xbf16, #tpu.memory_space<vmem>>, vector<1x2x256xbf16>
    %218 = vector.shape_cast %217 : vector<1x2x256xbf16> to vector<2x256xbf16>
    %219 = arith.extf %218 : vector<2x256xbf16> to vector<2x256xf32>
    %c26 = arith.constant 26 : index
    %220 = memref.load %arg2[%c26] : memref<128xf32, #tpu.memory_space<smem>>
    %221 = vector.broadcast %220 : f32 to vector<2x256xf32>
    %222 = arith.mulf %219, %221 : vector<2x256xf32>
    %223 = arith.addf %216, %222 : vector<2x256xf32>
    %c3_99 = arith.constant 3 : index
    %c0_100 = arith.constant 0 : index
    %c0_101 = arith.constant 0 : index
    %224 = vector.load %arg1[%c3_99, %c0_100, %c0_101] : memref<4x2x256xbf16, #tpu.memory_space<vmem>>, vector<1x2x256xbf16>
    %225 = vector.shape_cast %224 : vector<1x2x256xbf16> to vector<2x256xbf16>
    %226 = arith.extf %225 : vector<2x256xbf16> to vector<2x256xf32>
    %c27 = arith.constant 27 : index
    %227 = memref.load %arg2[%c27] : memref<128xf32, #tpu.memory_space<smem>>
    %228 = vector.broadcast %227 : f32 to vector<2x256xf32>
    %229 = arith.mulf %226, %228 : vector<2x256xf32>
    %230 = arith.addf %223, %229 : vector<2x256xf32>
    %c6_102 = arith.constant 6 : index
    %231 = memref.load %arg3[%c6_102] : memref<32xf32, #tpu.memory_space<smem>>
    %232 = vector.broadcast %231 : f32 to vector<2x256xf32>
    %233 = arith.addf %230, %232 : vector<2x256xf32>
    %cst_103 = arith.constant 0.000000e+00 : f32
    %234 = vector.broadcast %cst_103 : f32 to vector<2x256xf32>
    %235 = arith.maximumf %233, %234 : vector<2x256xf32>
    %236 = arith.truncf %235 : vector<2x256xf32> to vector<2x256xbf16>
    %c0_104 = arith.constant 0 : index
    %c1536 = arith.constant 1536 : index
    %237 = vector.load %arg7[%c0_104, %c1536] : memref<2x8192xbf16, #tpu.memory_space<vmem>>, vector<2x256xbf16>
    tpu.vector_store %arg7[%c0_104, %c1536], %236 {strides = array<i32>} : memref<2x8192xbf16, #tpu.memory_space<vmem>>, vector<2x256xbf16>,
    %c0_105 = arith.constant 0 : index
    %c0_106 = arith.constant 0 : index
    %c0_107 = arith.constant 0 : index
    %238 = vector.load %arg1[%c0_105, %c0_106, %c0_107] : memref<4x2x256xbf16, #tpu.memory_space<vmem>>, vector<1x2x256xbf16>
    %239 = vector.shape_cast %238 : vector<1x2x256xbf16> to vector<2x256xbf16>
    %240 = arith.extf %239 : vector<2x256xbf16> to vector<2x256xf32>
    %c28 = arith.constant 28 : index
    %241 = memref.load %arg2[%c28] : memref<128xf32, #tpu.memory_space<smem>>
    %242 = vector.broadcast %241 : f32 to vector<2x256xf32>
    %243 = arith.mulf %240, %242 : vector<2x256xf32>
    %c1_108 = arith.constant 1 : index
    %c0_109 = arith.constant 0 : index
    %c0_110 = arith.constant 0 : index
    %244 = vector.load %arg1[%c1_108, %c0_109, %c0_110] : memref<4x2x256xbf16, #tpu.memory_space<vmem>>, vector<1x2x256xbf16>
    %245 = vector.shape_cast %244 : vector<1x2x256xbf16> to vector<2x256xbf16>
    %246 = arith.extf %245 : vector<2x256xbf16> to vector<2x256xf32>
    %c29 = arith.constant 29 : index
    %247 = memref.load %arg2[%c29] : memref<128xf32, #tpu.memory_space<smem>>
    %248 = vector.broadcast %247 : f32 to vector<2x256xf32>
    %249 = arith.mulf %246, %248 : vector<2x256xf32>
    %250 = arith.addf %243, %249 : vector<2x256xf32>
    %c2_111 = arith.constant 2 : index
    %c0_112 = arith.constant 0 : index
    %c0_113 = arith.constant 0 : index
    %251 = vector.load %arg1[%c2_111, %c0_112, %c0_113] : memref<4x2x256xbf16, #tpu.memory_space<vmem>>, vector<1x2x256xbf16>
    %252 = vector.shape_cast %251 : vector<1x2x256xbf16> to vector<2x256xbf16>
    %253 = arith.extf %252 : vector<2x256xbf16> to vector<2x256xf32>
    %c30 = arith.constant 30 : index
    %254 = memref.load %arg2[%c30] : memref<128xf32, #tpu.memory_space<smem>>
    %255 = vector.broadcast %254 : f32 to vector<2x256xf32>
    %256 = arith.mulf %253, %255 : vector<2x256xf32>
    %257 = arith.addf %250, %256 : vector<2x256xf32>
    %c3_114 = arith.constant 3 : index
    %c0_115 = arith.constant 0 : index
    %c0_116 = arith.constant 0 : index
    %258 = vector.load %arg1[%c3_114, %c0_115, %c0_116] : memref<4x2x256xbf16, #tpu.memory_space<vmem>>, vector<1x2x256xbf16>
    %259 = vector.shape_cast %258 : vector<1x2x256xbf16> to vector<2x256xbf16>
    %260 = arith.extf %259 : vector<2x256xbf16> to vector<2x256xf32>
    %c31 = arith.constant 31 : index
    %261 = memref.load %arg2[%c31] : memref<128xf32, #tpu.memory_space<smem>>
    %262 = vector.broadcast %261 : f32 to vector<2x256xf32>
    %263 = arith.mulf %260, %262 : vector<2x256xf32>
    %264 = arith.addf %257, %263 : vector<2x256xf32>
    %c7_117 = arith.constant 7 : index
    %265 = memref.load %arg3[%c7_117] : memref<32xf32, #tpu.memory_space<smem>>
    %266 = vector.broadcast %265 : f32 to vector<2x256xf32>
    %267 = arith.addf %264, %266 : vector<2x256xf32>
    %cst_118 = arith.constant 0.000000e+00 : f32
    %268 = vector.broadcast %cst_118 : f32 to vector<2x256xf32>
    %269 = arith.maximumf %267, %268 : vector<2x256xf32>
    %270 = arith.truncf %269 : vector<2x256xf32> to vector<2x256xbf16>
    %c0_119 = arith.constant 0 : index
    %c1792 = arith.constant 1792 : index
    %271 = vector.load %arg7[%c0_119, %c1792] : memref<2x8192xbf16, #tpu.memory_space<vmem>>, vector<2x256xbf16>
    tpu.vector_store %arg7[%c0_119, %c1792], %270 {strides = array<i32>} : memref<2x8192xbf16, #tpu.memory_space<vmem>>, vector<2x256xbf16>,
    %c0_120 = arith.constant 0 : index
    %c0_121 = arith.constant 0 : index
    %c0_122 = arith.constant 0 : index
    %272 = vector.load %arg1[%c0_120, %c0_121, %c0_122] : memref<4x2x256xbf16, #tpu.memory_space<vmem>>, vector<1x2x256xbf16>
    %273 = vector.shape_cast %272 : vector<1x2x256xbf16> to vector<2x256xbf16>
    %274 = arith.extf %273 : vector<2x256xbf16> to vector<2x256xf32>
    %c32 = arith.constant 32 : index
    %275 = memref.load %arg2[%c32] : memref<128xf32, #tpu.memory_space<smem>>
    %276 = vector.broadcast %275 : f32 to vector<2x256xf32>
    %277 = arith.mulf %274, %276 : vector<2x256xf32>
    %c1_123 = arith.constant 1 : index
    %c0_124 = arith.constant 0 : index
    %c0_125 = arith.constant 0 : index
    %278 = vector.load %arg1[%c1_123, %c0_124, %c0_125] : memref<4x2x256xbf16, #tpu.memory_space<vmem>>, vector<1x2x256xbf16>
    %279 = vector.shape_cast %278 : vector<1x2x256xbf16> to vector<2x256xbf16>
    %280 = arith.extf %279 : vector<2x256xbf16> to vector<2x256xf32>
    %c33 = arith.constant 33 : index
    %281 = memref.load %arg2[%c33] : memref<128xf32, #tpu.memory_space<smem>>
    %282 = vector.broadcast %281 : f32 to vector<2x256xf32>
    %283 = arith.mulf %280, %282 : vector<2x256xf32>
    %284 = arith.addf %277, %283 : vector<2x256xf32>
    %c2_126 = arith.constant 2 : index
    %c0_127 = arith.constant 0 : index
    %c0_128 = arith.constant 0 : index
    %285 = vector.load %arg1[%c2_126, %c0_127, %c0_128] : memref<4x2x256xbf16, #tpu.memory_space<vmem>>, vector<1x2x256xbf16>
    %286 = vector.shape_cast %285 : vector<1x2x256xbf16> to vector<2x256xbf16>
    %287 = arith.extf %286 : vector<2x256xbf16> to vector<2x256xf32>
    %c34 = arith.constant 34 : index
    %288 = memref.load %arg2[%c34] : memref<128xf32, #tpu.memory_space<smem>>
    %289 = vector.broadcast %288 : f32 to vector<2x256xf32>
    %290 = arith.mulf %287, %289 : vector<2x256xf32>
    %291 = arith.addf %284, %290 : vector<2x256xf32>
    %c3_129 = arith.constant 3 : index
    %c0_130 = arith.constant 0 : index
    %c0_131 = arith.constant 0 : index
    %292 = vector.load %arg1[%c3_129, %c0_130, %c0_131] : memref<4x2x256xbf16, #tpu.memory_space<vmem>>, vector<1x2x256xbf16>
    %293 = vector.shape_cast %292 : vector<1x2x256xbf16> to vector<2x256xbf16>
    %294 = arith.extf %293 : vector<2x256xbf16> to vector<2x256xf32>
    %c35 = arith.constant 35 : index
    %295 = memref.load %arg2[%c35] : memref<128xf32, #tpu.memory_space<smem>>
    %296 = vector.broadcast %295 : f32 to vector<2x256xf32>
    %297 = arith.mulf %294, %296 : vector<2x256xf32>
    %298 = arith.addf %291, %297 : vector<2x256xf32>
    %c8_132 = arith.constant 8 : index
    %299 = memref.load %arg3[%c8_132] : memref<32xf32, #tpu.memory_space<smem>>
    %300 = vector.broadcast %299 : f32 to vector<2x256xf32>
    %301 = arith.addf %298, %300 : vector<2x256xf32>
    %cst_133 = arith.constant 0.000000e+00 : f32
    %302 = vector.broadcast %cst_133 : f32 to vector<2x256xf32>
    %303 = arith.maximumf %301, %302 : vector<2x256xf32>
    %304 = arith.truncf %303 : vector<2x256xf32> to vector<2x256xbf16>
    %c0_134 = arith.constant 0 : index
    %c2048 = arith.constant 2048 : index
    %305 = vector.load %arg7[%c0_134, %c2048] : memref<2x8192xbf16, #tpu.memory_space<vmem>>, vector<2x256xbf16>
    tpu.vector_store %arg7[%c0_134, %c2048], %304 {strides = array<i32>} : memref<2x8192xbf16, #tpu.memory_space<vmem>>, vector<2x256xbf16>,
    %c0_135 = arith.constant 0 : index
    %c0_136 = arith.constant 0 : index
    %c0_137 = arith.constant 0 : index
    %306 = vector.load %arg1[%c0_135, %c0_136, %c0_137] : memref<4x2x256xbf16, #tpu.memory_space<vmem>>, vector<1x2x256xbf16>
    %307 = vector.shape_cast %306 : vector<1x2x256xbf16> to vector<2x256xbf16>
    %308 = arith.extf %307 : vector<2x256xbf16> to vector<2x256xf32>
    %c36 = arith.constant 36 : index
    %309 = memref.load %arg2[%c36] : memref<128xf32, #tpu.memory_space<smem>>
    %310 = vector.broadcast %309 : f32 to vector<2x256xf32>
    %311 = arith.mulf %308, %310 : vector<2x256xf32>
    %c1_138 = arith.constant 1 : index
    %c0_139 = arith.constant 0 : index
    %c0_140 = arith.constant 0 : index
    %312 = vector.load %arg1[%c1_138, %c0_139, %c0_140] : memref<4x2x256xbf16, #tpu.memory_space<vmem>>, vector<1x2x256xbf16>
    %313 = vector.shape_cast %312 : vector<1x2x256xbf16> to vector<2x256xbf16>
    %314 = arith.extf %313 : vector<2x256xbf16> to vector<2x256xf32>
    %c37 = arith.constant 37 : index
    %315 = memref.load %arg2[%c37] : memref<128xf32, #tpu.memory_space<smem>>
    %316 = vector.broadcast %315 : f32 to vector<2x256xf32>
    %317 = arith.mulf %314, %316 : vector<2x256xf32>
    %318 = arith.addf %311, %317 : vector<2x256xf32>
    %c2_141 = arith.constant 2 : index
    %c0_142 = arith.constant 0 : index
    %c0_143 = arith.constant 0 : index
    %319 = vector.load %arg1[%c2_141, %c0_142, %c0_143] : memref<4x2x256xbf16, #tpu.memory_space<vmem>>, vector<1x2x256xbf16>
    %320 = vector.shape_cast %319 : vector<1x2x256xbf16> to vector<2x256xbf16>
    %321 = arith.extf %320 : vector<2x256xbf16> to vector<2x256xf32>
    %c38 = arith.constant 38 : index
    %322 = memref.load %arg2[%c38] : memref<128xf32, #tpu.memory_space<smem>>
    %323 = vector.broadcast %322 : f32 to vector<2x256xf32>
    %324 = arith.mulf %321, %323 : vector<2x256xf32>
    %325 = arith.addf %318, %324 : vector<2x256xf32>
    %c3_144 = arith.constant 3 : index
    %c0_145 = arith.constant 0 : index
    %c0_146 = arith.constant 0 : index
    %326 = vector.load %arg1[%c3_144, %c0_145, %c0_146] : memref<4x2x256xbf16, #tpu.memory_space<vmem>>, vector<1x2x256xbf16>
    %327 = vector.shape_cast %326 : vector<1x2x256xbf16> to vector<2x256xbf16>
    %328 = arith.extf %327 : vector<2x256xbf16> to vector<2x256xf32>
    %c39 = arith.constant 39 : index
    %329 = memref.load %arg2[%c39] : memref<128xf32, #tpu.memory_space<smem>>
    %330 = vector.broadcast %329 : f32 to vector<2x256xf32>
    %331 = arith.mulf %328, %330 : vector<2x256xf32>
    %332 = arith.addf %325, %331 : vector<2x256xf32>
    %c9_147 = arith.constant 9 : index
    %333 = memref.load %arg3[%c9_147] : memref<32xf32, #tpu.memory_space<smem>>
    %334 = vector.broadcast %333 : f32 to vector<2x256xf32>
    %335 = arith.addf %332, %334 : vector<2x256xf32>
    %cst_148 = arith.constant 0.000000e+00 : f32
    %336 = vector.broadcast %cst_148 : f32 to vector<2x256xf32>
    %337 = arith.maximumf %335, %336 : vector<2x256xf32>
    %338 = arith.truncf %337 : vector<2x256xf32> to vector<2x256xbf16>
    %c0_149 = arith.constant 0 : index
    %c2304 = arith.constant 2304 : index
    %339 = vector.load %arg7[%c0_149, %c2304] : memref<2x8192xbf16, #tpu.memory_space<vmem>>, vector<2x256xbf16>
    tpu.vector_store %arg7[%c0_149, %c2304], %338 {strides = array<i32>} : memref<2x8192xbf16, #tpu.memory_space<vmem>>, vector<2x256xbf16>,
    %c0_150 = arith.constant 0 : index
    %c0_151 = arith.constant 0 : index
    %c0_152 = arith.constant 0 : index
    %340 = vector.load %arg1[%c0_150, %c0_151, %c0_152] : memref<4x2x256xbf16, #tpu.memory_space<vmem>>, vector<1x2x256xbf16>
    %341 = vector.shape_cast %340 : vector<1x2x256xbf16> to vector<2x256xbf16>
    %342 = arith.extf %341 : vector<2x256xbf16> to vector<2x256xf32>
    %c40 = arith.constant 40 : index
    %343 = memref.load %arg2[%c40] : memref<128xf32, #tpu.memory_space<smem>>
    %344 = vector.broadcast %343 : f32 to vector<2x256xf32>
    %345 = arith.mulf %342, %344 : vector<2x256xf32>
    %c1_153 = arith.constant 1 : index
    %c0_154 = arith.constant 0 : index
    %c0_155 = arith.constant 0 : index
    %346 = vector.load %arg1[%c1_153, %c0_154, %c0_155] : memref<4x2x256xbf16, #tpu.memory_space<vmem>>, vector<1x2x256xbf16>
    %347 = vector.shape_cast %346 : vector<1x2x256xbf16> to vector<2x256xbf16>
    %348 = arith.extf %347 : vector<2x256xbf16> to vector<2x256xf32>
    %c41 = arith.constant 41 : index
    %349 = memref.load %arg2[%c41] : memref<128xf32, #tpu.memory_space<smem>>
    %350 = vector.broadcast %349 : f32 to vector<2x256xf32>
    %351 = arith.mulf %348, %350 : vector<2x256xf32>
    %352 = arith.addf %345, %351 : vector<2x256xf32>
    %c2_156 = arith.constant 2 : index
    %c0_157 = arith.constant 0 : index
    %c0_158 = arith.constant 0 : index
    %353 = vector.load %arg1[%c2_156, %c0_157, %c0_158] : memref<4x2x256xbf16, #tpu.memory_space<vmem>>, vector<1x2x256xbf16>
    %354 = vector.shape_cast %353 : vector<1x2x256xbf16> to vector<2x256xbf16>
    %355 = arith.extf %354 : vector<2x256xbf16> to vector<2x256xf32>
    %c42 = arith.constant 42 : index
    %356 = memref.load %arg2[%c42] : memref<128xf32, #tpu.memory_space<smem>>
    %357 = vector.broadcast %356 : f32 to vector<2x256xf32>
    %358 = arith.mulf %355, %357 : vector<2x256xf32>
    %359 = arith.addf %352, %358 : vector<2x256xf32>
    %c3_159 = arith.constant 3 : index
    %c0_160 = arith.constant 0 : index
    %c0_161 = arith.constant 0 : index
    %360 = vector.load %arg1[%c3_159, %c0_160, %c0_161] : memref<4x2x256xbf16, #tpu.memory_space<vmem>>, vector<1x2x256xbf16>
    %361 = vector.shape_cast %360 : vector<1x2x256xbf16> to vector<2x256xbf16>
    %362 = arith.extf %361 : vector<2x256xbf16> to vector<2x256xf32>
    %c43 = arith.constant 43 : index
    %363 = memref.load %arg2[%c43] : memref<128xf32, #tpu.memory_space<smem>>
    %364 = vector.broadcast %363 : f32 to vector<2x256xf32>
    %365 = arith.mulf %362, %364 : vector<2x256xf32>
    %366 = arith.addf %359, %365 : vector<2x256xf32>
    %c10_162 = arith.constant 10 : index
    %367 = memref.load %arg3[%c10_162] : memref<32xf32, #tpu.memory_space<smem>>
    %368 = vector.broadcast %367 : f32 to vector<2x256xf32>
    %369 = arith.addf %366, %368 : vector<2x256xf32>
    %cst_163 = arith.constant 0.000000e+00 : f32
    %370 = vector.broadcast %cst_163 : f32 to vector<2x256xf32>
    %371 = arith.maximumf %369, %370 : vector<2x256xf32>
    %372 = arith.truncf %371 : vector<2x256xf32> to vector<2x256xbf16>
    %c0_164 = arith.constant 0 : index
    %c2560 = arith.constant 2560 : index
    %373 = vector.load %arg7[%c0_164, %c2560] : memref<2x8192xbf16, #tpu.memory_space<vmem>>, vector<2x256xbf16>
    tpu.vector_store %arg7[%c0_164, %c2560], %372 {strides = array<i32>} : memref<2x8192xbf16, #tpu.memory_space<vmem>>, vector<2x256xbf16>,
    %c0_165 = arith.constant 0 : index
    %c0_166 = arith.constant 0 : index
    %c0_167 = arith.constant 0 : index
    %374 = vector.load %arg1[%c0_165, %c0_166, %c0_167] : memref<4x2x256xbf16, #tpu.memory_space<vmem>>, vector<1x2x256xbf16>
    %375 = vector.shape_cast %374 : vector<1x2x256xbf16> to vector<2x256xbf16>
    %376 = arith.extf %375 : vector<2x256xbf16> to vector<2x256xf32>
    %c44 = arith.constant 44 : index
    %377 = memref.load %arg2[%c44] : memref<128xf32, #tpu.memory_space<smem>>
    %378 = vector.broadcast %377 : f32 to vector<2x256xf32>
    %379 = arith.mulf %376, %378 : vector<2x256xf32>
    %c1_168 = arith.constant 1 : index
    %c0_169 = arith.constant 0 : index
    %c0_170 = arith.constant 0 : index
    %380 = vector.load %arg1[%c1_168, %c0_169, %c0_170] : memref<4x2x256xbf16, #tpu.memory_space<vmem>>, vector<1x2x256xbf16>
    %381 = vector.shape_cast %380 : vector<1x2x256xbf16> to vector<2x256xbf16>
    %382 = arith.extf %381 : vector<2x256xbf16> to vector<2x256xf32>
    %c45 = arith.constant 45 : index
    %383 = memref.load %arg2[%c45] : memref<128xf32, #tpu.memory_space<smem>>
    %384 = vector.broadcast %383 : f32 to vector<2x256xf32>
    %385 = arith.mulf %382, %384 : vector<2x256xf32>
    %386 = arith.addf %379, %385 : vector<2x256xf32>
    %c2_171 = arith.constant 2 : index
    %c0_172 = arith.constant 0 : index
    %c0_173 = arith.constant 0 : index
    %387 = vector.load %arg1[%c2_171, %c0_172, %c0_173] : memref<4x2x256xbf16, #tpu.memory_space<vmem>>, vector<1x2x256xbf16>
    %388 = vector.shape_cast %387 : vector<1x2x256xbf16> to vector<2x256xbf16>
    %389 = arith.extf %388 : vector<2x256xbf16> to vector<2x256xf32>
    %c46 = arith.constant 46 : index
    %390 = memref.load %arg2[%c46] : memref<128xf32, #tpu.memory_space<smem>>
    %391 = vector.broadcast %390 : f32 to vector<2x256xf32>
    %392 = arith.mulf %389, %391 : vector<2x256xf32>
    %393 = arith.addf %386, %392 : vector<2x256xf32>
    %c3_174 = arith.constant 3 : index
    %c0_175 = arith.constant 0 : index
    %c0_176 = arith.constant 0 : index
    %394 = vector.load %arg1[%c3_174, %c0_175, %c0_176] : memref<4x2x256xbf16, #tpu.memory_space<vmem>>, vector<1x2x256xbf16>
    %395 = vector.shape_cast %394 : vector<1x2x256xbf16> to vector<2x256xbf16>
    %396 = arith.extf %395 : vector<2x256xbf16> to vector<2x256xf32>
    %c47 = arith.constant 47 : index
    %397 = memref.load %arg2[%c47] : memref<128xf32, #tpu.memory_space<smem>>
    %398 = vector.broadcast %397 : f32 to vector<2x256xf32>
    %399 = arith.mulf %396, %398 : vector<2x256xf32>
    %400 = arith.addf %393, %399 : vector<2x256xf32>
    %c11_177 = arith.constant 11 : index
    %401 = memref.load %arg3[%c11_177] : memref<32xf32, #tpu.memory_space<smem>>
    %402 = vector.broadcast %401 : f32 to vector<2x256xf32>
    %403 = arith.addf %400, %402 : vector<2x256xf32>
    %cst_178 = arith.constant 0.000000e+00 : f32
    %404 = vector.broadcast %cst_178 : f32 to vector<2x256xf32>
    %405 = arith.maximumf %403, %404 : vector<2x256xf32>
    %406 = arith.truncf %405 : vector<2x256xf32> to vector<2x256xbf16>
    %c0_179 = arith.constant 0 : index
    %c2816 = arith.constant 2816 : index
    %407 = vector.load %arg7[%c0_179, %c2816] : memref<2x8192xbf16, #tpu.memory_space<vmem>>, vector<2x256xbf16>
    tpu.vector_store %arg7[%c0_179, %c2816], %406 {strides = array<i32>} : memref<2x8192xbf16, #tpu.memory_space<vmem>>, vector<2x256xbf16>,
    %c0_180 = arith.constant 0 : index
    %c0_181 = arith.constant 0 : index
    %c0_182 = arith.constant 0 : index
    %408 = vector.load %arg1[%c0_180, %c0_181, %c0_182] : memref<4x2x256xbf16, #tpu.memory_space<vmem>>, vector<1x2x256xbf16>
    %409 = vector.shape_cast %408 : vector<1x2x256xbf16> to vector<2x256xbf16>
    %410 = arith.extf %409 : vector<2x256xbf16> to vector<2x256xf32>
    %c48 = arith.constant 48 : index
    %411 = memref.load %arg2[%c48] : memref<128xf32, #tpu.memory_space<smem>>
    %412 = vector.broadcast %411 : f32 to vector<2x256xf32>
    %413 = arith.mulf %410, %412 : vector<2x256xf32>
    %c1_183 = arith.constant 1 : index
    %c0_184 = arith.constant 0 : index
    %c0_185 = arith.constant 0 : index
    %414 = vector.load %arg1[%c1_183, %c0_184, %c0_185] : memref<4x2x256xbf16, #tpu.memory_space<vmem>>, vector<1x2x256xbf16>
    %415 = vector.shape_cast %414 : vector<1x2x256xbf16> to vector<2x256xbf16>
    %416 = arith.extf %415 : vector<2x256xbf16> to vector<2x256xf32>
    %c49 = arith.constant 49 : index
    %417 = memref.load %arg2[%c49] : memref<128xf32, #tpu.memory_space<smem>>
    %418 = vector.broadcast %417 : f32 to vector<2x256xf32>
    %419 = arith.mulf %416, %418 : vector<2x256xf32>
    %420 = arith.addf %413, %419 : vector<2x256xf32>
    %c2_186 = arith.constant 2 : index
    %c0_187 = arith.constant 0 : index
    %c0_188 = arith.constant 0 : index
    %421 = vector.load %arg1[%c2_186, %c0_187, %c0_188] : memref<4x2x256xbf16, #tpu.memory_space<vmem>>, vector<1x2x256xbf16>
    %422 = vector.shape_cast %421 : vector<1x2x256xbf16> to vector<2x256xbf16>
    %423 = arith.extf %422 : vector<2x256xbf16> to vector<2x256xf32>
    %c50 = arith.constant 50 : index
    %424 = memref.load %arg2[%c50] : memref<128xf32, #tpu.memory_space<smem>>
    %425 = vector.broadcast %424 : f32 to vector<2x256xf32>
    %426 = arith.mulf %423, %425 : vector<2x256xf32>
    %427 = arith.addf %420, %426 : vector<2x256xf32>
    %c3_189 = arith.constant 3 : index
    %c0_190 = arith.constant 0 : index
    %c0_191 = arith.constant 0 : index
    %428 = vector.load %arg1[%c3_189, %c0_190, %c0_191] : memref<4x2x256xbf16, #tpu.memory_space<vmem>>, vector<1x2x256xbf16>
    %429 = vector.shape_cast %428 : vector<1x2x256xbf16> to vector<2x256xbf16>
    %430 = arith.extf %429 : vector<2x256xbf16> to vector<2x256xf32>
    %c51 = arith.constant 51 : index
    %431 = memref.load %arg2[%c51] : memref<128xf32, #tpu.memory_space<smem>>
    %432 = vector.broadcast %431 : f32 to vector<2x256xf32>
    %433 = arith.mulf %430, %432 : vector<2x256xf32>
    %434 = arith.addf %427, %433 : vector<2x256xf32>
    %c12_192 = arith.constant 12 : index
    %435 = memref.load %arg3[%c12_192] : memref<32xf32, #tpu.memory_space<smem>>
    %436 = vector.broadcast %435 : f32 to vector<2x256xf32>
    %437 = arith.addf %434, %436 : vector<2x256xf32>
    %cst_193 = arith.constant 0.000000e+00 : f32
    %438 = vector.broadcast %cst_193 : f32 to vector<2x256xf32>
    %439 = arith.maximumf %437, %438 : vector<2x256xf32>
    %440 = arith.truncf %439 : vector<2x256xf32> to vector<2x256xbf16>
    %c0_194 = arith.constant 0 : index
    %c3072 = arith.constant 3072 : index
    %441 = vector.load %arg7[%c0_194, %c3072] : memref<2x8192xbf16, #tpu.memory_space<vmem>>, vector<2x256xbf16>
    tpu.vector_store %arg7[%c0_194, %c3072], %440 {strides = array<i32>} : memref<2x8192xbf16, #tpu.memory_space<vmem>>, vector<2x256xbf16>,
    %c0_195 = arith.constant 0 : index
    %c0_196 = arith.constant 0 : index
    %c0_197 = arith.constant 0 : index
    %442 = vector.load %arg1[%c0_195, %c0_196, %c0_197] : memref<4x2x256xbf16, #tpu.memory_space<vmem>>, vector<1x2x256xbf16>
    %443 = vector.shape_cast %442 : vector<1x2x256xbf16> to vector<2x256xbf16>
    %444 = arith.extf %443 : vector<2x256xbf16> to vector<2x256xf32>
    %c52 = arith.constant 52 : index
    %445 = memref.load %arg2[%c52] : memref<128xf32, #tpu.memory_space<smem>>
    %446 = vector.broadcast %445 : f32 to vector<2x256xf32>
    %447 = arith.mulf %444, %446 : vector<2x256xf32>
    %c1_198 = arith.constant 1 : index
    %c0_199 = arith.constant 0 : index
    %c0_200 = arith.constant 0 : index
    %448 = vector.load %arg1[%c1_198, %c0_199, %c0_200] : memref<4x2x256xbf16, #tpu.memory_space<vmem>>, vector<1x2x256xbf16>
    %449 = vector.shape_cast %448 : vector<1x2x256xbf16> to vector<2x256xbf16>
    %450 = arith.extf %449 : vector<2x256xbf16> to vector<2x256xf32>
    %c53 = arith.constant 53 : index
    %451 = memref.load %arg2[%c53] : memref<128xf32, #tpu.memory_space<smem>>
    %452 = vector.broadcast %451 : f32 to vector<2x256xf32>
    %453 = arith.mulf %450, %452 : vector<2x256xf32>
    %454 = arith.addf %447, %453 : vector<2x256xf32>
    %c2_201 = arith.constant 2 : index
    %c0_202 = arith.constant 0 : index
    %c0_203 = arith.constant 0 : index
    %455 = vector.load %arg1[%c2_201, %c0_202, %c0_203] : memref<4x2x256xbf16, #tpu.memory_space<vmem>>, vector<1x2x256xbf16>
    %456 = vector.shape_cast %455 : vector<1x2x256xbf16> to vector<2x256xbf16>
    %457 = arith.extf %456 : vector<2x256xbf16> to vector<2x256xf32>
    %c54 = arith.constant 54 : index
    %458 = memref.load %arg2[%c54] : memref<128xf32, #tpu.memory_space<smem>>
    %459 = vector.broadcast %458 : f32 to vector<2x256xf32>
    %460 = arith.mulf %457, %459 : vector<2x256xf32>
    %461 = arith.addf %454, %460 : vector<2x256xf32>
    %c3_204 = arith.constant 3 : index
    %c0_205 = arith.constant 0 : index
    %c0_206 = arith.constant 0 : index
    %462 = vector.load %arg1[%c3_204, %c0_205, %c0_206] : memref<4x2x256xbf16, #tpu.memory_space<vmem>>, vector<1x2x256xbf16>
    %463 = vector.shape_cast %462 : vector<1x2x256xbf16> to vector<2x256xbf16>
    %464 = arith.extf %463 : vector<2x256xbf16> to vector<2x256xf32>
    %c55 = arith.constant 55 : index
    %465 = memref.load %arg2[%c55] : memref<128xf32, #tpu.memory_space<smem>>
    %466 = vector.broadcast %465 : f32 to vector<2x256xf32>
    %467 = arith.mulf %464, %466 : vector<2x256xf32>
    %468 = arith.addf %461, %467 : vector<2x256xf32>
    %c13_207 = arith.constant 13 : index
    %469 = memref.load %arg3[%c13_207] : memref<32xf32, #tpu.memory_space<smem>>
    %470 = vector.broadcast %469 : f32 to vector<2x256xf32>
    %471 = arith.addf %468, %470 : vector<2x256xf32>
    %cst_208 = arith.constant 0.000000e+00 : f32
    %472 = vector.broadcast %cst_208 : f32 to vector<2x256xf32>
    %473 = arith.maximumf %471, %472 : vector<2x256xf32>
    %474 = arith.truncf %473 : vector<2x256xf32> to vector<2x256xbf16>
    %c0_209 = arith.constant 0 : index
    %c3328 = arith.constant 3328 : index
    %475 = vector.load %arg7[%c0_209, %c3328] : memref<2x8192xbf16, #tpu.memory_space<vmem>>, vector<2x256xbf16>
    tpu.vector_store %arg7[%c0_209, %c3328], %474 {strides = array<i32>} : memref<2x8192xbf16, #tpu.memory_space<vmem>>, vector<2x256xbf16>,
    %c0_210 = arith.constant 0 : index
    %c0_211 = arith.constant 0 : index
    %c0_212 = arith.constant 0 : index
    %476 = vector.load %arg1[%c0_210, %c0_211, %c0_212] : memref<4x2x256xbf16, #tpu.memory_space<vmem>>, vector<1x2x256xbf16>
    %477 = vector.shape_cast %476 : vector<1x2x256xbf16> to vector<2x256xbf16>
    %478 = arith.extf %477 : vector<2x256xbf16> to vector<2x256xf32>
    %c56 = arith.constant 56 : index
    %479 = memref.load %arg2[%c56] : memref<128xf32, #tpu.memory_space<smem>>
    %480 = vector.broadcast %479 : f32 to vector<2x256xf32>
    %481 = arith.mulf %478, %480 : vector<2x256xf32>
    %c1_213 = arith.constant 1 : index
    %c0_214 = arith.constant 0 : index
    %c0_215 = arith.constant 0 : index
    %482 = vector.load %arg1[%c1_213, %c0_214, %c0_215] : memref<4x2x256xbf16, #tpu.memory_space<vmem>>, vector<1x2x256xbf16>
    %483 = vector.shape_cast %482 : vector<1x2x256xbf16> to vector<2x256xbf16>
    %484 = arith.extf %483 : vector<2x256xbf16> to vector<2x256xf32>
    %c57 = arith.constant 57 : index
    %485 = memref.load %arg2[%c57] : memref<128xf32, #tpu.memory_space<smem>>
    %486 = vector.broadcast %485 : f32 to vector<2x256xf32>
    %487 = arith.mulf %484, %486 : vector<2x256xf32>
    %488 = arith.addf %481, %487 : vector<2x256xf32>
    %c2_216 = arith.constant 2 : index
    %c0_217 = arith.constant 0 : index
    %c0_218 = arith.constant 0 : index
    %489 = vector.load %arg1[%c2_216, %c0_217, %c0_218] : memref<4x2x256xbf16, #tpu.memory_space<vmem>>, vector<1x2x256xbf16>
    %490 = vector.shape_cast %489 : vector<1x2x256xbf16> to vector<2x256xbf16>
    %491 = arith.extf %490 : vector<2x256xbf16> to vector<2x256xf32>
    %c58 = arith.constant 58 : index
    %492 = memref.load %arg2[%c58] : memref<128xf32, #tpu.memory_space<smem>>
    %493 = vector.broadcast %492 : f32 to vector<2x256xf32>
    %494 = arith.mulf %491, %493 : vector<2x256xf32>
    %495 = arith.addf %488, %494 : vector<2x256xf32>
    %c3_219 = arith.constant 3 : index
    %c0_220 = arith.constant 0 : index
    %c0_221 = arith.constant 0 : index
    %496 = vector.load %arg1[%c3_219, %c0_220, %c0_221] : memref<4x2x256xbf16, #tpu.memory_space<vmem>>, vector<1x2x256xbf16>
    %497 = vector.shape_cast %496 : vector<1x2x256xbf16> to vector<2x256xbf16>
    %498 = arith.extf %497 : vector<2x256xbf16> to vector<2x256xf32>
    %c59 = arith.constant 59 : index
    %499 = memref.load %arg2[%c59] : memref<128xf32, #tpu.memory_space<smem>>
    %500 = vector.broadcast %499 : f32 to vector<2x256xf32>
    %501 = arith.mulf %498, %500 : vector<2x256xf32>
    %502 = arith.addf %495, %501 : vector<2x256xf32>
    %c14_222 = arith.constant 14 : index
    %503 = memref.load %arg3[%c14_222] : memref<32xf32, #tpu.memory_space<smem>>
    %504 = vector.broadcast %503 : f32 to vector<2x256xf32>
    %505 = arith.addf %502, %504 : vector<2x256xf32>
    %cst_223 = arith.constant 0.000000e+00 : f32
    %506 = vector.broadcast %cst_223 : f32 to vector<2x256xf32>
    %507 = arith.maximumf %505, %506 : vector<2x256xf32>
    %508 = arith.truncf %507 : vector<2x256xf32> to vector<2x256xbf16>
    %c0_224 = arith.constant 0 : index
    %c3584 = arith.constant 3584 : index
    %509 = vector.load %arg7[%c0_224, %c3584] : memref<2x8192xbf16, #tpu.memory_space<vmem>>, vector<2x256xbf16>
    tpu.vector_store %arg7[%c0_224, %c3584], %508 {strides = array<i32>} : memref<2x8192xbf16, #tpu.memory_space<vmem>>, vector<2x256xbf16>,
    %c0_225 = arith.constant 0 : index
    %c0_226 = arith.constant 0 : index
    %c0_227 = arith.constant 0 : index
    %510 = vector.load %arg1[%c0_225, %c0_226, %c0_227] : memref<4x2x256xbf16, #tpu.memory_space<vmem>>, vector<1x2x256xbf16>
    %511 = vector.shape_cast %510 : vector<1x2x256xbf16> to vector<2x256xbf16>
    %512 = arith.extf %511 : vector<2x256xbf16> to vector<2x256xf32>
    %c60 = arith.constant 60 : index
    %513 = memref.load %arg2[%c60] : memref<128xf32, #tpu.memory_space<smem>>
    %514 = vector.broadcast %513 : f32 to vector<2x256xf32>
    %515 = arith.mulf %512, %514 : vector<2x256xf32>
    %c1_228 = arith.constant 1 : index
    %c0_229 = arith.constant 0 : index
    %c0_230 = arith.constant 0 : index
    %516 = vector.load %arg1[%c1_228, %c0_229, %c0_230] : memref<4x2x256xbf16, #tpu.memory_space<vmem>>, vector<1x2x256xbf16>
    %517 = vector.shape_cast %516 : vector<1x2x256xbf16> to vector<2x256xbf16>
    %518 = arith.extf %517 : vector<2x256xbf16> to vector<2x256xf32>
    %c61 = arith.constant 61 : index
    %519 = memref.load %arg2[%c61] : memref<128xf32, #tpu.memory_space<smem>>
    %520 = vector.broadcast %519 : f32 to vector<2x256xf32>
    %521 = arith.mulf %518, %520 : vector<2x256xf32>
    %522 = arith.addf %515, %521 : vector<2x256xf32>
    %c2_231 = arith.constant 2 : index
    %c0_232 = arith.constant 0 : index
    %c0_233 = arith.constant 0 : index
    %523 = vector.load %arg1[%c2_231, %c0_232, %c0_233] : memref<4x2x256xbf16, #tpu.memory_space<vmem>>, vector<1x2x256xbf16>
    %524 = vector.shape_cast %523 : vector<1x2x256xbf16> to vector<2x256xbf16>
    %525 = arith.extf %524 : vector<2x256xbf16> to vector<2x256xf32>
    %c62 = arith.constant 62 : index
    %526 = memref.load %arg2[%c62] : memref<128xf32, #tpu.memory_space<smem>>
    %527 = vector.broadcast %526 : f32 to vector<2x256xf32>
    %528 = arith.mulf %525, %527 : vector<2x256xf32>
    %529 = arith.addf %522, %528 : vector<2x256xf32>
    %c3_234 = arith.constant 3 : index
    %c0_235 = arith.constant 0 : index
    %c0_236 = arith.constant 0 : index
    %530 = vector.load %arg1[%c3_234, %c0_235, %c0_236] : memref<4x2x256xbf16, #tpu.memory_space<vmem>>, vector<1x2x256xbf16>
    %531 = vector.shape_cast %530 : vector<1x2x256xbf16> to vector<2x256xbf16>
    %532 = arith.extf %531 : vector<2x256xbf16> to vector<2x256xf32>
    %c63 = arith.constant 63 : index
    %533 = memref.load %arg2[%c63] : memref<128xf32, #tpu.memory_space<smem>>
    %534 = vector.broadcast %533 : f32 to vector<2x256xf32>
    %535 = arith.mulf %532, %534 : vector<2x256xf32>
    %536 = arith.addf %529, %535 : vector<2x256xf32>
    %c15_237 = arith.constant 15 : index
    %537 = memref.load %arg3[%c15_237] : memref<32xf32, #tpu.memory_space<smem>>
    %538 = vector.broadcast %537 : f32 to vector<2x256xf32>
    %539 = arith.addf %536, %538 : vector<2x256xf32>
    %cst_238 = arith.constant 0.000000e+00 : f32
    %540 = vector.broadcast %cst_238 : f32 to vector<2x256xf32>
    %541 = arith.maximumf %539, %540 : vector<2x256xf32>
    %542 = arith.truncf %541 : vector<2x256xf32> to vector<2x256xbf16>
    %c0_239 = arith.constant 0 : index
    %c3840 = arith.constant 3840 : index
    %543 = vector.load %arg7[%c0_239, %c3840] : memref<2x8192xbf16, #tpu.memory_space<vmem>>, vector<2x256xbf16>
    tpu.vector_store %arg7[%c0_239, %c3840], %542 {strides = array<i32>} : memref<2x8192xbf16, #tpu.memory_space<vmem>>, vector<2x256xbf16>,
    %c0_240 = arith.constant 0 : index
    %c0_241 = arith.constant 0 : index
    %c0_242 = arith.constant 0 : index
    %544 = vector.load %arg1[%c0_240, %c0_241, %c0_242] : memref<4x2x256xbf16, #tpu.memory_space<vmem>>, vector<1x2x256xbf16>
    %545 = vector.shape_cast %544 : vector<1x2x256xbf16> to vector<2x256xbf16>
    %546 = arith.extf %545 : vector<2x256xbf16> to vector<2x256xf32>
    %c64 = arith.constant 64 : index
    %547 = memref.load %arg2[%c64] : memref<128xf32, #tpu.memory_space<smem>>
    %548 = vector.broadcast %547 : f32 to vector<2x256xf32>
    %549 = arith.mulf %546, %548 : vector<2x256xf32>
    %c1_243 = arith.constant 1 : index
    %c0_244 = arith.constant 0 : index
    %c0_245 = arith.constant 0 : index
    %550 = vector.load %arg1[%c1_243, %c0_244, %c0_245] : memref<4x2x256xbf16, #tpu.memory_space<vmem>>, vector<1x2x256xbf16>
    %551 = vector.shape_cast %550 : vector<1x2x256xbf16> to vector<2x256xbf16>
    %552 = arith.extf %551 : vector<2x256xbf16> to vector<2x256xf32>
    %c65 = arith.constant 65 : index
    %553 = memref.load %arg2[%c65] : memref<128xf32, #tpu.memory_space<smem>>
    %554 = vector.broadcast %553 : f32 to vector<2x256xf32>
    %555 = arith.mulf %552, %554 : vector<2x256xf32>
    %556 = arith.addf %549, %555 : vector<2x256xf32>
    %c2_246 = arith.constant 2 : index
    %c0_247 = arith.constant 0 : index
    %c0_248 = arith.constant 0 : index
    %557 = vector.load %arg1[%c2_246, %c0_247, %c0_248] : memref<4x2x256xbf16, #tpu.memory_space<vmem>>, vector<1x2x256xbf16>
    %558 = vector.shape_cast %557 : vector<1x2x256xbf16> to vector<2x256xbf16>
    %559 = arith.extf %558 : vector<2x256xbf16> to vector<2x256xf32>
    %c66 = arith.constant 66 : index
    %560 = memref.load %arg2[%c66] : memref<128xf32, #tpu.memory_space<smem>>
    %561 = vector.broadcast %560 : f32 to vector<2x256xf32>
    %562 = arith.mulf %559, %561 : vector<2x256xf32>
    %563 = arith.addf %556, %562 : vector<2x256xf32>
    %c3_249 = arith.constant 3 : index
    %c0_250 = arith.constant 0 : index
    %c0_251 = arith.constant 0 : index
    %564 = vector.load %arg1[%c3_249, %c0_250, %c0_251] : memref<4x2x256xbf16, #tpu.memory_space<vmem>>, vector<1x2x256xbf16>
    %565 = vector.shape_cast %564 : vector<1x2x256xbf16> to vector<2x256xbf16>
    %566 = arith.extf %565 : vector<2x256xbf16> to vector<2x256xf32>
    %c67 = arith.constant 67 : index
    %567 = memref.load %arg2[%c67] : memref<128xf32, #tpu.memory_space<smem>>
    %568 = vector.broadcast %567 : f32 to vector<2x256xf32>
    %569 = arith.mulf %566, %568 : vector<2x256xf32>
    %570 = arith.addf %563, %569 : vector<2x256xf32>
    %c16_252 = arith.constant 16 : index
    %571 = memref.load %arg3[%c16_252] : memref<32xf32, #tpu.memory_space<smem>>
    %572 = vector.broadcast %571 : f32 to vector<2x256xf32>
    %573 = arith.addf %570, %572 : vector<2x256xf32>
    %cst_253 = arith.constant 0.000000e+00 : f32
    %574 = vector.broadcast %cst_253 : f32 to vector<2x256xf32>
    %575 = arith.maximumf %573, %574 : vector<2x256xf32>
    %576 = arith.truncf %575 : vector<2x256xf32> to vector<2x256xbf16>
    %c0_254 = arith.constant 0 : index
    %c4096 = arith.constant 4096 : index
    %577 = vector.load %arg7[%c0_254, %c4096] : memref<2x8192xbf16, #tpu.memory_space<vmem>>, vector<2x256xbf16>
    tpu.vector_store %arg7[%c0_254, %c4096], %576 {strides = array<i32>} : memref<2x8192xbf16, #tpu.memory_space<vmem>>, vector<2x256xbf16>,
    %c0_255 = arith.constant 0 : index
    %c0_256 = arith.constant 0 : index
    %c0_257 = arith.constant 0 : index
    %578 = vector.load %arg1[%c0_255, %c0_256, %c0_257] : memref<4x2x256xbf16, #tpu.memory_space<vmem>>, vector<1x2x256xbf16>
    %579 = vector.shape_cast %578 : vector<1x2x256xbf16> to vector<2x256xbf16>
    %580 = arith.extf %579 : vector<2x256xbf16> to vector<2x256xf32>
    %c68 = arith.constant 68 : index
    %581 = memref.load %arg2[%c68] : memref<128xf32, #tpu.memory_space<smem>>
    %582 = vector.broadcast %581 : f32 to vector<2x256xf32>
    %583 = arith.mulf %580, %582 : vector<2x256xf32>
    %c1_258 = arith.constant 1 : index
    %c0_259 = arith.constant 0 : index
    %c0_260 = arith.constant 0 : index
    %584 = vector.load %arg1[%c1_258, %c0_259, %c0_260] : memref<4x2x256xbf16, #tpu.memory_space<vmem>>, vector<1x2x256xbf16>
    %585 = vector.shape_cast %584 : vector<1x2x256xbf16> to vector<2x256xbf16>
    %586 = arith.extf %585 : vector<2x256xbf16> to vector<2x256xf32>
    %c69 = arith.constant 69 : index
    %587 = memref.load %arg2[%c69] : memref<128xf32, #tpu.memory_space<smem>>
    %588 = vector.broadcast %587 : f32 to vector<2x256xf32>
    %589 = arith.mulf %586, %588 : vector<2x256xf32>
    %590 = arith.addf %583, %589 : vector<2x256xf32>
    %c2_261 = arith.constant 2 : index
    %c0_262 = arith.constant 0 : index
    %c0_263 = arith.constant 0 : index
    %591 = vector.load %arg1[%c2_261, %c0_262, %c0_263] : memref<4x2x256xbf16, #tpu.memory_space<vmem>>, vector<1x2x256xbf16>
    %592 = vector.shape_cast %591 : vector<1x2x256xbf16> to vector<2x256xbf16>
    %593 = arith.extf %592 : vector<2x256xbf16> to vector<2x256xf32>
    %c70 = arith.constant 70 : index
    %594 = memref.load %arg2[%c70] : memref<128xf32, #tpu.memory_space<smem>>
    %595 = vector.broadcast %594 : f32 to vector<2x256xf32>
    %596 = arith.mulf %593, %595 : vector<2x256xf32>
    %597 = arith.addf %590, %596 : vector<2x256xf32>
    %c3_264 = arith.constant 3 : index
    %c0_265 = arith.constant 0 : index
    %c0_266 = arith.constant 0 : index
    %598 = vector.load %arg1[%c3_264, %c0_265, %c0_266] : memref<4x2x256xbf16, #tpu.memory_space<vmem>>, vector<1x2x256xbf16>
    %599 = vector.shape_cast %598 : vector<1x2x256xbf16> to vector<2x256xbf16>
    %600 = arith.extf %599 : vector<2x256xbf16> to vector<2x256xf32>
    %c71 = arith.constant 71 : index
    %601 = memref.load %arg2[%c71] : memref<128xf32, #tpu.memory_space<smem>>
    %602 = vector.broadcast %601 : f32 to vector<2x256xf32>
    %603 = arith.mulf %600, %602 : vector<2x256xf32>
    %604 = arith.addf %597, %603 : vector<2x256xf32>
    %c17_267 = arith.constant 17 : index
    %605 = memref.load %arg3[%c17_267] : memref<32xf32, #tpu.memory_space<smem>>
    %606 = vector.broadcast %605 : f32 to vector<2x256xf32>
    %607 = arith.addf %604, %606 : vector<2x256xf32>
    %cst_268 = arith.constant 0.000000e+00 : f32
    %608 = vector.broadcast %cst_268 : f32 to vector<2x256xf32>
    %609 = arith.maximumf %607, %608 : vector<2x256xf32>
    %610 = arith.truncf %609 : vector<2x256xf32> to vector<2x256xbf16>
    %c0_269 = arith.constant 0 : index
    %c4352 = arith.constant 4352 : index
    %611 = vector.load %arg7[%c0_269, %c4352] : memref<2x8192xbf16, #tpu.memory_space<vmem>>, vector<2x256xbf16>
    tpu.vector_store %arg7[%c0_269, %c4352], %610 {strides = array<i32>} : memref<2x8192xbf16, #tpu.memory_space<vmem>>, vector<2x256xbf16>,
    %c0_270 = arith.constant 0 : index
    %c0_271 = arith.constant 0 : index
    %c0_272 = arith.constant 0 : index
    %612 = vector.load %arg1[%c0_270, %c0_271, %c0_272] : memref<4x2x256xbf16, #tpu.memory_space<vmem>>, vector<1x2x256xbf16>
    %613 = vector.shape_cast %612 : vector<1x2x256xbf16> to vector<2x256xbf16>
    %614 = arith.extf %613 : vector<2x256xbf16> to vector<2x256xf32>
    %c72 = arith.constant 72 : index
    %615 = memref.load %arg2[%c72] : memref<128xf32, #tpu.memory_space<smem>>
    %616 = vector.broadcast %615 : f32 to vector<2x256xf32>
    %617 = arith.mulf %614, %616 : vector<2x256xf32>
    %c1_273 = arith.constant 1 : index
    %c0_274 = arith.constant 0 : index
    %c0_275 = arith.constant 0 : index
    %618 = vector.load %arg1[%c1_273, %c0_274, %c0_275] : memref<4x2x256xbf16, #tpu.memory_space<vmem>>, vector<1x2x256xbf16>
    %619 = vector.shape_cast %618 : vector<1x2x256xbf16> to vector<2x256xbf16>
    %620 = arith.extf %619 : vector<2x256xbf16> to vector<2x256xf32>
    %c73 = arith.constant 73 : index
    %621 = memref.load %arg2[%c73] : memref<128xf32, #tpu.memory_space<smem>>
    %622 = vector.broadcast %621 : f32 to vector<2x256xf32>
    %623 = arith.mulf %620, %622 : vector<2x256xf32>
    %624 = arith.addf %617, %623 : vector<2x256xf32>
    %c2_276 = arith.constant 2 : index
    %c0_277 = arith.constant 0 : index
    %c0_278 = arith.constant 0 : index
    %625 = vector.load %arg1[%c2_276, %c0_277, %c0_278] : memref<4x2x256xbf16, #tpu.memory_space<vmem>>, vector<1x2x256xbf16>
    %626 = vector.shape_cast %625 : vector<1x2x256xbf16> to vector<2x256xbf16>
    %627 = arith.extf %626 : vector<2x256xbf16> to vector<2x256xf32>
    %c74 = arith.constant 74 : index
    %628 = memref.load %arg2[%c74] : memref<128xf32, #tpu.memory_space<smem>>
    %629 = vector.broadcast %628 : f32 to vector<2x256xf32>
    %630 = arith.mulf %627, %629 : vector<2x256xf32>
    %631 = arith.addf %624, %630 : vector<2x256xf32>
    %c3_279 = arith.constant 3 : index
    %c0_280 = arith.constant 0 : index
    %c0_281 = arith.constant 0 : index
    %632 = vector.load %arg1[%c3_279, %c0_280, %c0_281] : memref<4x2x256xbf16, #tpu.memory_space<vmem>>, vector<1x2x256xbf16>
    %633 = vector.shape_cast %632 : vector<1x2x256xbf16> to vector<2x256xbf16>
    %634 = arith.extf %633 : vector<2x256xbf16> to vector<2x256xf32>
    %c75 = arith.constant 75 : index
    %635 = memref.load %arg2[%c75] : memref<128xf32, #tpu.memory_space<smem>>
    %636 = vector.broadcast %635 : f32 to vector<2x256xf32>
    %637 = arith.mulf %634, %636 : vector<2x256xf32>
    %638 = arith.addf %631, %637 : vector<2x256xf32>
    %c18_282 = arith.constant 18 : index
    %639 = memref.load %arg3[%c18_282] : memref<32xf32, #tpu.memory_space<smem>>
    %640 = vector.broadcast %639 : f32 to vector<2x256xf32>
    %641 = arith.addf %638, %640 : vector<2x256xf32>
    %cst_283 = arith.constant 0.000000e+00 : f32
    %642 = vector.broadcast %cst_283 : f32 to vector<2x256xf32>
    %643 = arith.maximumf %641, %642 : vector<2x256xf32>
    %644 = arith.truncf %643 : vector<2x256xf32> to vector<2x256xbf16>
    %c0_284 = arith.constant 0 : index
    %c4608 = arith.constant 4608 : index
    %645 = vector.load %arg7[%c0_284, %c4608] : memref<2x8192xbf16, #tpu.memory_space<vmem>>, vector<2x256xbf16>
    tpu.vector_store %arg7[%c0_284, %c4608], %644 {strides = array<i32>} : memref<2x8192xbf16, #tpu.memory_space<vmem>>, vector<2x256xbf16>,
    %c0_285 = arith.constant 0 : index
    %c0_286 = arith.constant 0 : index
    %c0_287 = arith.constant 0 : index
    %646 = vector.load %arg1[%c0_285, %c0_286, %c0_287] : memref<4x2x256xbf16, #tpu.memory_space<vmem>>, vector<1x2x256xbf16>
    %647 = vector.shape_cast %646 : vector<1x2x256xbf16> to vector<2x256xbf16>
    %648 = arith.extf %647 : vector<2x256xbf16> to vector<2x256xf32>
    %c76 = arith.constant 76 : index
    %649 = memref.load %arg2[%c76] : memref<128xf32, #tpu.memory_space<smem>>
    %650 = vector.broadcast %649 : f32 to vector<2x256xf32>
    %651 = arith.mulf %648, %650 : vector<2x256xf32>
    %c1_288 = arith.constant 1 : index
    %c0_289 = arith.constant 0 : index
    %c0_290 = arith.constant 0 : index
    %652 = vector.load %arg1[%c1_288, %c0_289, %c0_290] : memref<4x2x256xbf16, #tpu.memory_space<vmem>>, vector<1x2x256xbf16>
    %653 = vector.shape_cast %652 : vector<1x2x256xbf16> to vector<2x256xbf16>
    %654 = arith.extf %653 : vector<2x256xbf16> to vector<2x256xf32>
    %c77 = arith.constant 77 : index
    %655 = memref.load %arg2[%c77] : memref<128xf32, #tpu.memory_space<smem>>
    %656 = vector.broadcast %655 : f32 to vector<2x256xf32>
    %657 = arith.mulf %654, %656 : vector<2x256xf32>
    %658 = arith.addf %651, %657 : vector<2x256xf32>
    %c2_291 = arith.constant 2 : index
    %c0_292 = arith.constant 0 : index
    %c0_293 = arith.constant 0 : index
    %659 = vector.load %arg1[%c2_291, %c0_292, %c0_293] : memref<4x2x256xbf16, #tpu.memory_space<vmem>>, vector<1x2x256xbf16>
    %660 = vector.shape_cast %659 : vector<1x2x256xbf16> to vector<2x256xbf16>
    %661 = arith.extf %660 : vector<2x256xbf16> to vector<2x256xf32>
    %c78 = arith.constant 78 : index
    %662 = memref.load %arg2[%c78] : memref<128xf32, #tpu.memory_space<smem>>
    %663 = vector.broadcast %662 : f32 to vector<2x256xf32>
    %664 = arith.mulf %661, %663 : vector<2x256xf32>
    %665 = arith.addf %658, %664 : vector<2x256xf32>
    %c3_294 = arith.constant 3 : index
    %c0_295 = arith.constant 0 : index
    %c0_296 = arith.constant 0 : index
    %666 = vector.load %arg1[%c3_294, %c0_295, %c0_296] : memref<4x2x256xbf16, #tpu.memory_space<vmem>>, vector<1x2x256xbf16>
    %667 = vector.shape_cast %666 : vector<1x2x256xbf16> to vector<2x256xbf16>
    %668 = arith.extf %667 : vector<2x256xbf16> to vector<2x256xf32>
    %c79 = arith.constant 79 : index
    %669 = memref.load %arg2[%c79] : memref<128xf32, #tpu.memory_space<smem>>
    %670 = vector.broadcast %669 : f32 to vector<2x256xf32>
    %671 = arith.mulf %668, %670 : vector<2x256xf32>
    %672 = arith.addf %665, %671 : vector<2x256xf32>
    %c19_297 = arith.constant 19 : index
    %673 = memref.load %arg3[%c19_297] : memref<32xf32, #tpu.memory_space<smem>>
    %674 = vector.broadcast %673 : f32 to vector<2x256xf32>
    %675 = arith.addf %672, %674 : vector<2x256xf32>
    %cst_298 = arith.constant 0.000000e+00 : f32
    %676 = vector.broadcast %cst_298 : f32 to vector<2x256xf32>
    %677 = arith.maximumf %675, %676 : vector<2x256xf32>
    %678 = arith.truncf %677 : vector<2x256xf32> to vector<2x256xbf16>
    %c0_299 = arith.constant 0 : index
    %c4864 = arith.constant 4864 : index
    %679 = vector.load %arg7[%c0_299, %c4864] : memref<2x8192xbf16, #tpu.memory_space<vmem>>, vector<2x256xbf16>
    tpu.vector_store %arg7[%c0_299, %c4864], %678 {strides = array<i32>} : memref<2x8192xbf16, #tpu.memory_space<vmem>>, vector<2x256xbf16>,
    %c0_300 = arith.constant 0 : index
    %c0_301 = arith.constant 0 : index
    %c0_302 = arith.constant 0 : index
    %680 = vector.load %arg1[%c0_300, %c0_301, %c0_302] : memref<4x2x256xbf16, #tpu.memory_space<vmem>>, vector<1x2x256xbf16>
    %681 = vector.shape_cast %680 : vector<1x2x256xbf16> to vector<2x256xbf16>
    %682 = arith.extf %681 : vector<2x256xbf16> to vector<2x256xf32>
    %c80 = arith.constant 80 : index
    %683 = memref.load %arg2[%c80] : memref<128xf32, #tpu.memory_space<smem>>
    %684 = vector.broadcast %683 : f32 to vector<2x256xf32>
    %685 = arith.mulf %682, %684 : vector<2x256xf32>
    %c1_303 = arith.constant 1 : index
    %c0_304 = arith.constant 0 : index
    %c0_305 = arith.constant 0 : index
    %686 = vector.load %arg1[%c1_303, %c0_304, %c0_305] : memref<4x2x256xbf16, #tpu.memory_space<vmem>>, vector<1x2x256xbf16>
    %687 = vector.shape_cast %686 : vector<1x2x256xbf16> to vector<2x256xbf16>
    %688 = arith.extf %687 : vector<2x256xbf16> to vector<2x256xf32>
    %c81 = arith.constant 81 : index
    %689 = memref.load %arg2[%c81] : memref<128xf32, #tpu.memory_space<smem>>
    %690 = vector.broadcast %689 : f32 to vector<2x256xf32>
    %691 = arith.mulf %688, %690 : vector<2x256xf32>
    %692 = arith.addf %685, %691 : vector<2x256xf32>
    %c2_306 = arith.constant 2 : index
    %c0_307 = arith.constant 0 : index
    %c0_308 = arith.constant 0 : index
    %693 = vector.load %arg1[%c2_306, %c0_307, %c0_308] : memref<4x2x256xbf16, #tpu.memory_space<vmem>>, vector<1x2x256xbf16>
    %694 = vector.shape_cast %693 : vector<1x2x256xbf16> to vector<2x256xbf16>
    %695 = arith.extf %694 : vector<2x256xbf16> to vector<2x256xf32>
    %c82 = arith.constant 82 : index
    %696 = memref.load %arg2[%c82] : memref<128xf32, #tpu.memory_space<smem>>
    %697 = vector.broadcast %696 : f32 to vector<2x256xf32>
    %698 = arith.mulf %695, %697 : vector<2x256xf32>
    %699 = arith.addf %692, %698 : vector<2x256xf32>
    %c3_309 = arith.constant 3 : index
    %c0_310 = arith.constant 0 : index
    %c0_311 = arith.constant 0 : index
    %700 = vector.load %arg1[%c3_309, %c0_310, %c0_311] : memref<4x2x256xbf16, #tpu.memory_space<vmem>>, vector<1x2x256xbf16>
    %701 = vector.shape_cast %700 : vector<1x2x256xbf16> to vector<2x256xbf16>
    %702 = arith.extf %701 : vector<2x256xbf16> to vector<2x256xf32>
    %c83 = arith.constant 83 : index
    %703 = memref.load %arg2[%c83] : memref<128xf32, #tpu.memory_space<smem>>
    %704 = vector.broadcast %703 : f32 to vector<2x256xf32>
    %705 = arith.mulf %702, %704 : vector<2x256xf32>
    %706 = arith.addf %699, %705 : vector<2x256xf32>
    %c20_312 = arith.constant 20 : index
    %707 = memref.load %arg3[%c20_312] : memref<32xf32, #tpu.memory_space<smem>>
    %708 = vector.broadcast %707 : f32 to vector<2x256xf32>
    %709 = arith.addf %706, %708 : vector<2x256xf32>
    %cst_313 = arith.constant 0.000000e+00 : f32
    %710 = vector.broadcast %cst_313 : f32 to vector<2x256xf32>
    %711 = arith.maximumf %709, %710 : vector<2x256xf32>
    %712 = arith.truncf %711 : vector<2x256xf32> to vector<2x256xbf16>
    %c0_314 = arith.constant 0 : index
    %c5120 = arith.constant 5120 : index
    %713 = vector.load %arg7[%c0_314, %c5120] : memref<2x8192xbf16, #tpu.memory_space<vmem>>, vector<2x256xbf16>
    tpu.vector_store %arg7[%c0_314, %c5120], %712 {strides = array<i32>} : memref<2x8192xbf16, #tpu.memory_space<vmem>>, vector<2x256xbf16>,
    %c0_315 = arith.constant 0 : index
    %c0_316 = arith.constant 0 : index
    %c0_317 = arith.constant 0 : index
    %714 = vector.load %arg1[%c0_315, %c0_316, %c0_317] : memref<4x2x256xbf16, #tpu.memory_space<vmem>>, vector<1x2x256xbf16>
    %715 = vector.shape_cast %714 : vector<1x2x256xbf16> to vector<2x256xbf16>
    %716 = arith.extf %715 : vector<2x256xbf16> to vector<2x256xf32>
    %c84 = arith.constant 84 : index
    %717 = memref.load %arg2[%c84] : memref<128xf32, #tpu.memory_space<smem>>
    %718 = vector.broadcast %717 : f32 to vector<2x256xf32>
    %719 = arith.mulf %716, %718 : vector<2x256xf32>
    %c1_318 = arith.constant 1 : index
    %c0_319 = arith.constant 0 : index
    %c0_320 = arith.constant 0 : index
    %720 = vector.load %arg1[%c1_318, %c0_319, %c0_320] : memref<4x2x256xbf16, #tpu.memory_space<vmem>>, vector<1x2x256xbf16>
    %721 = vector.shape_cast %720 : vector<1x2x256xbf16> to vector<2x256xbf16>
    %722 = arith.extf %721 : vector<2x256xbf16> to vector<2x256xf32>
    %c85 = arith.constant 85 : index
    %723 = memref.load %arg2[%c85] : memref<128xf32, #tpu.memory_space<smem>>
    %724 = vector.broadcast %723 : f32 to vector<2x256xf32>
    %725 = arith.mulf %722, %724 : vector<2x256xf32>
    %726 = arith.addf %719, %725 : vector<2x256xf32>
    %c2_321 = arith.constant 2 : index
    %c0_322 = arith.constant 0 : index
    %c0_323 = arith.constant 0 : index
    %727 = vector.load %arg1[%c2_321, %c0_322, %c0_323] : memref<4x2x256xbf16, #tpu.memory_space<vmem>>, vector<1x2x256xbf16>
    %728 = vector.shape_cast %727 : vector<1x2x256xbf16> to vector<2x256xbf16>
    %729 = arith.extf %728 : vector<2x256xbf16> to vector<2x256xf32>
    %c86 = arith.constant 86 : index
    %730 = memref.load %arg2[%c86] : memref<128xf32, #tpu.memory_space<smem>>
    %731 = vector.broadcast %730 : f32 to vector<2x256xf32>
    %732 = arith.mulf %729, %731 : vector<2x256xf32>
    %733 = arith.addf %726, %732 : vector<2x256xf32>
    %c3_324 = arith.constant 3 : index
    %c0_325 = arith.constant 0 : index
    %c0_326 = arith.constant 0 : index
    %734 = vector.load %arg1[%c3_324, %c0_325, %c0_326] : memref<4x2x256xbf16, #tpu.memory_space<vmem>>, vector<1x2x256xbf16>
    %735 = vector.shape_cast %734 : vector<1x2x256xbf16> to vector<2x256xbf16>
    %736 = arith.extf %735 : vector<2x256xbf16> to vector<2x256xf32>
    %c87 = arith.constant 87 : index
    %737 = memref.load %arg2[%c87] : memref<128xf32, #tpu.memory_space<smem>>
    %738 = vector.broadcast %737 : f32 to vector<2x256xf32>
    %739 = arith.mulf %736, %738 : vector<2x256xf32>
    %740 = arith.addf %733, %739 : vector<2x256xf32>
    %c21_327 = arith.constant 21 : index
    %741 = memref.load %arg3[%c21_327] : memref<32xf32, #tpu.memory_space<smem>>
    %742 = vector.broadcast %741 : f32 to vector<2x256xf32>
    %743 = arith.addf %740, %742 : vector<2x256xf32>
    %cst_328 = arith.constant 0.000000e+00 : f32
    %744 = vector.broadcast %cst_328 : f32 to vector<2x256xf32>
    %745 = arith.maximumf %743, %744 : vector<2x256xf32>
    %746 = arith.truncf %745 : vector<2x256xf32> to vector<2x256xbf16>
    %c0_329 = arith.constant 0 : index
    %c5376 = arith.constant 5376 : index
    %747 = vector.load %arg7[%c0_329, %c5376] : memref<2x8192xbf16, #tpu.memory_space<vmem>>, vector<2x256xbf16>
    tpu.vector_store %arg7[%c0_329, %c5376], %746 {strides = array<i32>} : memref<2x8192xbf16, #tpu.memory_space<vmem>>, vector<2x256xbf16>,
    %c0_330 = arith.constant 0 : index
    %c0_331 = arith.constant 0 : index
    %c0_332 = arith.constant 0 : index
    %748 = vector.load %arg1[%c0_330, %c0_331, %c0_332] : memref<4x2x256xbf16, #tpu.memory_space<vmem>>, vector<1x2x256xbf16>
    %749 = vector.shape_cast %748 : vector<1x2x256xbf16> to vector<2x256xbf16>
    %750 = arith.extf %749 : vector<2x256xbf16> to vector<2x256xf32>
    %c88 = arith.constant 88 : index
    %751 = memref.load %arg2[%c88] : memref<128xf32, #tpu.memory_space<smem>>
    %752 = vector.broadcast %751 : f32 to vector<2x256xf32>
    %753 = arith.mulf %750, %752 : vector<2x256xf32>
    %c1_333 = arith.constant 1 : index
    %c0_334 = arith.constant 0 : index
    %c0_335 = arith.constant 0 : index
    %754 = vector.load %arg1[%c1_333, %c0_334, %c0_335] : memref<4x2x256xbf16, #tpu.memory_space<vmem>>, vector<1x2x256xbf16>
    %755 = vector.shape_cast %754 : vector<1x2x256xbf16> to vector<2x256xbf16>
    %756 = arith.extf %755 : vector<2x256xbf16> to vector<2x256xf32>
    %c89 = arith.constant 89 : index
    %757 = memref.load %arg2[%c89] : memref<128xf32, #tpu.memory_space<smem>>
    %758 = vector.broadcast %757 : f32 to vector<2x256xf32>
    %759 = arith.mulf %756, %758 : vector<2x256xf32>
    %760 = arith.addf %753, %759 : vector<2x256xf32>
    %c2_336 = arith.constant 2 : index
    %c0_337 = arith.constant 0 : index
    %c0_338 = arith.constant 0 : index
    %761 = vector.load %arg1[%c2_336, %c0_337, %c0_338] : memref<4x2x256xbf16, #tpu.memory_space<vmem>>, vector<1x2x256xbf16>
    %762 = vector.shape_cast %761 : vector<1x2x256xbf16> to vector<2x256xbf16>
    %763 = arith.extf %762 : vector<2x256xbf16> to vector<2x256xf32>
    %c90 = arith.constant 90 : index
    %764 = memref.load %arg2[%c90] : memref<128xf32, #tpu.memory_space<smem>>
    %765 = vector.broadcast %764 : f32 to vector<2x256xf32>
    %766 = arith.mulf %763, %765 : vector<2x256xf32>
    %767 = arith.addf %760, %766 : vector<2x256xf32>
    %c3_339 = arith.constant 3 : index
    %c0_340 = arith.constant 0 : index
    %c0_341 = arith.constant 0 : index
    %768 = vector.load %arg1[%c3_339, %c0_340, %c0_341] : memref<4x2x256xbf16, #tpu.memory_space<vmem>>, vector<1x2x256xbf16>
    %769 = vector.shape_cast %768 : vector<1x2x256xbf16> to vector<2x256xbf16>
    %770 = arith.extf %769 : vector<2x256xbf16> to vector<2x256xf32>
    %c91 = arith.constant 91 : index
    %771 = memref.load %arg2[%c91] : memref<128xf32, #tpu.memory_space<smem>>
    %772 = vector.broadcast %771 : f32 to vector<2x256xf32>
    %773 = arith.mulf %770, %772 : vector<2x256xf32>
    %774 = arith.addf %767, %773 : vector<2x256xf32>
    %c22_342 = arith.constant 22 : index
    %775 = memref.load %arg3[%c22_342] : memref<32xf32, #tpu.memory_space<smem>>
    %776 = vector.broadcast %775 : f32 to vector<2x256xf32>
    %777 = arith.addf %774, %776 : vector<2x256xf32>
    %cst_343 = arith.constant 0.000000e+00 : f32
    %778 = vector.broadcast %cst_343 : f32 to vector<2x256xf32>
    %779 = arith.maximumf %777, %778 : vector<2x256xf32>
    %780 = arith.truncf %779 : vector<2x256xf32> to vector<2x256xbf16>
    %c0_344 = arith.constant 0 : index
    %c5632 = arith.constant 5632 : index
    %781 = vector.load %arg7[%c0_344, %c5632] : memref<2x8192xbf16, #tpu.memory_space<vmem>>, vector<2x256xbf16>
    tpu.vector_store %arg7[%c0_344, %c5632], %780 {strides = array<i32>} : memref<2x8192xbf16, #tpu.memory_space<vmem>>, vector<2x256xbf16>,
    %c0_345 = arith.constant 0 : index
    %c0_346 = arith.constant 0 : index
    %c0_347 = arith.constant 0 : index
    %782 = vector.load %arg1[%c0_345, %c0_346, %c0_347] : memref<4x2x256xbf16, #tpu.memory_space<vmem>>, vector<1x2x256xbf16>
    %783 = vector.shape_cast %782 : vector<1x2x256xbf16> to vector<2x256xbf16>
    %784 = arith.extf %783 : vector<2x256xbf16> to vector<2x256xf32>
    %c92 = arith.constant 92 : index
    %785 = memref.load %arg2[%c92] : memref<128xf32, #tpu.memory_space<smem>>
    %786 = vector.broadcast %785 : f32 to vector<2x256xf32>
    %787 = arith.mulf %784, %786 : vector<2x256xf32>
    %c1_348 = arith.constant 1 : index
    %c0_349 = arith.constant 0 : index
    %c0_350 = arith.constant 0 : index
    %788 = vector.load %arg1[%c1_348, %c0_349, %c0_350] : memref<4x2x256xbf16, #tpu.memory_space<vmem>>, vector<1x2x256xbf16>
    %789 = vector.shape_cast %788 : vector<1x2x256xbf16> to vector<2x256xbf16>
    %790 = arith.extf %789 : vector<2x256xbf16> to vector<2x256xf32>
    %c93 = arith.constant 93 : index
    %791 = memref.load %arg2[%c93] : memref<128xf32, #tpu.memory_space<smem>>
    %792 = vector.broadcast %791 : f32 to vector<2x256xf32>
    %793 = arith.mulf %790, %792 : vector<2x256xf32>
    %794 = arith.addf %787, %793 : vector<2x256xf32>
    %c2_351 = arith.constant 2 : index
    %c0_352 = arith.constant 0 : index
    %c0_353 = arith.constant 0 : index
    %795 = vector.load %arg1[%c2_351, %c0_352, %c0_353] : memref<4x2x256xbf16, #tpu.memory_space<vmem>>, vector<1x2x256xbf16>
    %796 = vector.shape_cast %795 : vector<1x2x256xbf16> to vector<2x256xbf16>
    %797 = arith.extf %796 : vector<2x256xbf16> to vector<2x256xf32>
    %c94 = arith.constant 94 : index
    %798 = memref.load %arg2[%c94] : memref<128xf32, #tpu.memory_space<smem>>
    %799 = vector.broadcast %798 : f32 to vector<2x256xf32>
    %800 = arith.mulf %797, %799 : vector<2x256xf32>
    %801 = arith.addf %794, %800 : vector<2x256xf32>
    %c3_354 = arith.constant 3 : index
    %c0_355 = arith.constant 0 : index
    %c0_356 = arith.constant 0 : index
    %802 = vector.load %arg1[%c3_354, %c0_355, %c0_356] : memref<4x2x256xbf16, #tpu.memory_space<vmem>>, vector<1x2x256xbf16>
    %803 = vector.shape_cast %802 : vector<1x2x256xbf16> to vector<2x256xbf16>
    %804 = arith.extf %803 : vector<2x256xbf16> to vector<2x256xf32>
    %c95 = arith.constant 95 : index
    %805 = memref.load %arg2[%c95] : memref<128xf32, #tpu.memory_space<smem>>
    %806 = vector.broadcast %805 : f32 to vector<2x256xf32>
    %807 = arith.mulf %804, %806 : vector<2x256xf32>
    %808 = arith.addf %801, %807 : vector<2x256xf32>
    %c23_357 = arith.constant 23 : index
    %809 = memref.load %arg3[%c23_357] : memref<32xf32, #tpu.memory_space<smem>>
    %810 = vector.broadcast %809 : f32 to vector<2x256xf32>
    %811 = arith.addf %808, %810 : vector<2x256xf32>
    %cst_358 = arith.constant 0.000000e+00 : f32
    %812 = vector.broadcast %cst_358 : f32 to vector<2x256xf32>
    %813 = arith.maximumf %811, %812 : vector<2x256xf32>
    %814 = arith.truncf %813 : vector<2x256xf32> to vector<2x256xbf16>
    %c0_359 = arith.constant 0 : index
    %c5888 = arith.constant 5888 : index
    %815 = vector.load %arg7[%c0_359, %c5888] : memref<2x8192xbf16, #tpu.memory_space<vmem>>, vector<2x256xbf16>
    tpu.vector_store %arg7[%c0_359, %c5888], %814 {strides = array<i32>} : memref<2x8192xbf16, #tpu.memory_space<vmem>>, vector<2x256xbf16>,
    %c0_360 = arith.constant 0 : index
    %c0_361 = arith.constant 0 : index
    %c0_362 = arith.constant 0 : index
    %816 = vector.load %arg1[%c0_360, %c0_361, %c0_362] : memref<4x2x256xbf16, #tpu.memory_space<vmem>>, vector<1x2x256xbf16>
    %817 = vector.shape_cast %816 : vector<1x2x256xbf16> to vector<2x256xbf16>
    %818 = arith.extf %817 : vector<2x256xbf16> to vector<2x256xf32>
    %c96 = arith.constant 96 : index
    %819 = memref.load %arg2[%c96] : memref<128xf32, #tpu.memory_space<smem>>
    %820 = vector.broadcast %819 : f32 to vector<2x256xf32>
    %821 = arith.mulf %818, %820 : vector<2x256xf32>
    %c1_363 = arith.constant 1 : index
    %c0_364 = arith.constant 0 : index
    %c0_365 = arith.constant 0 : index
    %822 = vector.load %arg1[%c1_363, %c0_364, %c0_365] : memref<4x2x256xbf16, #tpu.memory_space<vmem>>, vector<1x2x256xbf16>
    %823 = vector.shape_cast %822 : vector<1x2x256xbf16> to vector<2x256xbf16>
    %824 = arith.extf %823 : vector<2x256xbf16> to vector<2x256xf32>
    %c97 = arith.constant 97 : index
    %825 = memref.load %arg2[%c97] : memref<128xf32, #tpu.memory_space<smem>>
    %826 = vector.broadcast %825 : f32 to vector<2x256xf32>
    %827 = arith.mulf %824, %826 : vector<2x256xf32>
    %828 = arith.addf %821, %827 : vector<2x256xf32>
    %c2_366 = arith.constant 2 : index
    %c0_367 = arith.constant 0 : index
    %c0_368 = arith.constant 0 : index
    %829 = vector.load %arg1[%c2_366, %c0_367, %c0_368] : memref<4x2x256xbf16, #tpu.memory_space<vmem>>, vector<1x2x256xbf16>
    %830 = vector.shape_cast %829 : vector<1x2x256xbf16> to vector<2x256xbf16>
    %831 = arith.extf %830 : vector<2x256xbf16> to vector<2x256xf32>
    %c98 = arith.constant 98 : index
    %832 = memref.load %arg2[%c98] : memref<128xf32, #tpu.memory_space<smem>>
    %833 = vector.broadcast %832 : f32 to vector<2x256xf32>
    %834 = arith.mulf %831, %833 : vector<2x256xf32>
    %835 = arith.addf %828, %834 : vector<2x256xf32>
    %c3_369 = arith.constant 3 : index
    %c0_370 = arith.constant 0 : index
    %c0_371 = arith.constant 0 : index
    %836 = vector.load %arg1[%c3_369, %c0_370, %c0_371] : memref<4x2x256xbf16, #tpu.memory_space<vmem>>, vector<1x2x256xbf16>
    %837 = vector.shape_cast %836 : vector<1x2x256xbf16> to vector<2x256xbf16>
    %838 = arith.extf %837 : vector<2x256xbf16> to vector<2x256xf32>
    %c99 = arith.constant 99 : index
    %839 = memref.load %arg2[%c99] : memref<128xf32, #tpu.memory_space<smem>>
    %840 = vector.broadcast %839 : f32 to vector<2x256xf32>
    %841 = arith.mulf %838, %840 : vector<2x256xf32>
    %842 = arith.addf %835, %841 : vector<2x256xf32>
    %c24_372 = arith.constant 24 : index
    %843 = memref.load %arg3[%c24_372] : memref<32xf32, #tpu.memory_space<smem>>
    %844 = vector.broadcast %843 : f32 to vector<2x256xf32>
    %845 = arith.addf %842, %844 : vector<2x256xf32>
    %cst_373 = arith.constant 0.000000e+00 : f32
    %846 = vector.broadcast %cst_373 : f32 to vector<2x256xf32>
    %847 = arith.maximumf %845, %846 : vector<2x256xf32>
    %848 = arith.truncf %847 : vector<2x256xf32> to vector<2x256xbf16>
    %c0_374 = arith.constant 0 : index
    %c6144 = arith.constant 6144 : index
    %849 = vector.load %arg7[%c0_374, %c6144] : memref<2x8192xbf16, #tpu.memory_space<vmem>>, vector<2x256xbf16>
    tpu.vector_store %arg7[%c0_374, %c6144], %848 {strides = array<i32>} : memref<2x8192xbf16, #tpu.memory_space<vmem>>, vector<2x256xbf16>,
    %c0_375 = arith.constant 0 : index
    %c0_376 = arith.constant 0 : index
    %c0_377 = arith.constant 0 : index
    %850 = vector.load %arg1[%c0_375, %c0_376, %c0_377] : memref<4x2x256xbf16, #tpu.memory_space<vmem>>, vector<1x2x256xbf16>
    %851 = vector.shape_cast %850 : vector<1x2x256xbf16> to vector<2x256xbf16>
    %852 = arith.extf %851 : vector<2x256xbf16> to vector<2x256xf32>
    %c100 = arith.constant 100 : index
    %853 = memref.load %arg2[%c100] : memref<128xf32, #tpu.memory_space<smem>>
    %854 = vector.broadcast %853 : f32 to vector<2x256xf32>
    %855 = arith.mulf %852, %854 : vector<2x256xf32>
    %c1_378 = arith.constant 1 : index
    %c0_379 = arith.constant 0 : index
    %c0_380 = arith.constant 0 : index
    %856 = vector.load %arg1[%c1_378, %c0_379, %c0_380] : memref<4x2x256xbf16, #tpu.memory_space<vmem>>, vector<1x2x256xbf16>
    %857 = vector.shape_cast %856 : vector<1x2x256xbf16> to vector<2x256xbf16>
    %858 = arith.extf %857 : vector<2x256xbf16> to vector<2x256xf32>
    %c101 = arith.constant 101 : index
    %859 = memref.load %arg2[%c101] : memref<128xf32, #tpu.memory_space<smem>>
    %860 = vector.broadcast %859 : f32 to vector<2x256xf32>
    %861 = arith.mulf %858, %860 : vector<2x256xf32>
    %862 = arith.addf %855, %861 : vector<2x256xf32>
    %c2_381 = arith.constant 2 : index
    %c0_382 = arith.constant 0 : index
    %c0_383 = arith.constant 0 : index
    %863 = vector.load %arg1[%c2_381, %c0_382, %c0_383] : memref<4x2x256xbf16, #tpu.memory_space<vmem>>, vector<1x2x256xbf16>
    %864 = vector.shape_cast %863 : vector<1x2x256xbf16> to vector<2x256xbf16>
    %865 = arith.extf %864 : vector<2x256xbf16> to vector<2x256xf32>
    %c102 = arith.constant 102 : index
    %866 = memref.load %arg2[%c102] : memref<128xf32, #tpu.memory_space<smem>>
    %867 = vector.broadcast %866 : f32 to vector<2x256xf32>
    %868 = arith.mulf %865, %867 : vector<2x256xf32>
    %869 = arith.addf %862, %868 : vector<2x256xf32>
    %c3_384 = arith.constant 3 : index
    %c0_385 = arith.constant 0 : index
    %c0_386 = arith.constant 0 : index
    %870 = vector.load %arg1[%c3_384, %c0_385, %c0_386] : memref<4x2x256xbf16, #tpu.memory_space<vmem>>, vector<1x2x256xbf16>
    %871 = vector.shape_cast %870 : vector<1x2x256xbf16> to vector<2x256xbf16>
    %872 = arith.extf %871 : vector<2x256xbf16> to vector<2x256xf32>
    %c103 = arith.constant 103 : index
    %873 = memref.load %arg2[%c103] : memref<128xf32, #tpu.memory_space<smem>>
    %874 = vector.broadcast %873 : f32 to vector<2x256xf32>
    %875 = arith.mulf %872, %874 : vector<2x256xf32>
    %876 = arith.addf %869, %875 : vector<2x256xf32>
    %c25_387 = arith.constant 25 : index
    %877 = memref.load %arg3[%c25_387] : memref<32xf32, #tpu.memory_space<smem>>
    %878 = vector.broadcast %877 : f32 to vector<2x256xf32>
    %879 = arith.addf %876, %878 : vector<2x256xf32>
    %cst_388 = arith.constant 0.000000e+00 : f32
    %880 = vector.broadcast %cst_388 : f32 to vector<2x256xf32>
    %881 = arith.maximumf %879, %880 : vector<2x256xf32>
    %882 = arith.truncf %881 : vector<2x256xf32> to vector<2x256xbf16>
    %c0_389 = arith.constant 0 : index
    %c6400 = arith.constant 6400 : index
    %883 = vector.load %arg7[%c0_389, %c6400] : memref<2x8192xbf16, #tpu.memory_space<vmem>>, vector<2x256xbf16>
    tpu.vector_store %arg7[%c0_389, %c6400], %882 {strides = array<i32>} : memref<2x8192xbf16, #tpu.memory_space<vmem>>, vector<2x256xbf16>,
    %c0_390 = arith.constant 0 : index
    %c0_391 = arith.constant 0 : index
    %c0_392 = arith.constant 0 : index
    %884 = vector.load %arg1[%c0_390, %c0_391, %c0_392] : memref<4x2x256xbf16, #tpu.memory_space<vmem>>, vector<1x2x256xbf16>
    %885 = vector.shape_cast %884 : vector<1x2x256xbf16> to vector<2x256xbf16>
    %886 = arith.extf %885 : vector<2x256xbf16> to vector<2x256xf32>
    %c104 = arith.constant 104 : index
    %887 = memref.load %arg2[%c104] : memref<128xf32, #tpu.memory_space<smem>>
    %888 = vector.broadcast %887 : f32 to vector<2x256xf32>
    %889 = arith.mulf %886, %888 : vector<2x256xf32>
    %c1_393 = arith.constant 1 : index
    %c0_394 = arith.constant 0 : index
    %c0_395 = arith.constant 0 : index
    %890 = vector.load %arg1[%c1_393, %c0_394, %c0_395] : memref<4x2x256xbf16, #tpu.memory_space<vmem>>, vector<1x2x256xbf16>
    %891 = vector.shape_cast %890 : vector<1x2x256xbf16> to vector<2x256xbf16>
    %892 = arith.extf %891 : vector<2x256xbf16> to vector<2x256xf32>
    %c105 = arith.constant 105 : index
    %893 = memref.load %arg2[%c105] : memref<128xf32, #tpu.memory_space<smem>>
    %894 = vector.broadcast %893 : f32 to vector<2x256xf32>
    %895 = arith.mulf %892, %894 : vector<2x256xf32>
    %896 = arith.addf %889, %895 : vector<2x256xf32>
    %c2_396 = arith.constant 2 : index
    %c0_397 = arith.constant 0 : index
    %c0_398 = arith.constant 0 : index
    %897 = vector.load %arg1[%c2_396, %c0_397, %c0_398] : memref<4x2x256xbf16, #tpu.memory_space<vmem>>, vector<1x2x256xbf16>
    %898 = vector.shape_cast %897 : vector<1x2x256xbf16> to vector<2x256xbf16>
    %899 = arith.extf %898 : vector<2x256xbf16> to vector<2x256xf32>
    %c106 = arith.constant 106 : index
    %900 = memref.load %arg2[%c106] : memref<128xf32, #tpu.memory_space<smem>>
    %901 = vector.broadcast %900 : f32 to vector<2x256xf32>
    %902 = arith.mulf %899, %901 : vector<2x256xf32>
    %903 = arith.addf %896, %902 : vector<2x256xf32>
    %c3_399 = arith.constant 3 : index
    %c0_400 = arith.constant 0 : index
    %c0_401 = arith.constant 0 : index
    %904 = vector.load %arg1[%c3_399, %c0_400, %c0_401] : memref<4x2x256xbf16, #tpu.memory_space<vmem>>, vector<1x2x256xbf16>
    %905 = vector.shape_cast %904 : vector<1x2x256xbf16> to vector<2x256xbf16>
    %906 = arith.extf %905 : vector<2x256xbf16> to vector<2x256xf32>
    %c107 = arith.constant 107 : index
    %907 = memref.load %arg2[%c107] : memref<128xf32, #tpu.memory_space<smem>>
    %908 = vector.broadcast %907 : f32 to vector<2x256xf32>
    %909 = arith.mulf %906, %908 : vector<2x256xf32>
    %910 = arith.addf %903, %909 : vector<2x256xf32>
    %c26_402 = arith.constant 26 : index
    %911 = memref.load %arg3[%c26_402] : memref<32xf32, #tpu.memory_space<smem>>
    %912 = vector.broadcast %911 : f32 to vector<2x256xf32>
    %913 = arith.addf %910, %912 : vector<2x256xf32>
    %cst_403 = arith.constant 0.000000e+00 : f32
    %914 = vector.broadcast %cst_403 : f32 to vector<2x256xf32>
    %915 = arith.maximumf %913, %914 : vector<2x256xf32>
    %916 = arith.truncf %915 : vector<2x256xf32> to vector<2x256xbf16>
    %c0_404 = arith.constant 0 : index
    %c6656 = arith.constant 6656 : index
    %917 = vector.load %arg7[%c0_404, %c6656] : memref<2x8192xbf16, #tpu.memory_space<vmem>>, vector<2x256xbf16>
    tpu.vector_store %arg7[%c0_404, %c6656], %916 {strides = array<i32>} : memref<2x8192xbf16, #tpu.memory_space<vmem>>, vector<2x256xbf16>,
    %c0_405 = arith.constant 0 : index
    %c0_406 = arith.constant 0 : index
    %c0_407 = arith.constant 0 : index
    %918 = vector.load %arg1[%c0_405, %c0_406, %c0_407] : memref<4x2x256xbf16, #tpu.memory_space<vmem>>, vector<1x2x256xbf16>
    %919 = vector.shape_cast %918 : vector<1x2x256xbf16> to vector<2x256xbf16>
    %920 = arith.extf %919 : vector<2x256xbf16> to vector<2x256xf32>
    %c108 = arith.constant 108 : index
    %921 = memref.load %arg2[%c108] : memref<128xf32, #tpu.memory_space<smem>>
    %922 = vector.broadcast %921 : f32 to vector<2x256xf32>
    %923 = arith.mulf %920, %922 : vector<2x256xf32>
    %c1_408 = arith.constant 1 : index
    %c0_409 = arith.constant 0 : index
    %c0_410 = arith.constant 0 : index
    %924 = vector.load %arg1[%c1_408, %c0_409, %c0_410] : memref<4x2x256xbf16, #tpu.memory_space<vmem>>, vector<1x2x256xbf16>
    %925 = vector.shape_cast %924 : vector<1x2x256xbf16> to vector<2x256xbf16>
    %926 = arith.extf %925 : vector<2x256xbf16> to vector<2x256xf32>
    %c109 = arith.constant 109 : index
    %927 = memref.load %arg2[%c109] : memref<128xf32, #tpu.memory_space<smem>>
    %928 = vector.broadcast %927 : f32 to vector<2x256xf32>
    %929 = arith.mulf %926, %928 : vector<2x256xf32>
    %930 = arith.addf %923, %929 : vector<2x256xf32>
    %c2_411 = arith.constant 2 : index
    %c0_412 = arith.constant 0 : index
    %c0_413 = arith.constant 0 : index
    %931 = vector.load %arg1[%c2_411, %c0_412, %c0_413] : memref<4x2x256xbf16, #tpu.memory_space<vmem>>, vector<1x2x256xbf16>
    %932 = vector.shape_cast %931 : vector<1x2x256xbf16> to vector<2x256xbf16>
    %933 = arith.extf %932 : vector<2x256xbf16> to vector<2x256xf32>
    %c110 = arith.constant 110 : index
    %934 = memref.load %arg2[%c110] : memref<128xf32, #tpu.memory_space<smem>>
    %935 = vector.broadcast %934 : f32 to vector<2x256xf32>
    %936 = arith.mulf %933, %935 : vector<2x256xf32>
    %937 = arith.addf %930, %936 : vector<2x256xf32>
    %c3_414 = arith.constant 3 : index
    %c0_415 = arith.constant 0 : index
    %c0_416 = arith.constant 0 : index
    %938 = vector.load %arg1[%c3_414, %c0_415, %c0_416] : memref<4x2x256xbf16, #tpu.memory_space<vmem>>, vector<1x2x256xbf16>
    %939 = vector.shape_cast %938 : vector<1x2x256xbf16> to vector<2x256xbf16>
    %940 = arith.extf %939 : vector<2x256xbf16> to vector<2x256xf32>
    %c111 = arith.constant 111 : index
    %941 = memref.load %arg2[%c111] : memref<128xf32, #tpu.memory_space<smem>>
    %942 = vector.broadcast %941 : f32 to vector<2x256xf32>
    %943 = arith.mulf %940, %942 : vector<2x256xf32>
    %944 = arith.addf %937, %943 : vector<2x256xf32>
    %c27_417 = arith.constant 27 : index
    %945 = memref.load %arg3[%c27_417] : memref<32xf32, #tpu.memory_space<smem>>
    %946 = vector.broadcast %945 : f32 to vector<2x256xf32>
    %947 = arith.addf %944, %946 : vector<2x256xf32>
    %cst_418 = arith.constant 0.000000e+00 : f32
    %948 = vector.broadcast %cst_418 : f32 to vector<2x256xf32>
    %949 = arith.maximumf %947, %948 : vector<2x256xf32>
    %950 = arith.truncf %949 : vector<2x256xf32> to vector<2x256xbf16>
    %c0_419 = arith.constant 0 : index
    %c6912 = arith.constant 6912 : index
    %951 = vector.load %arg7[%c0_419, %c6912] : memref<2x8192xbf16, #tpu.memory_space<vmem>>, vector<2x256xbf16>
    tpu.vector_store %arg7[%c0_419, %c6912], %950 {strides = array<i32>} : memref<2x8192xbf16, #tpu.memory_space<vmem>>, vector<2x256xbf16>,
    %c0_420 = arith.constant 0 : index
    %c0_421 = arith.constant 0 : index
    %c0_422 = arith.constant 0 : index
    %952 = vector.load %arg1[%c0_420, %c0_421, %c0_422] : memref<4x2x256xbf16, #tpu.memory_space<vmem>>, vector<1x2x256xbf16>
    %953 = vector.shape_cast %952 : vector<1x2x256xbf16> to vector<2x256xbf16>
    %954 = arith.extf %953 : vector<2x256xbf16> to vector<2x256xf32>
    %c112 = arith.constant 112 : index
    %955 = memref.load %arg2[%c112] : memref<128xf32, #tpu.memory_space<smem>>
    %956 = vector.broadcast %955 : f32 to vector<2x256xf32>
    %957 = arith.mulf %954, %956 : vector<2x256xf32>
    %c1_423 = arith.constant 1 : index
    %c0_424 = arith.constant 0 : index
    %c0_425 = arith.constant 0 : index
    %958 = vector.load %arg1[%c1_423, %c0_424, %c0_425] : memref<4x2x256xbf16, #tpu.memory_space<vmem>>, vector<1x2x256xbf16>
    %959 = vector.shape_cast %958 : vector<1x2x256xbf16> to vector<2x256xbf16>
    %960 = arith.extf %959 : vector<2x256xbf16> to vector<2x256xf32>
    %c113 = arith.constant 113 : index
    %961 = memref.load %arg2[%c113] : memref<128xf32, #tpu.memory_space<smem>>
    %962 = vector.broadcast %961 : f32 to vector<2x256xf32>
    %963 = arith.mulf %960, %962 : vector<2x256xf32>
    %964 = arith.addf %957, %963 : vector<2x256xf32>
    %c2_426 = arith.constant 2 : index
    %c0_427 = arith.constant 0 : index
    %c0_428 = arith.constant 0 : index
    %965 = vector.load %arg1[%c2_426, %c0_427, %c0_428] : memref<4x2x256xbf16, #tpu.memory_space<vmem>>, vector<1x2x256xbf16>
    %966 = vector.shape_cast %965 : vector<1x2x256xbf16> to vector<2x256xbf16>
    %967 = arith.extf %966 : vector<2x256xbf16> to vector<2x256xf32>
    %c114 = arith.constant 114 : index
    %968 = memref.load %arg2[%c114] : memref<128xf32, #tpu.memory_space<smem>>
    %969 = vector.broadcast %968 : f32 to vector<2x256xf32>
    %970 = arith.mulf %967, %969 : vector<2x256xf32>
    %971 = arith.addf %964, %970 : vector<2x256xf32>
    %c3_429 = arith.constant 3 : index
    %c0_430 = arith.constant 0 : index
    %c0_431 = arith.constant 0 : index
    %972 = vector.load %arg1[%c3_429, %c0_430, %c0_431] : memref<4x2x256xbf16, #tpu.memory_space<vmem>>, vector<1x2x256xbf16>
    %973 = vector.shape_cast %972 : vector<1x2x256xbf16> to vector<2x256xbf16>
    %974 = arith.extf %973 : vector<2x256xbf16> to vector<2x256xf32>
    %c115 = arith.constant 115 : index
    %975 = memref.load %arg2[%c115] : memref<128xf32, #tpu.memory_space<smem>>
    %976 = vector.broadcast %975 : f32 to vector<2x256xf32>
    %977 = arith.mulf %974, %976 : vector<2x256xf32>
    %978 = arith.addf %971, %977 : vector<2x256xf32>
    %c28_432 = arith.constant 28 : index
    %979 = memref.load %arg3[%c28_432] : memref<32xf32, #tpu.memory_space<smem>>
    %980 = vector.broadcast %979 : f32 to vector<2x256xf32>
    %981 = arith.addf %978, %980 : vector<2x256xf32>
    %cst_433 = arith.constant 0.000000e+00 : f32
    %982 = vector.broadcast %cst_433 : f32 to vector<2x256xf32>
    %983 = arith.maximumf %981, %982 : vector<2x256xf32>
    %984 = arith.truncf %983 : vector<2x256xf32> to vector<2x256xbf16>
    %c0_434 = arith.constant 0 : index
    %c7168 = arith.constant 7168 : index
    %985 = vector.load %arg7[%c0_434, %c7168] : memref<2x8192xbf16, #tpu.memory_space<vmem>>, vector<2x256xbf16>
    tpu.vector_store %arg7[%c0_434, %c7168], %984 {strides = array<i32>} : memref<2x8192xbf16, #tpu.memory_space<vmem>>, vector<2x256xbf16>,
    %c0_435 = arith.constant 0 : index
    %c0_436 = arith.constant 0 : index
    %c0_437 = arith.constant 0 : index
    %986 = vector.load %arg1[%c0_435, %c0_436, %c0_437] : memref<4x2x256xbf16, #tpu.memory_space<vmem>>, vector<1x2x256xbf16>
    %987 = vector.shape_cast %986 : vector<1x2x256xbf16> to vector<2x256xbf16>
    %988 = arith.extf %987 : vector<2x256xbf16> to vector<2x256xf32>
    %c116 = arith.constant 116 : index
    %989 = memref.load %arg2[%c116] : memref<128xf32, #tpu.memory_space<smem>>
    %990 = vector.broadcast %989 : f32 to vector<2x256xf32>
    %991 = arith.mulf %988, %990 : vector<2x256xf32>
    %c1_438 = arith.constant 1 : index
    %c0_439 = arith.constant 0 : index
    %c0_440 = arith.constant 0 : index
    %992 = vector.load %arg1[%c1_438, %c0_439, %c0_440] : memref<4x2x256xbf16, #tpu.memory_space<vmem>>, vector<1x2x256xbf16>
    %993 = vector.shape_cast %992 : vector<1x2x256xbf16> to vector<2x256xbf16>
    %994 = arith.extf %993 : vector<2x256xbf16> to vector<2x256xf32>
    %c117 = arith.constant 117 : index
    %995 = memref.load %arg2[%c117] : memref<128xf32, #tpu.memory_space<smem>>
    %996 = vector.broadcast %995 : f32 to vector<2x256xf32>
    %997 = arith.mulf %994, %996 : vector<2x256xf32>
    %998 = arith.addf %991, %997 : vector<2x256xf32>
    %c2_441 = arith.constant 2 : index
    %c0_442 = arith.constant 0 : index
    %c0_443 = arith.constant 0 : index
    %999 = vector.load %arg1[%c2_441, %c0_442, %c0_443] : memref<4x2x256xbf16, #tpu.memory_space<vmem>>, vector<1x2x256xbf16>
    %1000 = vector.shape_cast %999 : vector<1x2x256xbf16> to vector<2x256xbf16>
    %1001 = arith.extf %1000 : vector<2x256xbf16> to vector<2x256xf32>
    %c118 = arith.constant 118 : index
    %1002 = memref.load %arg2[%c118] : memref<128xf32, #tpu.memory_space<smem>>
    %1003 = vector.broadcast %1002 : f32 to vector<2x256xf32>
    %1004 = arith.mulf %1001, %1003 : vector<2x256xf32>
    %1005 = arith.addf %998, %1004 : vector<2x256xf32>
    %c3_444 = arith.constant 3 : index
    %c0_445 = arith.constant 0 : index
    %c0_446 = arith.constant 0 : index
    %1006 = vector.load %arg1[%c3_444, %c0_445, %c0_446] : memref<4x2x256xbf16, #tpu.memory_space<vmem>>, vector<1x2x256xbf16>
    %1007 = vector.shape_cast %1006 : vector<1x2x256xbf16> to vector<2x256xbf16>
    %1008 = arith.extf %1007 : vector<2x256xbf16> to vector<2x256xf32>
    %c119 = arith.constant 119 : index
    %1009 = memref.load %arg2[%c119] : memref<128xf32, #tpu.memory_space<smem>>
    %1010 = vector.broadcast %1009 : f32 to vector<2x256xf32>
    %1011 = arith.mulf %1008, %1010 : vector<2x256xf32>
    %1012 = arith.addf %1005, %1011 : vector<2x256xf32>
    %c29_447 = arith.constant 29 : index
    %1013 = memref.load %arg3[%c29_447] : memref<32xf32, #tpu.memory_space<smem>>
    %1014 = vector.broadcast %1013 : f32 to vector<2x256xf32>
    %1015 = arith.addf %1012, %1014 : vector<2x256xf32>
    %cst_448 = arith.constant 0.000000e+00 : f32
    %1016 = vector.broadcast %cst_448 : f32 to vector<2x256xf32>
    %1017 = arith.maximumf %1015, %1016 : vector<2x256xf32>
    %1018 = arith.truncf %1017 : vector<2x256xf32> to vector<2x256xbf16>
    %c0_449 = arith.constant 0 : index
    %c7424 = arith.constant 7424 : index
    %1019 = vector.load %arg7[%c0_449, %c7424] : memref<2x8192xbf16, #tpu.memory_space<vmem>>, vector<2x256xbf16>
    tpu.vector_store %arg7[%c0_449, %c7424], %1018 {strides = array<i32>} : memref<2x8192xbf16, #tpu.memory_space<vmem>>, vector<2x256xbf16>,
    %c0_450 = arith.constant 0 : index
    %c0_451 = arith.constant 0 : index
    %c0_452 = arith.constant 0 : index
    %1020 = vector.load %arg1[%c0_450, %c0_451, %c0_452] : memref<4x2x256xbf16, #tpu.memory_space<vmem>>, vector<1x2x256xbf16>
    %1021 = vector.shape_cast %1020 : vector<1x2x256xbf16> to vector<2x256xbf16>
    %1022 = arith.extf %1021 : vector<2x256xbf16> to vector<2x256xf32>
    %c120 = arith.constant 120 : index
    %1023 = memref.load %arg2[%c120] : memref<128xf32, #tpu.memory_space<smem>>
    %1024 = vector.broadcast %1023 : f32 to vector<2x256xf32>
    %1025 = arith.mulf %1022, %1024 : vector<2x256xf32>
    %c1_453 = arith.constant 1 : index
    %c0_454 = arith.constant 0 : index
    %c0_455 = arith.constant 0 : index
    %1026 = vector.load %arg1[%c1_453, %c0_454, %c0_455] : memref<4x2x256xbf16, #tpu.memory_space<vmem>>, vector<1x2x256xbf16>
    %1027 = vector.shape_cast %1026 : vector<1x2x256xbf16> to vector<2x256xbf16>
    %1028 = arith.extf %1027 : vector<2x256xbf16> to vector<2x256xf32>
    %c121 = arith.constant 121 : index
    %1029 = memref.load %arg2[%c121] : memref<128xf32, #tpu.memory_space<smem>>
    %1030 = vector.broadcast %1029 : f32 to vector<2x256xf32>
    %1031 = arith.mulf %1028, %1030 : vector<2x256xf32>
    %1032 = arith.addf %1025, %1031 : vector<2x256xf32>
    %c2_456 = arith.constant 2 : index
    %c0_457 = arith.constant 0 : index
    %c0_458 = arith.constant 0 : index
    %1033 = vector.load %arg1[%c2_456, %c0_457, %c0_458] : memref<4x2x256xbf16, #tpu.memory_space<vmem>>, vector<1x2x256xbf16>
    %1034 = vector.shape_cast %1033 : vector<1x2x256xbf16> to vector<2x256xbf16>
    %1035 = arith.extf %1034 : vector<2x256xbf16> to vector<2x256xf32>
    %c122 = arith.constant 122 : index
    %1036 = memref.load %arg2[%c122] : memref<128xf32, #tpu.memory_space<smem>>
    %1037 = vector.broadcast %1036 : f32 to vector<2x256xf32>
    %1038 = arith.mulf %1035, %1037 : vector<2x256xf32>
    %1039 = arith.addf %1032, %1038 : vector<2x256xf32>
    %c3_459 = arith.constant 3 : index
    %c0_460 = arith.constant 0 : index
    %c0_461 = arith.constant 0 : index
    %1040 = vector.load %arg1[%c3_459, %c0_460, %c0_461] : memref<4x2x256xbf16, #tpu.memory_space<vmem>>, vector<1x2x256xbf16>
    %1041 = vector.shape_cast %1040 : vector<1x2x256xbf16> to vector<2x256xbf16>
    %1042 = arith.extf %1041 : vector<2x256xbf16> to vector<2x256xf32>
    %c123 = arith.constant 123 : index
    %1043 = memref.load %arg2[%c123] : memref<128xf32, #tpu.memory_space<smem>>
    %1044 = vector.broadcast %1043 : f32 to vector<2x256xf32>
    %1045 = arith.mulf %1042, %1044 : vector<2x256xf32>
    %1046 = arith.addf %1039, %1045 : vector<2x256xf32>
    %c30_462 = arith.constant 30 : index
    %1047 = memref.load %arg3[%c30_462] : memref<32xf32, #tpu.memory_space<smem>>
    %1048 = vector.broadcast %1047 : f32 to vector<2x256xf32>
    %1049 = arith.addf %1046, %1048 : vector<2x256xf32>
    %cst_463 = arith.constant 0.000000e+00 : f32
    %1050 = vector.broadcast %cst_463 : f32 to vector<2x256xf32>
    %1051 = arith.maximumf %1049, %1050 : vector<2x256xf32>
    %1052 = arith.truncf %1051 : vector<2x256xf32> to vector<2x256xbf16>
    %c0_464 = arith.constant 0 : index
    %c7680 = arith.constant 7680 : index
    %1053 = vector.load %arg7[%c0_464, %c7680] : memref<2x8192xbf16, #tpu.memory_space<vmem>>, vector<2x256xbf16>
    tpu.vector_store %arg7[%c0_464, %c7680], %1052 {strides = array<i32>} : memref<2x8192xbf16, #tpu.memory_space<vmem>>, vector<2x256xbf16>,
    %c0_465 = arith.constant 0 : index
    %c0_466 = arith.constant 0 : index
    %c0_467 = arith.constant 0 : index
    %1054 = vector.load %arg1[%c0_465, %c0_466, %c0_467] : memref<4x2x256xbf16, #tpu.memory_space<vmem>>, vector<1x2x256xbf16>
    %1055 = vector.shape_cast %1054 : vector<1x2x256xbf16> to vector<2x256xbf16>
    %1056 = arith.extf %1055 : vector<2x256xbf16> to vector<2x256xf32>
    %c124 = arith.constant 124 : index
    %1057 = memref.load %arg2[%c124] : memref<128xf32, #tpu.memory_space<smem>>
    %1058 = vector.broadcast %1057 : f32 to vector<2x256xf32>
    %1059 = arith.mulf %1056, %1058 : vector<2x256xf32>
    %c1_468 = arith.constant 1 : index
    %c0_469 = arith.constant 0 : index
    %c0_470 = arith.constant 0 : index
    %1060 = vector.load %arg1[%c1_468, %c0_469, %c0_470] : memref<4x2x256xbf16, #tpu.memory_space<vmem>>, vector<1x2x256xbf16>
    %1061 = vector.shape_cast %1060 : vector<1x2x256xbf16> to vector<2x256xbf16>
    %1062 = arith.extf %1061 : vector<2x256xbf16> to vector<2x256xf32>
    %c125 = arith.constant 125 : index
    %1063 = memref.load %arg2[%c125] : memref<128xf32, #tpu.memory_space<smem>>
    %1064 = vector.broadcast %1063 : f32 to vector<2x256xf32>
    %1065 = arith.mulf %1062, %1064 : vector<2x256xf32>
    %1066 = arith.addf %1059, %1065 : vector<2x256xf32>
    %c2_471 = arith.constant 2 : index
    %c0_472 = arith.constant 0 : index
    %c0_473 = arith.constant 0 : index
    %1067 = vector.load %arg1[%c2_471, %c0_472, %c0_473] : memref<4x2x256xbf16, #tpu.memory_space<vmem>>, vector<1x2x256xbf16>
    %1068 = vector.shape_cast %1067 : vector<1x2x256xbf16> to vector<2x256xbf16>
    %1069 = arith.extf %1068 : vector<2x256xbf16> to vector<2x256xf32>
    %c126 = arith.constant 126 : index
    %1070 = memref.load %arg2[%c126] : memref<128xf32, #tpu.memory_space<smem>>
    %1071 = vector.broadcast %1070 : f32 to vector<2x256xf32>
    %1072 = arith.mulf %1069, %1071 : vector<2x256xf32>
    %1073 = arith.addf %1066, %1072 : vector<2x256xf32>
    %c3_474 = arith.constant 3 : index
    %c0_475 = arith.constant 0 : index
    %c0_476 = arith.constant 0 : index
    %1074 = vector.load %arg1[%c3_474, %c0_475, %c0_476] : memref<4x2x256xbf16, #tpu.memory_space<vmem>>, vector<1x2x256xbf16>
    %1075 = vector.shape_cast %1074 : vector<1x2x256xbf16> to vector<2x256xbf16>
    %1076 = arith.extf %1075 : vector<2x256xbf16> to vector<2x256xf32>
    %c127 = arith.constant 127 : index
    %1077 = memref.load %arg2[%c127] : memref<128xf32, #tpu.memory_space<smem>>
    %1078 = vector.broadcast %1077 : f32 to vector<2x256xf32>
    %1079 = arith.mulf %1076, %1078 : vector<2x256xf32>
    %1080 = arith.addf %1073, %1079 : vector<2x256xf32>
    %c31_477 = arith.constant 31 : index
    %1081 = memref.load %arg3[%c31_477] : memref<32xf32, #tpu.memory_space<smem>>
    %1082 = vector.broadcast %1081 : f32 to vector<2x256xf32>
    %1083 = arith.addf %1080, %1082 : vector<2x256xf32>
    %cst_478 = arith.constant 0.000000e+00 : f32
    %1084 = vector.broadcast %cst_478 : f32 to vector<2x256xf32>
    %1085 = arith.maximumf %1083, %1084 : vector<2x256xf32>
    %1086 = arith.truncf %1085 : vector<2x256xf32> to vector<2x256xbf16>
    %c0_479 = arith.constant 0 : index
    %c7936 = arith.constant 7936 : index
    %1087 = vector.load %arg7[%c0_479, %c7936] : memref<2x8192xbf16, #tpu.memory_space<vmem>>, vector<2x256xbf16>
    tpu.vector_store %arg7[%c0_479, %c7936], %1086 {strides = array<i32>} : memref<2x8192xbf16, #tpu.memory_space<vmem>>, vector<2x256xbf16>,
    %c0_480 = arith.constant 0 : index
    %c0_481 = arith.constant 0 : index
    %1088 = vector.load %arg7[%c0_480, %c0_481] : memref<2x8192xbf16, #tpu.memory_space<vmem>>, vector<2x8192xbf16>
    %c0_482 = arith.constant 0 : index
    %c0_483 = arith.constant 0 : index
    %1089 = vector.load %arg4[%c0_482, %c0_483] : memref<8192x128xbf16, #tpu.memory_space<vmem>>, vector<8192x128xbf16>
    %cst_484 = arith.constant dense<0.000000e+00> : vector<2x128xf32>
    %1090 = tpu.matmul %1088, %1089, %cst_484 {dimension_numbers = #tpu.dot_dimension_numbers<[1], [0], [0], [1], [0, 0, 1, 1], [], []>} : vector<2x8192xbf16>, vector<8192x128xbf16>, vector<2x128xf32> -> vector<2x128xf32>
    %c0_485 = arith.constant 0 : index
    %c0_486 = arith.constant 0 : index
    %1091 = vector.load %arg5[%c0_485, %c0_486] : memref<1x128xf32, #tpu.memory_space<vmem>>, vector<1x128xf32>
    %1092 = vector.broadcast %1091 : vector<1x128xf32> to vector<2x128xf32>
    %1093 = arith.addf %1090, %1092 : vector<2x128xf32>
    %cst_487 = arith.constant dense<0xFF800000> : vector<2xf32>
    %1094 = vector.multi_reduction <maximumf>, %1093, %cst_487 [1] : vector<2x128xf32> to vector<2xf32>
    %1095 = vector.shape_cast %1094 : vector<2xf32> to vector<2x1xf32>
    %1096 = vector.broadcast %1095 : vector<2x1xf32> to vector<2x128xf32>
    %1097 = arith.subf %1093, %1096 : vector<2x128xf32>
    %1098 = math.exp %1097 : vector<2x128xf32>
    %cst_488 = arith.constant dense<0.000000e+00> : vector<2xf32>
    %1099 = vector.multi_reduction <add>, %1098, %cst_488 [1] : vector<2x128xf32> to vector<2xf32>
    %1100 = vector.shape_cast %1099 : vector<2xf32> to vector<2x1xf32>
    %1101 = tpu.reciprocal %1100 {approx = true} : vector<2x1xf32> -> vector<2x1xf32>
    %1102 = vector.broadcast %1101 : vector<2x1xf32> to vector<2x128xf32>
    %1103 = arith.mulf %1098, %1102 : vector<2x128xf32>
    %c0_489 = arith.constant 0 : index
    %c0_490 = arith.constant 0 : index
    %1104 = vector.load %arg6[%c0_489, %c0_490] : memref<2x128xf32, #tpu.memory_space<vmem>>, vector<2x128xf32>
    tpu.vector_store %arg6[%c0_489, %c0_490], %1103 {strides = array<i32>} : memref<2x128xf32, #tpu.memory_space<vmem>>, vector<2x128xf32>,
    return
  }
  func.func @transform_0(%arg0: i32) -> (i32, i32, i32) {
    %c0_i32 = arith.constant 0 : i32
    %c0_i32_0 = arith.constant 0 : i32
    %c0_i32_1 = arith.constant 0 : i32
    return %c0_i32, %arg0, %c0_i32_0 : i32, i32, i32
  }
  func.func @transform_1(%arg0: i32) -> i32 {
    %c0_i32 = arith.constant 0 : i32
    %c0_i32_0 = arith.constant 0 : i32
    return %c0_i32 : i32
  }
  func.func @transform_2(%arg0: i32) -> i32 {
    %c0_i32 = arith.constant 0 : i32
    %c0_i32_0 = arith.constant 0 : i32
    return %c0_i32 : i32
  }
  func.func @transform_3(%arg0: i32) -> (i32, i32) {
    %c0_i32 = arith.constant 0 : i32
    %c0_i32_0 = arith.constant 0 : i32
    %c0_i32_1 = arith.constant 0 : i32
    return %c0_i32, %c0_i32_0 : i32, i32
  }
  func.func @transform_4(%arg0: i32) -> (i32, i32) {
    %c0_i32 = arith.constant 0 : i32
    %c0_i32_0 = arith.constant 0 : i32
    %c0_i32_1 = arith.constant 0 : i32
    return %c0_i32, %c0_i32_0 : i32, i32
  }
  func.func @transform_5(%arg0: i32) -> (i32, i32) {
    %c0_i32 = arith.constant 0 : i32
    %c0_i32_0 = arith.constant 0 : i32
    return %arg0, %c0_i32 : i32, i32
  }
}

</mosaic_0001>

<bundles_post_ra>
// kernel: mul.0
= control target key start
LH: loop header
LB: loop body
LE: loop exit
PB: predicated region body
PF: predicated region fallthrough
CT: control target
= control target key end

     0   :  { %s34_s0 = inlined_call_operand.vmem [shape: f32[128], index: 0, kind: input, shape index: {}]   ;;  %s35_s1 = inlined_call_operand.vmem [shape: f32[128], index: 1, kind: input, shape index: {}]   ;;  %s36_s2 = inlined_call_operand.vmem [shape: f32[128], index: 2, kind: output, shape index: {}]  }
   0x1   :  { %v3_v0 = vld [vmem:[%s34_s0] sm:$0x1] }
   0x2   :  { %v4_v1 = vld [vmem:[%s35_s1] sm:$0x1] }
   0x3   :  { %v7_v2 = vmul.f32 %v4_v1, %v3_v0 }
   0x5   :  { %9 = vst [vmem:[%s36_s2] sm:$0x1] %v7_v2 }

// kernel: probability_block_forward.1
= control target key start
LH: loop header
LB: loop body
LE: loop exit
PB: predicated region body
PF: predicated region fallthrough
CT: control target
= control target key end

     0   :  { %10 = vsyncpa [#allocation5], 0  ;;  %s11929_s0 = inlined_call_operand.vmem [shape: bf16[4,2,256], index: 0, kind: input, shape index: {}]   ;;  %s11930_s1 = inlined_call_operand.vmem [shape: f32[128], index: 1, kind: input, shape index: {}]   ;;  %s11931_s2 = inlined_call_operand.vmem [shape: f32[32], index: 2, kind: input, shape index: {}]   ;;  %s11932_s3 = inlined_call_operand.vmem [shape: bf16[8192,128], index: 3, kind: input, shape index: {}]   ;;  %s11933_s4 = inlined_call_operand.vmem [shape: f32[1,128], index: 4, kind: input, shape index: {}]   ;;  %s11934_s5 = inlined_call_operand.hbm [shape: f32[2,128], index: 5, kind: output, shape index: {}]  }
   0x1   :  { %11 = vsyncpa [#allocation7], 0 }
   0x2   :  { %12 = vsyncpa [#allocation4], 0  ;;  %s20_s20 = sshll.u32 %s11930_s1, 4  ;;  %s29_s23 = sshll.u32 %s11931_s2, 4  ;;  %s21_s20 = int_to_ptr.vmem [resolvable:$true] %s20_s20  ;;  %s30_s23 = int_to_ptr.vmem [resolvable:$true] %s29_s23 }
   0x3   :  { %s9353_s24 = smov [#allocation3]   ;;  %s9354_s25 = smov [#allocation6]  }
   0x4   :  { %23 = dma.vmem_to_smem %s21_s20, 16, %s9353_s24, [#allocation5]  }
   0x5   :  { %32 = dma.vmem_to_smem %s30_s23, 16, %s9354_s25, [#allocation7]  }
   0x6   :  { %9347 = dma.done.wait [#allocation5], 16  }
   0x7   :  { %9348 = vsyncadd [#allocation5], 4294967280 }
   0x8   :  { %9349 = dma.done.wait [#allocation7], 16  }
   0x9   :  { %9350 = vsyncadd [#allocation7], 4294967280 }
   0xa   :  { %45 = sfence }
   0xb   :  { %v8786_v0 = vld [vmem:[%s11932_s3 + $0x38] sm:$0xff]  ;;  %v8785_v4 = vld [vmem:[%s11932_s3 + $0x30] sm:$0xff]  ;;  %s9416_s15 = sld [smem:[#allocation3]]  ;;  %v8784_v8 = vld [vmem:[%s11932_s3 + $0x28] sm:$0xff]  ;;  %vm85_vm0 = vcmask 1040384   ;;  %vm6446_vm1 = vcmask 1041408  }
   0xc   :  { %v8794_v1 = vld [vmem:[%s11932_s3 + $0x78] sm:$0xff]  ;;  %5614 = vmatpush.bf16.msra.mxu0 %v8786_v0  ;;  %v8793_v5 = vld [vmem:[%s11932_s3 + $0x70] sm:$0xff]  ;;  %s9418_s16 = sld [smem:[#allocation3 + $0x1]]  ;;  %v8792_v9 = vld [vmem:[%s11932_s3 + $0x68] sm:$0xff] }
   0xd   :  { %v8802_v2 = vld [vmem:[%s11932_s3 + $0xb8] sm:$0xff]  ;;  %5627 = vmatpush.bf16.msra.mxu1 %v8794_v1  ;;  %v8801_v6 = vld [vmem:[%s11932_s3 + $0xb0] sm:$0xff]  ;;  %s9426_s21 = sld [smem:[#allocation3 + $0x2]]  ;;  %v8800_v10 = vld [vmem:[%s11932_s3 + $0xa8] sm:$0xff] }
   0xe   :  { %v8810_v3 = vld [vmem:[%s11932_s3 + $0xf8] sm:$0xff]  ;;  %5640 = vmatpush.bf16.msra.mxu2 %v8802_v2  ;;  %v8809_v7 = vld [vmem:[%s11932_s3 + $0xf0] sm:$0xff]  ;;  %v8808_v11 = vld [vmem:[%s11932_s3 + $0xe8] sm:$0xff]  ;;  %s9434_s26 = sld [smem:[#allocation3 + $0x3]] }
   0xf   :  { %5653 = vmatpush.bf16.msra.mxu3 %v8810_v3  ;;  %s9436_s27 = sld [smem:[#allocation3 + $0x4]]  ;;  %v8783_v12 = vld [vmem:[%s11932_s3 + $0x20] sm:$0xff]  ;;  %v8782_v16 = vld [vmem:[%s11932_s3 + $0x18] sm:$0xff]  ;;  %v8781_v20 = vld [vmem:[%s11932_s3 + $0x10] sm:$0xff] }
  0x10   :  { %5615 = vmatpush.bf16.msra.mxu0 %v8785_v4  ;;  %s9438_s1 = sld [smem:[#allocation3 + $0x5]]  ;;  %v8791_v13 = vld [vmem:[%s11932_s3 + $0x60] sm:$0xff]  ;;  %v8790_v17 = vld [vmem:[%s11932_s3 + $0x58] sm:$0xff]  ;;  %v8789_v21 = vld [vmem:[%s11932_s3 + $0x50] sm:$0xff] }
  0x11   :  { %5628 = vmatpush.bf16.msra.mxu1 %v8793_v5  ;;  %s9446_s6 = sld [smem:[#allocation3 + $0x6]]  ;;  %v8799_v14 = vld [vmem:[%s11932_s3 + $0xa0] sm:$0xff]  ;;  %v8798_v18 = vld [vmem:[%s11932_s3 + $0x98] sm:$0xff]  ;;  %v49_v22 = vstv %s9416_s15  ;;  %v8797_v34 = vld [vmem:[%s11932_s3 + $0x90] sm:$0xff] }
  0x12   :  { %5641 = vmatpush.bf16.msra.mxu2 %v8801_v6  ;;  %v8807_v15 = vld [vmem:[%s11932_s3 + $0xe0] sm:$0xff]  ;;  %s9454_s11 = sld [smem:[#allocation3 + $0x7]]  ;;  %v8806_v19 = vld [vmem:[%s11932_s3 + $0xd8] sm:$0xff]  ;;  %v55_v23 = vstv %s9418_s16  ;;  %v8805_v35 = vld [vmem:[%s11932_s3 + $0xd0] sm:$0xff] }
  0x13   :  { %5654 = vmatpush.bf16.msra.mxu3 %v8809_v7  ;;  %s9456_s12 = sld [smem:[#allocation3 + $0x8]]  ;;  %v62_v24 = vstv %s9426_s21  ;;  %v46_v25 = vld [vmem:[%s11929_s0] sm:$0x3]  ;;  %v6477_v30 = vld [vmem:[%s11929_s0 + $0x2] sm:$0x3]  ;;  %v8780_v40 = vld [vmem:[%s11932_s3 + $0x8] sm:$0xff] }
  0x14   :  { %5616 = vmatpush.bf16.msra.mxu0 %v8784_v8  ;;  %s9458_s13 = sld [smem:[#allocation3 + $0x9]]  ;;  %v69_v26 = vstv %s9434_s26  ;;  %v47_v29 = vunpack.c.l.bf16 %v46_v25  ;;  %v6479_v31 = vld [vmem:[%s11929_s0 + $0x4] sm:$0x3]  ;;  %v6481_v32 = vld [vmem:[%s11929_s0 + $0x6] sm:$0x3]  ;;  %v53_v36 = vunpack.c.l.bf16 %v6477_v30  ;;  %v8788_v41 = vld [vmem:[%s11932_s3 + $0x48] sm:$0xff] }
  0x15   :  { %5629 = vmatpush.bf16.msra.mxu1 %v8792_v9  ;;  %s9472_s25 = sld [smem:[#allocation6]]  ;;  %v94_v27 = vstv %s9436_s27  ;;  %v60_v37 = vunpack.c.l.bf16 %v6479_v31  ;;  %v67_v38 = vunpack.c.l.bf16 %v6481_v32  ;;  %v91_v43 = vld [vmem:[%s11929_s0] sm:$0x3]  ;;  %v6484_v44 = vld [vmem:[%s11929_s0 + $0x2] sm:$0x3]  ;;  %v8796_v59 = vld [vmem:[%s11932_s3 + $0x88] sm:$0xff] }
  0x16   :  { %5642 = vmatpush.bf16.msra.mxu2 %v8800_v10  ;;  %s9483_s7 = sld [smem:[#allocation3 + $0xa]]  ;;  %v99_v28 = vstv %s9438_s1  ;;  %v50_v42 = vmul.f32 %v49_v22, %v47_v29  ;;  %v6486_v45 = vld [vmem:[%s11929_s0 + $0x4] sm:$0x3]  ;;  %v56_v47 = vmul.f32 %v55_v23, %v53_v36  ;;  %v92_v49 = vunpack.c.l.bf16 %v91_v43  ;;  %v6488_v50 = vld [vmem:[%s11929_s0 + $0x6] sm:$0x3]  ;;  %v8804_v60 = vld [vmem:[%s11932_s3 + $0xc8] sm:$0xff] }
  0x17   :  { %5655 = vmatpush.bf16.msra.mxu3 %v8808_v11  ;;  %s9491_s10 = sld [smem:[#allocation3 + $0xc]]  ;;  %v105_v33 = vstv %s9446_s6  ;;  %v63_v48 = vmul.f32 %v62_v24, %v60_v37  ;;  %v132_v51 = vld [vmem:[%s11929_s0] sm:$0x3]  ;;  %v97_v53 = vunpack.c.l.bf16 %v6484_v44  ;;  %v103_v54 = vunpack.c.l.bf16 %v6486_v45  ;;  %v6492_v57 = vld [vmem:[%s11929_s0 + $0x2] sm:$0x3]  ;;  %v8826_v22 = vld [vmem:[%s11932_s3 + $0x178] sm:$0xff] }
  0x18   :  { %5617 = vmatpush.bf16.msra.mxu0 %v8783_v12  ;;  %v111_v39 = vstv %s9454_s11  ;;  %s9510_s20 = sld [smem:[#allocation3 + $0xd]]  ;;  %v109_v55 = vunpack.c.l.bf16 %v6488_v50  ;;  %v133_v56 = vunpack.c.l.bf16 %v132_v51  ;;  %v6494_v58 = vld [vmem:[%s11929_s0 + $0x4] sm:$0x3]  ;;  %v57_v61 = vadd.f32 %v56_v47, %v50_v42  ;;  %v173_v3 = vld [vmem:[%s11929_s0] sm:$0x3]  ;;  %v8817_v36 = vld [vmem:[%s11932_s3 + $0x130] sm:$0xff] }
  0x19   :  { %5630 = vmatpush.bf16.msra.mxu1 %v8791_v13  ;;  %v135_v46 = vstv %s9456_s12  ;;  %s9535_s16 = sld [smem:[#allocation3 + $0xb]]  ;;  %v70_v62 = vmul.f32 %v69_v26, %v67_v38  ;;  %v95_v63 = vmul.f32 %v94_v27, %v92_v49  ;;  %v138_v0 = vunpack.c.l.bf16 %v6492_v57  ;;  %v6500_v4 = vld [vmem:[%s11929_s0 + $0x2] sm:$0x3]  ;;  %v6496_v9 = vld [vmem:[%s11929_s0 + $0x6] sm:$0x3]  ;;  %v8834_v27 = vld [vmem:[%s11932_s3 + $0x1b8] sm:$0xff] }
  0x1a   :  { %5643 = vmatpush.bf16.msra.mxu2 %v8799_v14  ;;  %v140_v52 = vstv %s9458_s13  ;;  %s9537_s12 = sld [smem:[#allocation6 + $0x1]]  ;;  %v100_v1 = vmul.f32 %v99_v28, %v97_v53  ;;  %v106_v2 = vmul.f32 %v105_v33, %v103_v54  ;;  %v64_v5 = vadd.f32 %v63_v48, %v57_v61  ;;  %v8779_v10 = vld [vmem:[%s11932_s3] sm:$0xff]  ;;  %v8842_v28 = vld [vmem:[%s11932_s3 + $0x1f8] sm:$0xff]  ;;  %v8825_v37 = vld [vmem:[%s11932_s3 + $0x170] sm:$0xff] }
  0x1b   :  { %5656 = vmatpush.bf16.msra.mxu3 %v8807_v15  ;;  %v136_v6 = vmul.f32 %v135_v46, %v133_v56  ;;  %v141_v7 = vmul.f32 %v140_v52, %v138_v0  ;;  %v144_v8 = vunpack.c.l.bf16 %v6494_v58  ;;  %s9560_s30 = sld [smem:[#allocation3 + $0xe]]  ;;  %v8787_v11 = vld [vmem:[%s11932_s3 + $0x40] sm:$0xff]  ;;  %v73_v12 = vstv %s9472_s25  ;;  %v8833_v45 = vld [vmem:[%s11932_s3 + $0x1b0] sm:$0xff]  ;;  %v8816_v51 = vld [vmem:[%s11932_s3 + $0x128] sm:$0xff] }
  0x1c   :  { %5618 = vmatpush.bf16.msra.mxu0 %v8782_v16  ;;  %v101_v13 = vadd.f32 %v100_v1, %v95_v63  ;;  %v112_v14 = vmul.f32 %v111_v39, %v109_v55  ;;  %v146_v15 = vstv %s9483_s7  ;;  %v8795_v16 = vld [vmem:[%s11932_s3 + $0x80] sm:$0xff]  ;;  %s9576_s25 = sld [smem:[#allocation3 + $0x10]]  ;;  %v150_v24 = vunpack.c.l.bf16 %v6496_v9  ;;  %v8841_v46 = vld [vmem:[%s11932_s3 + $0x1f0] sm:$0xff]  ;;  %v8824_v55 = vld [vmem:[%s11932_s3 + $0x168] sm:$0xff] }
  0x1d   :  { %5631 = vmatpush.bf16.msra.mxu1 %v8790_v17  ;;  %v8803_v17 = vld [vmem:[%s11932_s3 + $0xc0] sm:$0xff]  ;;  %v176_v25 = vstv %s9491_s10  ;;  %s9586_s1 = sld [smem:[#allocation3 + $0x11]]  ;;  %v142_v30 = vadd.f32 %v141_v7, %v136_v6  ;;  %v147_v31 = vmul.f32 %v146_v15, %v144_v8  ;;  %v8832_v61 = vld [vmem:[%s11932_s3 + $0x1a8] sm:$0xff] }
  0x1e   :  { %5644 = vmatpush.bf16.msra.mxu2 %v8798_v18  ;;  %v71_v18 = vadd.f32 %v70_v62, %v64_v5  ;;  %v107_v23 = vadd.f32 %v106_v2, %v101_v13  ;;  %v181_v26 = vstv %s9510_s20  ;;  %v6502_v33 = vld [vmem:[%s11929_s0 + $0x4] sm:$0x3]  ;;  %s9598_s10 = sld [smem:[#allocation3 + $0xf]]  ;;  %v214_v43 = vld [vmem:[%s11929_s0] sm:$0x3]  ;;  %v8840_v62 = vld [vmem:[%s11932_s3 + $0x1e8] sm:$0xff] }
  0x1f   :  { %5657 = vmatpush.bf16.msra.mxu3 %v8806_v19  ;;  %v174_v19 = vunpack.c.l.bf16 %v173_v3  ;;  %v152_v32 = vstv %s9535_s16  ;;  %s9601_s20 = sld [smem:[#allocation6 + $0x2]]  ;;  %v185_v42 = vunpack.c.l.bf16 %v6502_v33  ;;  %v6508_v44 = vld [vmem:[%s11929_s0 + $0x2] sm:$0x3]  ;;  %v148_v48 = vadd.f32 %v147_v31, %v142_v30  ;;  %v6504_v50 = vld [vmem:[%s11929_s0 + $0x6] sm:$0x3]  ;;  %v8830_v31 = vld [vmem:[%s11932_s3 + $0x198] sm:$0xff] }
  0x20   :  { %5619 = vmatpush.bf16.msra.mxu0 %v8781_v20  ;;  %v179_v20 = vunpack.c.l.bf16 %v6500_v4  ;;  %v74_v29 = vadd.f32 %v73_v12, %v71_v18  ;;  %s9615_s17 = sld [smem:[#allocation3 + $0x12]]  ;;  %v215_v53 = vunpack.c.l.bf16 %v214_v43  ;;  %v220_v54 = vunpack.c.l.bf16 %v6508_v44  ;;  %v8815_v2 = vld [vmem:[%s11932_s3 + $0x120] sm:$0xff] }
  0x21   :  { %5632 = vmatpush.bf16.msra.mxu1 %v8789_v21  ;;  %v8818_v21 = vld [vmem:[%s11932_s3 + $0x138] sm:$0xff]  ;;  %v177_v39 = vmul.f32 %v176_v25, %v174_v19  ;;  %v187_v49 = vstv %s9560_s30  ;;  %s9630_s22 = sld [smem:[#allocation3 + $0x13]]  ;;  %v191_v57 = vunpack.c.l.bf16 %v6504_v50  ;;  %v8823_v3 = vld [vmem:[%s11932_s3 + $0x160] sm:$0xff] }
  0x22   :  { %5645 = vmatpush.bf16.msra.mxu2 %v8797_v34  ;;  %v113_v34 = vadd.f32 %v112_v14, %v107_v23  ;;  %v75_v38 = vmax.f32 %v74_v29, 0.0  ;;  %v188_v56 = vmul.f32 %v187_v49, %v185_v42  ;;  %v217_v58 = vstv %s9576_s25  ;;  %s9640_s28 = sld [smem:[#allocation3 + $0x14]]  ;;  %v8831_v5 = vld [vmem:[%s11932_s3 + $0x1a0] sm:$0xff]  ;;  %v8822_v25 = vld [vmem:[%s11932_s3 + $0x158] sm:$0xff] }
  0x23   :  { %5658 = vmatpush.bf16.msra.mxu3 %v8805_v35  ;;  %v115_v35 = vstv %s9537_s12  ;;  %s9649_s25 = sld [smem:[#allocation3 + $0x15]]  ;;  %v8839_v6 = vld [vmem:[%s11932_s3 + $0x1e0] sm:$0xff]  ;;  %v218_v7 = vmul.f32 %v217_v58, %v215_v53 }
  0x24   :  { %5620 = vmatpush.bf16.msra.mxu0 %v8780_v40  ;;  %v182_v40 = vmul.f32 %v181_v26, %v179_v20  ;;  %77 = vst [vmem:[#allocation1] ss:$4 sm:$0xff] %v75_v38  ;;  %v116_v47 = vadd.f32 %v115_v35, %v113_v34  ;;  %v193_v1 = vstv %s9598_s10  ;;  %s9658_s14 = sld [smem:[#allocation6 + $0x3]]  ;;  %v255_v18 = vld [vmem:[%s11929_s0] sm:$0x3]  ;;  %v8821_v38 = vld [vmem:[%s11932_s3 + $0x150] sm:$0xff] }
  0x25   :  { %5633 = vmatpush.bf16.msra.mxu1 %v8788_v41  ;;  %v153_v41 = vmul.f32 %v152_v32, %v150_v24  ;;  %v156_v4 = vstv %s9601_s20  ;;  %s9669_s7 = sld [smem:[#allocation3 + $0x16]]  ;;  %v194_v14 = vmul.f32 %v193_v1, %v191_v57  ;;  %v6516_v19 = vld [vmem:[%s11929_s0 + $0x2] sm:$0x3]  ;;  %v8814_v24 = vld [vmem:[%s11932_s3 + $0x118] sm:$0xff]  ;;  %v6518_v30 = vld [vmem:[%s11929_s0 + $0x4] sm:$0x3] }
  0x26   :  { %5646 = vmatpush.bf16.msra.mxu2 %v8796_v59  ;;  %v183_v52 = vadd.f32 %v182_v40, %v177_v39  ;;  %v222_v59 = vstv %s9586_s1  ;;  %v117_v63 = vmax.f32 %v116_v47, 0.0  ;;  %v228_v15 = vstv %s9615_s17  ;;  %s9678_s23 = sld [smem:[#allocation6 + $0x4]]  ;;  %v8838_v32 = vld [vmem:[%s11932_s3 + $0x1d8] sm:$0xff]  ;;  %v8829_v40 = vld [vmem:[%s11932_s3 + $0x190] sm:$0xff] }
  0x27   :  { %5659 = vmatpush.bf16.msra.mxu3 %v8804_v60  ;;  %v6510_v60 = vld [vmem:[%s11929_s0 + $0x4] sm:$0x3]  ;;  %v154_v0 = vadd.f32 %v153_v41, %v148_v48  ;;  %v223_v8 = vmul.f32 %v222_v59, %v220_v54  ;;  %s9680_s17 = sld [smem:[#allocation3 + $0x17]]  ;;  %v261_v29 = vunpack.c.l.bf16 %v6516_v19  ;;  %v8837_v41 = vld [vmem:[%s11932_s3 + $0x1d0] sm:$0xff]  ;;  %v267_v44 = vunpack.c.l.bf16 %v6518_v30  ;;  %v296_v53 = vld [vmem:[%s11929_s0] sm:$0x3] }
  0x28   :  { %5621 = vmatpush.bf16.msra.mxu0 %v8779_v10  ;;  %v226_v9 = vunpack.c.l.bf16 %v6510_v60  ;;  %v6512_v10 = vld [vmem:[%s11929_s0 + $0x6] sm:$0x3]  ;;  %v189_v13 = vadd.f32 %v188_v56, %v183_v52  ;;  %s9692_s1 = sld [smem:[#allocation3 + $0x18]]  ;;  %v258_v35 = vstv %s9640_s28  ;;  %v6524_v54 = vld [vmem:[%s11929_s0 + $0x2] sm:$0x3]  ;;  %v8812_v60 = vld [vmem:[%s11932_s3 + $0x108] sm:$0xff] }
  0x29   :  { %5634 = vmatpush.bf16.msra.mxu1 %v8787_v11  ;;  %v232_v23 = vunpack.c.l.bf16 %v6512_v10  ;;  %s9729_s29 = sld [smem:[#allocation3 + $0x1a]]  ;;  %v302_v1 = vunpack.c.l.bf16 %v6524_v54  ;;  %v8819_v10 = vld [vmem:[%s11932_s3 + $0x140] sm:$0xff] }
  0x2a   :  { %5647 = vmatpush.bf16.msra.mxu2 %v8795_v16  ;;  %v195_v26 = vadd.f32 %v194_v14, %v189_v13  ;;  %v197_v39 = vstv %s9658_s14  ;;  %s9756_s26 = sld [smem:[#allocation3 + $0x1d]]  ;;  %v8835_v19 = vld [vmem:[%s11932_s3 + $0x1c0] sm:$0xff] }
  0x2b   :  { %5660 = vmatpush.bf16.msra.mxu3 %v8803_v17  ;;  %v78_v11 = vld.sshfl [vmem:[#allocation1] sm:$0xff pattern:$0x73625140]  ;;  %v79_v12 = vld.sshfl [vmem:[#allocation1 + $0x8] sm:$0xff pattern:$0x73625140]  ;;  %v157_v17 = vadd.f32 %v156_v4, %v154_v0  ;;  %v269_v50 = vstv %s9669_s7  ;;  %v297_v0 = vunpack.c.l.bf16 %v296_v53 }
  0x2c   :  { %5666 = vmatpush.bf16.msrb.mxu0 %v8818_v21  ;;  %v82_v16 = vpack.c.bf16 %v79_v12, %v78_v11  ;;  %119 = vst [vmem:[#allocation1] ss:$4 sm:$0xff] %v117_v63  ;;  %v224_v21 = vadd.f32 %v223_v8, %v218_v7  ;;  %v198_v52 = vadd.f32 %v197_v39, %v195_v26  ;;  %s9731_s7 = sld [smem:[#allocation6 + $0x5]]  ;;  %v6526_v8 = vld [vmem:[%s11929_s0 + $0x4] sm:$0x3] }
  0x2d   :  { %5679 = vmatpush.bf16.msrb.mxu1 %v8826_v22  ;;  %v229_v22 = vmul.f32 %v228_v15, %v226_v9  ;;  %v158_v34 = vmax.f32 %v157_v17, 0.0  ;;  %v270_v58 = vmul.f32 %v269_v50, %v267_v44  ;;  %v275_v63 = vstv %s9680_s17  ;;  %s9751_s17 = sld [smem:[#allocation3 + $0x1c]]  ;;  %v8811_v9 = vld [vmem:[%s11932_s3 + $0x100] sm:$0xff] }
  0x2e   :  { %5692 = vmatpush.bf16.msrb.mxu2 %v8834_v27  ;;  %v84_v20 = vrot.slane %v82_v16, 3  ;;  %v234_v27 = vstv %s9630_s22  ;;  %s9703_s22 = sld [smem:[#allocation3 + $0x19]] }
  0x2f   :  { %5705 = vmatpush.bf16.msrb.mxu3 %v8842_v28  ;;  %v256_v28 = vunpack.c.l.bf16 %v255_v18  ;;  %v230_v42 = vadd.f32 %v229_v22, %v224_v21  ;;  %v235_v43 = vmul.f32 %v234_v27, %v232_v23  ;;  %v8827_v18 = vld [vmem:[%s11932_s3 + $0x180] sm:$0xff]  ;;  %v308_v21 = vunpack.c.l.bf16 %v6526_v8  ;;  %s9780_s16 = sld [smem:[#allocation3 + $0x1e]] }
  0x30   :  { %5667 = vmatpush.bf16.msrb.mxu0 %v8817_v36  ;;  %v88_v33 = vsel %vm85_vm0, %v82_v16, %v84_v20  ;;  %v263_v36 = vstv %s9649_s25  ;;  %v6528_v22 = vld [vmem:[%s11929_s0 + $0x6] sm:$0x3]  ;;  %v310_v23 = vstv %s9729_s29  ;;  %s9783_s12 = sld [smem:[#allocation3 + $0x20]]  ;;  %v345_v39 = vstv %s9756_s26 }
  0x31   :  { %5680 = vmatpush.bf16.msrb.mxu1 %v8825_v37  ;;  %v8813_v37 = vld [vmem:[%s11932_s3 + $0x110] sm:$0xff]  ;;  %90 = vst [vmem:[#allocation2] sm:$0x3] %v88_v33  ;;  %v259_v48 = vmul.f32 %v258_v35, %v256_v28  ;;  %v264_v49 = vmul.f32 %v263_v36, %v261_v29  ;;  %v236_v57 = vadd.f32 %v235_v43, %v230_v42  ;;  %s9786_s29 = sld [smem:[#allocation3 + $0x21]] }
  0x32   :  { %5693 = vmatpush.bf16.msrb.mxu2 %v8833_v45  ;;  %v6520_v45 = vld [vmem:[%s11929_s0 + $0x6] sm:$0x3]  ;;  %v279_v28 = vstv %s9731_s7  ;;  %s9789_s8 = sld [smem:[#allocation6 + $0x6]] }
  0x33   :  { %5706 = vmatpush.bf16.msrb.mxu3 %v8841_v46  ;;  %v120_v46 = vld.sshfl [vmem:[#allocation1] sm:$0xff pattern:$0x73625140]  ;;  %v121_v47 = vld.sshfl [vmem:[#allocation1 + $0x8] sm:$0xff pattern:$0x73625140]  ;;  %v273_v59 = vunpack.c.l.bf16 %v6520_v45 }
  0x34   :  { %5668 = vmatpush.bf16.msrb.mxu0 %v8816_v51  ;;  %v124_v51 = vpack.c.bf16 %v121_v47, %v120_v46  ;;  %160 = vst [vmem:[#allocation1] ss:$4 sm:$0xff] %v158_v34  ;;  %v304_v7 = vstv %s9703_s22  ;;  %v311_v34 = vmul.f32 %v310_v23, %v308_v21  ;;  %s9804_s27 = sld [smem:[#allocation3 + $0x22]]  ;;  %v6550_v21 = vld [vmem:[%s11929_s0 + $0x4] sm:$0x3] }
  0x35   :  { %5681 = vmatpush.bf16.msrb.mxu1 %v8824_v55  ;;  %v238_v55 = vstv %s9678_s23  ;;  %s9740_s23 = sld [smem:[#allocation3 + $0x1b]]  ;;  %v276_v12 = vmul.f32 %v275_v63, %v273_v59  ;;  %v305_v17 = vmul.f32 %v304_v7, %v302_v1 }
  0x36   :  { %5694 = vmatpush.bf16.msrb.mxu2 %v8832_v61  ;;  %v126_v56 = vrot.slane %v124_v51, 3  ;;  %v8820_v61 = vld [vmem:[%s11932_s3 + $0x148] sm:$0xff]  ;;  %v239_v11 = vadd.f32 %v238_v55, %v236_v57  ;;  %s9810_s20 = sld [smem:[#allocation3 + $0x23]] }
  0x37   :  { %5707 = vmatpush.bf16.msrb.mxu3 %v8840_v62  ;;  %v265_v62 = vadd.f32 %v264_v49, %v259_v48  ;;  %v386_v59 = vstv %s9786_s29  ;;  %s9820_s22 = sld [smem:[#allocation3 + $0x25]] }
  0x38   :  { %5669 = vmatpush.bf16.msrb.mxu0 %v8815_v2  ;;  %v8828_v2 = vld [vmem:[%s11932_s3 + $0x188] sm:$0xff]  ;;  %v129_v4 = vsel %vm85_vm0, %v124_v51, %v126_v56  ;;  %v240_v27 = vmax.f32 %v239_v11, 0.0  ;;  %v6536_v51 = vld [vmem:[%s11929_s0 + $0x6] sm:$0x3]  ;;  %v320_v1 = vstv %s9789_s8  ;;  %s9824_s25 = sld [smem:[#allocation6 + $0x7]] }
  0x39   :  { %5682 = vmatpush.bf16.msrb.mxu1 %v8823_v3  ;;  %v8836_v3 = vld [vmem:[%s11932_s3 + $0x1c8] sm:$0xff]  ;;  %131 = vst [vmem:[#allocation2 + $0x2] sm:$0x3] %v129_v4  ;;  %v271_v15 = vadd.f32 %v270_v58, %v265_v62  ;;  %v355_v57 = vunpack.c.l.bf16 %v6536_v51  ;;  %v381_v58 = vstv %s9783_s12  ;;  %s9829_s6 = sld [smem:[#allocation3 + $0x26]] }
  0x3a   :  { %5695 = vmatpush.bf16.msrb.mxu2 %v8831_v5  ;;  %v199_v5 = vmax.f32 %v198_v52, 0.0  ;;  %v351_v52 = vstv %s9780_s16  ;;  %s9842_s16 = sld [smem:[#allocation6 + $0x8]] }
  0x3b   :  { %5708 = vmatpush.bf16.msrb.mxu3 %v8839_v6  ;;  %v299_v6 = vstv %s9692_s1  ;;  %v161_v13 = vld.sshfl [vmem:[#allocation1] sm:$0xff pattern:$0x73625140]  ;;  %v162_v14 = vld.sshfl [vmem:[#allocation1 + $0x8] sm:$0xff pattern:$0x73625140]  ;;  %v277_v29 = vadd.f32 %v276_v12, %v271_v15 }
  0x3c   :  { %5670 = vmatpush.bf16.msrb.mxu0 %v8814_v24  ;;  %v300_v16 = vmul.f32 %v299_v6, %v297_v0  ;;  %v165_v20 = vpack.c.bf16 %v162_v14, %v161_v13  ;;  %201 = vst [vmem:[#allocation1] ss:$4 sm:$0xff] %v199_v5  ;;  %v337_v24 = vld [vmem:[%s11929_s0] sm:$0x3]  ;;  %s9817_s1 = sld [smem:[#allocation3 + $0x24]] }
  0x3d   :  { %5683 = vmatpush.bf16.msrb.mxu1 %v8822_v25  ;;  %v6532_v25 = vld [vmem:[%s11929_s0 + $0x2] sm:$0x3]  ;;  %v338_v35 = vunpack.c.l.bf16 %v337_v24  ;;  %v280_v44 = vadd.f32 %v279_v28, %v277_v29  ;;  %v6544_v6 = vld [vmem:[%s11929_s0 + $0x6] sm:$0x3]  ;;  %v419_v13 = vld [vmem:[%s11929_s0] sm:$0x3]  ;;  %v431_v29 = vunpack.c.l.bf16 %v6550_v21 }
  0x3e   :  { %5696 = vmatpush.bf16.msrb.mxu2 %v8830_v31  ;;  %v167_v26 = vrot.slane %v165_v20, 3  ;;  %v306_v30 = vadd.f32 %v305_v17, %v300_v16  ;;  %v314_v31 = vunpack.c.l.bf16 %v6528_v22  ;;  %v343_v36 = vunpack.c.l.bf16 %v6532_v25  ;;  %v6548_v14 = vld [vmem:[%s11929_s0 + $0x2] sm:$0x3]  ;;  %s9844_s12 = sld [smem:[#allocation3 + $0x27]] }
  0x3f   :  { %5709 = vmatpush.bf16.msrb.mxu3 %v8838_v32  ;;  %v316_v32 = vstv %s9740_s23  ;;  %s9796_s23 = sld [smem:[#allocation3 + $0x1f]]  ;;  %v281_v56 = vmax.f32 %v280_v44, 0.0  ;;  %v396_v17 = vunpack.c.l.bf16 %v6544_v6  ;;  %v427_v25 = vstv %s9820_s22 }
  0x40   :  { %5671 = vmatpush.bf16.msrb.mxu0 %v8813_v37  ;;  %v170_v33 = vsel %vm85_vm0, %v165_v20, %v167_v26  ;;  %v6534_v37 = vld [vmem:[%s11929_s0 + $0x4] sm:$0x3]  ;;  %v317_v45 = vmul.f32 %v316_v32, %v314_v31  ;;  %v312_v48 = vadd.f32 %v311_v34, %v306_v30  ;;  %v346_v50 = vmul.f32 %v345_v39, %v343_v36  ;;  %s9850_s7 = sld [smem:[#allocation3 + $0x28]]  ;;  %v6552_v30 = vld [vmem:[%s11929_s0 + $0x6] sm:$0x3] }
  0x41   :  { %5684 = vmatpush.bf16.msrb.mxu1 %v8821_v38  ;;  %172 = vst [vmem:[#allocation2 + $0x4] sm:$0x3] %v170_v33  ;;  %v340_v38 = vstv %s9751_s17  ;;  %v349_v46 = vunpack.c.l.bf16 %v6534_v37  ;;  %v425_v20 = vunpack.c.l.bf16 %v6548_v14  ;;  %s9854_s9 = sld [smem:[#allocation3 + $0x29]]  ;;  %v361_v26 = vstv %s9824_s25  ;;  %v460_v37 = vld [vmem:[%s11929_s0] sm:$0x3] }
  0x42   :  { %5697 = vmatpush.bf16.msrb.mxu2 %v8829_v40  ;;  %v378_v40 = vld [vmem:[%s11929_s0] sm:$0x3]  ;;  %v341_v49 = vmul.f32 %v340_v38, %v338_v35  ;;  %v318_v62 = vadd.f32 %v317_v45, %v312_v48  ;;  %v422_v24 = vstv %s9817_s1  ;;  %s9860_s21 = sld [smem:[#allocation3 + $0x2a]]  ;;  %v433_v35 = vstv %s9829_s6  ;;  %v6556_v38 = vld [vmem:[%s11929_s0 + $0x2] sm:$0x3] }
  0x43   :  { %5710 = vmatpush.bf16.msrb.mxu3 %v8837_v41  ;;  %v6540_v41 = vld [vmem:[%s11929_s0 + $0x2] sm:$0x3]  ;;  %v203_v43 = vld.sshfl [vmem:[#allocation1 + $0x8] sm:$0xff pattern:$0x73625140]  ;;  %v379_v54 = vunpack.c.l.bf16 %v378_v40  ;;  %v352_v0 = vmul.f32 %v351_v52, %v349_v46  ;;  %v428_v34 = vmul.f32 %v427_v25, %v425_v20  ;;  %v402_v40 = vstv %s9842_s16  ;;  %s9874_s26 = sld [smem:[#allocation6 + $0x9]] }
  0x44   :  { %5672 = vmatpush.bf16.msrb.mxu0 %v8812_v60  ;;  %v202_v42 = vld.sshfl [vmem:[#allocation1] sm:$0xff pattern:$0x73625140]  ;;  %v384_v55 = vunpack.c.l.bf16 %v6540_v41  ;;  %v347_v63 = vadd.f32 %v346_v50, %v341_v49  ;;  %v434_v41 = vmul.f32 %v433_v35, %v431_v29  ;;  %v439_v44 = vstv %s9844_s12  ;;  %s9884_s1 = sld [smem:[#allocation3 + $0x2c]] }
  0x45   :  { %5685 = vmatpush.bf16.msrb.mxu1 %v8820_v61  ;;  %v206_v47 = vpack.c.bf16 %v203_v43, %v202_v42  ;;  %242 = vst [vmem:[#allocation1] ss:$4 sm:$0xff] %v240_v27  ;;  %v6542_v60 = vld [vmem:[%s11929_s0 + $0x4] sm:$0x3]  ;;  %v437_v42 = vunpack.c.l.bf16 %v6552_v30  ;;  %v461_v45 = vunpack.c.l.bf16 %v460_v37  ;;  %v466_v46 = vunpack.c.l.bf16 %v6556_v38  ;;  %s9886_s22 = sld [smem:[#allocation3 + $0x2d]] }
  0x46   :  { %5698 = vmatpush.bf16.msrb.mxu2 %v8828_v2  ;;  %v357_v2 = vstv %s9796_s23  ;;  %v387_v4 = vmul.f32 %v386_v59, %v384_v55  ;;  %v390_v5 = vunpack.c.l.bf16 %v6542_v60  ;;  %v353_v11 = vadd.f32 %v352_v0, %v347_v63  ;;  %v6558_v50 = vld [vmem:[%s11929_s0 + $0x4] sm:$0x3]  ;;  %v6560_v60 = vld [vmem:[%s11929_s0 + $0x6] sm:$0x3]  ;;  %s9896_s14 = sld [smem:[#allocation3 + $0x2e]] }
  0x47   :  { %5711 = vmatpush.bf16.msrb.mxu3 %v8836_v3  ;;  %v208_v53 = vrot.slane %v206_v47, 3  ;;  %v382_v3 = vmul.f32 %v381_v58, %v379_v54  ;;  %v358_v12 = vmul.f32 %v357_v2, %v355_v57  ;;  %v463_v48 = vstv %s9850_s7  ;;  %s9904_s11 = sld [smem:[#allocation3 + $0x30]]  ;;  %v6572_v14 = vld [vmem:[%s11929_s0 + $0x2] sm:$0x3]  ;;  %v6574_v29 = vld [vmem:[%s11929_s0 + $0x4] sm:$0x3] }
  0x48   :  { %5673 = vmatpush.bf16.msrb.mxu0 %v8811_v9  ;;  %v392_v9 = vstv %s9804_s27  ;;  %v468_v49 = vstv %s9854_s9  ;;  %v440_v52 = vmul.f32 %v439_v44, %v437_v42  ;;  %v472_v58 = vunpack.c.l.bf16 %v6558_v50  ;;  %s9906_s16 = sld [smem:[#allocation3 + $0x31]]  ;;  %v583_v44 = vld [vmem:[%s11929_s0] sm:$0x3] }
  0x49   :  { %5686 = vmatpush.bf16.msrb.mxu1 %v8819_v10  ;;  %v211_v61 = vsel %vm85_vm0, %v206_v47, %v208_v53  ;;  %v321_v10 = vadd.f32 %v320_v1, %v318_v62  ;;  %v388_v15 = vadd.f32 %v387_v4, %v382_v3  ;;  %v393_v16 = vmul.f32 %v392_v9, %v390_v5  ;;  %v6564_v62 = vld [vmem:[%s11929_s0 + $0x2] sm:$0x3]  ;;  %s9910_s12 = sld [smem:[#allocation6 + $0xa]] }
  0x4a   :  { %5699 = vmatpush.bf16.msrb.mxu2 %v8827_v18  ;;  %213 = vst [vmem:[#allocation2 + $0x6] sm:$0x3] %v211_v61  ;;  %v398_v18 = vstv %s9810_s20  ;;  %v359_v23 = vadd.f32 %v358_v12, %v353_v11  ;;  %s9877_s20 = sld [smem:[#allocation3 + $0x2b]]  ;;  %v469_v57 = vmul.f32 %v468_v49, %v466_v46  ;;  %v474_v59 = vstv %s9860_s21  ;;  %v501_v61 = vld [vmem:[%s11929_s0] sm:$0x3] }
  0x4b   :  { %5712 = vmatpush.bf16.msrb.mxu3 %v8835_v19  ;;  %v420_v19 = vunpack.c.l.bf16 %v419_v13  ;;  %v322_v22 = vmax.f32 %v321_v10, 0.0  ;;  %v394_v27 = vadd.f32 %v393_v16, %v388_v15  ;;  %v399_v28 = vmul.f32 %v398_v18, %v396_v17  ;;  %v6566_v12 = vld [vmem:[%s11929_s0 + $0x4] sm:$0x3]  ;;  %s9917_s7 = sld [smem:[#allocation3 + $0x2f]]  ;;  %v542_v13 = vld [vmem:[%s11929_s0] sm:$0x3] }
  0x4c   :  { %v9831_v7 = vld.sshfl [vmem:[#allocation1] sm:$0xff pattern:$0x73625140]  ;;  %v9833_v8 = vld.sshfl [vmem:[#allocation1 + $0x8] sm:$0xff pattern:$0x73625140]  ;;  %v362_v36 = vadd.f32 %v361_v26, %v359_v23  ;;  %v475_v2 = vmul.f32 %v474_v59, %v472_v58  ;;  %v478_v3 = vunpack.c.l.bf16 %v6560_v60  ;;  %v443_v4 = vstv %s9874_s26 }
  0x4d   :  { %283 = vst [vmem:[#allocation1] ss:$4 sm:$0xff] %v281_v56  ;;  %v423_v33 = vmul.f32 %v422_v24, %v420_v19  ;;  %v400_v39 = vadd.f32 %v399_v28, %v394_v27  ;;  %v464_v56 = vmul.f32 %v463_v48, %v461_v45  ;;  %v502_v6 = vunpack.c.l.bf16 %v501_v61  ;;  %s9925_s18 = sld [smem:[#allocation3 + $0x32]]  ;;  %v6568_v24 = vld [vmem:[%s11929_s0 + $0x6] sm:$0x3] }
  0x4e   :  { %v363_v47 = vmax.f32 %v362_v36, 0.0  ;;  %v507_v9 = vunpack.c.l.bf16 %v6564_v62  ;;  %v504_v10 = vstv %s9884_s1  ;;  %v509_v11 = vstv %s9886_s22  ;;  %s9935_s17 = sld [smem:[#allocation3 + $0x33]]  ;;  %v6580_v45 = vld [vmem:[%s11929_s0 + $0x2] sm:$0x3] }
  0x4f   :  { %v429_v43 = vadd.f32 %v428_v34, %v423_v33  ;;  %v403_v51 = vadd.f32 %v402_v40, %v400_v39  ;;  %v470_v1 = vadd.f32 %v469_v57, %v464_v56  ;;  %v505_v20 = vmul.f32 %v504_v10, %v502_v6  ;;  %s9942_s13 = sld [smem:[#allocation3 + $0x34]] }
  0x50   :  { %v480_v5 = vstv %s9877_s20  ;;  %v510_v21 = vmul.f32 %v509_v11, %v507_v9  ;;  %v515_v23 = vstv %s9896_s14  ;;  %v543_v25 = vunpack.c.l.bf16 %v542_v13  ;;  %s9944_s28 = sld [smem:[#allocation3 + $0x35]]  ;;  %v6584_v11 = vld [vmem:[%s11929_s0 + $0x6] sm:$0x3] }
  0x51   :  { %v435_v55 = vadd.f32 %v434_v41, %v429_v43  ;;  %v404_v63 = vmax.f32 %v403_v51, 0.0  ;;  %v476_v18 = vadd.f32 %v475_v2, %v470_v1  ;;  %v481_v19 = vmul.f32 %v480_v5, %v478_v3  ;;  %s9947_s1 = sld [smem:[#allocation6 + $0xb]]  ;;  %v6576_v43 = vld [vmem:[%s11929_s0 + $0x6] sm:$0x3] }
  0x52   :  { %v548_v26 = vunpack.c.l.bf16 %v6572_v14  ;;  %v545_v27 = vstv %s9904_s11  ;;  %v550_v28 = vstv %s9906_s16  ;;  %v484_v34 = vstv %s9910_s12  ;;  %s9950_s22 = sld [smem:[#allocation3 + $0x36]] }
  0x53   :  { %v441_v0 = vadd.f32 %v440_v52, %v435_v55  ;;  %v482_v33 = vadd.f32 %v481_v19, %v476_v18  ;;  %v511_v35 = vadd.f32 %v510_v21, %v505_v20  ;;  %v519_v37 = vunpack.c.l.bf16 %v6568_v24  ;;  %s9962_s2 = sld [smem:[#allocation6 + $0xc]]  ;;  %v624_v19 = vld [vmem:[%s11929_s0] sm:$0x3]  ;;  %v6588_v20 = vld [vmem:[%s11929_s0 + $0x2] sm:$0x3] }
  0x54   :  { %v9862_v31 = vld.sshfl [vmem:[#allocation1] sm:$0xff pattern:$0x73625140]  ;;  %v9864_v32 = vld.sshfl [vmem:[#allocation1 + $0x8] sm:$0xff pattern:$0x73625140]  ;;  %v521_v38 = vstv %s9917_s7  ;;  %v546_v39 = vmul.f32 %v545_v27, %v543_v25  ;;  %v551_v40 = vmul.f32 %v550_v28, %v548_v26  ;;  %v554_v41 = vunpack.c.l.bf16 %v6574_v29 }
  0x55   :  { %324 = vst [vmem:[#allocation1] ss:$4 sm:$0xff] %v322_v22  ;;  %v444_v17 = vadd.f32 %v443_v4, %v441_v0  ;;  %v513_v22 = vunpack.c.l.bf16 %v6566_v12  ;;  %v556_v42 = vstv %s9925_s18  ;;  %v485_v49 = vadd.f32 %v484_v34, %v482_v33  ;;  %s9965_s11 = sld [smem:[#allocation3 + $0x37]] }
  0x56   :  { %v522_v51 = vmul.f32 %v521_v38, %v519_v37  ;;  %v552_v52 = vadd.f32 %v551_v40, %v546_v39  ;;  %v557_v55 = vmul.f32 %v556_v42, %v554_v41  ;;  %v560_v56 = vunpack.c.l.bf16 %v6576_v43  ;;  %s9972_s29 = sld [smem:[#allocation3 + $0x38]] }
  0x57   :  { %v445_v30 = vmax.f32 %v444_v17, 0.0  ;;  %v516_v36 = vmul.f32 %v515_v23, %v513_v22  ;;  %v562_v58 = vstv %s9935_s17  ;;  %v584_v59 = vunpack.c.l.bf16 %v583_v44  ;;  %s9975_s8 = sld [smem:[#allocation3 + $0x39]] }
  0x58   :  { %v589_v60 = vunpack.c.l.bf16 %v6580_v45  ;;  %v586_v61 = vstv %s9942_s13  ;;  %v591_v62 = vstv %s9944_s28  ;;  %v486_v1 = vmax.f32 %v485_v49, 0.0  ;;  %s9981_s23 = sld [smem:[#allocation3 + $0x3a]]  ;;  %v6596_v49 = vld [vmem:[%s11929_s0 + $0x2] sm:$0x3] }
  0x59   :  { %v517_v50 = vadd.f32 %v516_v36, %v511_v35  ;;  %v525_v3 = vstv %s9947_s1  ;;  %v558_v4 = vadd.f32 %v557_v55, %v552_v52  ;;  %v563_v5 = vmul.f32 %v562_v58, %v560_v56  ;;  %s9990_s27 = sld [smem:[#allocation6 + $0xd]]  ;;  %v6590_v36 = vld [vmem:[%s11929_s0 + $0x4] sm:$0x3] }
  0x5a   :  { %v587_v6 = vmul.f32 %v586_v61, %v584_v59  ;;  %v592_v9 = vmul.f32 %v591_v62, %v589_v60  ;;  %v597_v14 = vstv %s9950_s22  ;;  %v601_v25 = vunpack.c.l.bf16 %v6584_v11  ;;  %s9994_s17 = sld [smem:[#allocation3 + $0x3b]] }
  0x5b   :  { %v523_v2 = vadd.f32 %v522_v51, %v517_v50  ;;  %v564_v21 = vadd.f32 %v563_v5, %v558_v4  ;;  %v566_v26 = vstv %s9962_s2  ;;  %v603_v27 = vstv %s9965_s11  ;;  %s10002_s13 = sld [smem:[#allocation3 + $0x3c]] }
  0x5c   :  { %v9888_v53 = vld.sshfl [vmem:[#allocation1] sm:$0xff pattern:$0x73625140]  ;;  %v9890_v54 = vld.sshfl [vmem:[#allocation1 + $0x8] sm:$0xff pattern:$0x73625140]  ;;  %v593_v23 = vadd.f32 %v592_v9, %v587_v6  ;;  %v625_v28 = vunpack.c.l.bf16 %v624_v19  ;;  %v630_v29 = vunpack.c.l.bf16 %v6588_v20  ;;  %v627_v34 = vstv %s9972_s29 }
  0x5d   :  { %365 = vst [vmem:[#allocation1] ss:$4 sm:$0xff] %v363_v47  ;;  %v526_v18 = vadd.f32 %v525_v3, %v523_v2  ;;  %v632_v35 = vstv %s9975_s8  ;;  %s10004_s28 = sld [smem:[#allocation3 + $0x3d]]  ;;  %v567_v37 = vadd.f32 %v566_v26, %v564_v21  ;;  %v604_v39 = vmul.f32 %v603_v27, %v601_v25  ;;  %v706_v2 = vld [vmem:[%s11929_s0] sm:$0x3] }
  0x5e   :  { %v628_v42 = vmul.f32 %v627_v34, %v625_v28  ;;  %v633_v43 = vmul.f32 %v632_v35, %v630_v29  ;;  %v636_v44 = vunpack.c.l.bf16 %v6590_v36  ;;  %s10010_s25 = sld [smem:[#allocation3 + $0x3e]]  ;;  %v671_v62 = vunpack.c.l.bf16 %v6596_v49  ;;  %v6604_v3 = vld [vmem:[%s11929_s0 + $0x2] sm:$0x3] }
  0x5f   :  { %v527_v33 = vmax.f32 %v526_v18, 0.0  ;;  %s10018_s24 = sld [smem:[#allocation3 + $0x40]]  ;;  %v568_v51 = vmax.f32 %v567_v37, 0.0  ;;  %v607_v55 = vstv %s9990_s27  ;;  %v6600_v18 = vld [vmem:[%s11929_s0 + $0x6] sm:$0x3]  ;;  %v707_v19 = vunpack.c.l.bf16 %v706_v2 }
  0x60   :  { %s10020_s2 = sld [smem:[#allocation3 + $0x41]]  ;;  %v634_v56 = vadd.f32 %v633_v43, %v628_v42  ;;  %v644_v60 = vstv %s9994_s17  ;;  %v712_v20 = vunpack.c.l.bf16 %v6604_v3 }
  0x61   :  { %s10023_s11 = sld [smem:[#allocation6 + $0xe]] }
  0x62   :  { %s10032_s29 = sld [smem:[#allocation3 + $0x3f]] }
  0x63   :  { %s10040_s15 = sld [smem:[#allocation3 + $0x42]] }
  0x64   :  { %v9927_v15 = vld.sshfl [vmem:[#allocation1] sm:$0xff pattern:$0x73625140]  ;;  %v9929_v16 = vld.sshfl [vmem:[#allocation1 + $0x8] sm:$0xff pattern:$0x73625140] }
  0x65   :  { %406 = vst [vmem:[#allocation1] ss:$4 sm:$0xff] %v404_v63  ;;  %v6582_v63 = vld [vmem:[%s11929_s0 + $0x4] sm:$0x3]  ;;  %s10046_s10 = sld [smem:[#allocation3 + $0x43]] }
  0x66   :  { %v595_v10 = vunpack.c.l.bf16 %v6582_v63  ;;  %v668_v63 = vstv %s10002_s13  ;;  %s10053_s26 = sld [smem:[#allocation3 + $0x44]] }
  0x67   :  { %v648_v27 = vstv %s10023_s11  ;;  %s10056_s20 = sld [smem:[#allocation3 + $0x45]] }
  0x68   :  { %v598_v24 = vmul.f32 %v597_v14, %v595_v10  ;;  %s10059_s13 = sld [smem:[#allocation6 + $0xf]]  ;;  %v685_v34 = vstv %s10032_s29 }
  0x69   :  { %s10074_s30 = sld [smem:[#allocation6 + $0x10]] }
  0x6a   :  { %v599_v38 = vadd.f32 %v598_v24, %v593_v23  ;;  %v714_v23 = vstv %s10020_s2  ;;  %v6606_v24 = vld [vmem:[%s11929_s0 + $0x4] sm:$0x3]  ;;  %s10084_s16 = sld [smem:[#allocation3 + $0x48]] }
  0x6b   :  { %v715_v36 = vmul.f32 %v714_v23, %v712_v20  ;;  %v718_v37 = vunpack.c.l.bf16 %v6606_v24  ;;  %s10087_s12 = sld [smem:[#allocation3 + $0x49]] }
  0x6c   :  { %v407_v46 = vld.sshfl [vmem:[#allocation1] sm:$0xff pattern:$0x73625140]  ;;  %v408_v47 = vld.sshfl [vmem:[#allocation1 + $0x8] sm:$0xff pattern:$0x73625140]  ;;  %v605_v52 = vadd.f32 %v604_v39, %v599_v38  ;;  %v720_v38 = vstv %s10040_s15 }
  0x6d   :  { %v411_v48 = vpack.c.bf16 %v408_v47, %v407_v46  ;;  %447 = vst [vmem:[#allocation1] ss:$4 sm:$0xff] %v445_v30  ;;  %v638_v46 = vstv %s9981_s23  ;;  %v6592_v47 = vld [vmem:[%s11929_s0 + $0x6] sm:$0x3]  ;;  %v721_v49 = vmul.f32 %v720_v38, %v718_v37  ;;  %s10093_s7 = sld [smem:[#allocation3 + $0x4a]] }
  0x6e   :  { %v642_v58 = vunpack.c.l.bf16 %v6592_v47  ;;  %v608_v6 = vadd.f32 %v607_v55, %v605_v52  ;;  %v6608_v39 = vld [vmem:[%s11929_s0 + $0x6] sm:$0x3]  ;;  %v726_v52 = vstv %s10046_s10  ;;  %s10102_s18 = sld [smem:[#allocation6 + $0x11]] }
  0x6f   :  { %v413_v57 = vrot.slane %v411_v48, 3  ;;  %s10106_s10 = sld [smem:[#allocation3 + $0x4b]] }
  0x70   :  { %v645_v10 = vmul.f32 %v644_v60, %v642_v58  ;;  %v609_v25 = vmax.f32 %v608_v6, 0.0  ;;  %v755_v58 = vstv %s10056_s20  ;;  %s10116_s20 = sld [smem:[#allocation3 + $0x4d]] }
  0x71   :  { %v416_v0 = vsel %vm85_vm0, %v411_v48, %v413_v57  ;;  %v665_v48 = vld [vmem:[%s11929_s0] sm:$0x3]  ;;  %v639_v57 = vmul.f32 %v638_v46, %v636_v44  ;;  %s10122_s1 = sld [smem:[#allocation3 + $0x4e]] }
  0x72   :  { %418 = vst [vmem:[#allocation2 + $0x10] sm:$0x3] %v416_v0  ;;  %v666_v61 = vunpack.c.l.bf16 %v665_v48  ;;  %v673_v0 = vstv %s10004_s28  ;;  %s10062_s28 = sld [smem:[#allocation3 + $0x46]] }
  0x73   :  { %v640_v9 = vadd.f32 %v639_v57, %v634_v56  ;;  %v750_v57 = vstv %s10053_s26  ;;  %s10114_s26 = sld [smem:[#allocation3 + $0x4c]] }
  0x74   :  { %v448_v12 = vld.sshfl [vmem:[#allocation1] sm:$0xff pattern:$0x73625140]  ;;  %v449_v13 = vld.sshfl [vmem:[#allocation1 + $0x8] sm:$0xff pattern:$0x73625140] }
  0x75   :  { %v452_v17 = vpack.c.bf16 %v449_v13, %v448_v12  ;;  %488 = vst [vmem:[#allocation1] ss:$4 sm:$0xff] %v486_v1  ;;  %v6598_v1 = vld [vmem:[%s11929_s0 + $0x4] sm:$0x3]  ;;  %v669_v12 = vmul.f32 %v668_v63, %v666_v61  ;;  %v674_v13 = vmul.f32 %v673_v0, %v671_v62  ;;  %v646_v26 = vadd.f32 %v645_v10, %v640_v9  ;;  %s10130_s6 = sld [smem:[#allocation3 + $0x50]] }
  0x76   :  { %v677_v14 = vunpack.c.l.bf16 %v6598_v1  ;;  %v689_v63 = vstv %s10059_s13  ;;  %s10152_s9 = sld [smem:[#allocation3 + $0x52]] }
  0x77   :  { %v454_v22 = vrot.slane %v452_v17, 3  ;;  %v675_v29 = vadd.f32 %v674_v13, %v669_v12  ;;  %v788_v13 = vld [vmem:[%s11929_s0] sm:$0x3]  ;;  %s10158_s21 = sld [smem:[#allocation3 + $0x53]] }
  0x78   :  { %v761_v10 = vstv %s10062_s28  ;;  %v789_v24 = vunpack.c.l.bf16 %v788_v13  ;;  %s10165_s27 = sld [smem:[#allocation3 + $0x54]] }
  0x79   :  { %v457_v30 = vsel %vm85_vm0, %v452_v17, %v454_v22  ;;  %v679_v17 = vstv %s10010_s25  ;;  %v709_v22 = vstv %s10018_s24  ;;  %s10077_s24 = sld [smem:[#allocation3 + $0x47]] }
  0x7a   :  { %459 = vst [vmem:[#allocation2 + $0x12] sm:$0x3] %v457_v30  ;;  %v680_v30 = vmul.f32 %v679_v17, %v677_v14  ;;  %v710_v35 = vmul.f32 %v709_v22, %v707_v19  ;;  %v6620_v14 = vld [vmem:[%s11929_s0 + $0x2] sm:$0x3]  ;;  %v730_v22 = vstv %s10074_s30  ;;  %s10132_s30 = sld [smem:[#allocation3 + $0x51]] }
  0x7b   :  { %s10168_s17 = sld [smem:[#allocation3 + $0x55]] }
  0x7c   :  { %v489_v40 = vld.sshfl [vmem:[#allocation1] sm:$0xff pattern:$0x73625140]  ;;  %v490_v41 = vld.sshfl [vmem:[#allocation1 + $0x8] sm:$0xff pattern:$0x73625140]  ;;  %v681_v46 = vadd.f32 %v680_v30, %v675_v29  ;;  %v716_v48 = vadd.f32 %v715_v36, %v710_v35  ;;  %v796_v29 = vstv %s10087_s12 }
  0x7d   :  { %v493_v45 = vpack.c.bf16 %v490_v41, %v489_v40  ;;  %529 = vst [vmem:[#allocation1] ss:$4 sm:$0xff] %v527_v33  ;;  %v683_v33 = vunpack.c.l.bf16 %v6600_v18  ;;  %v747_v40 = vld [vmem:[%s11929_s0] sm:$0x3]  ;;  %v6612_v41 = vld [vmem:[%s11929_s0 + $0x2] sm:$0x3] }
  0x7e   :  { %v748_v55 = vunpack.c.l.bf16 %v747_v40  ;;  %v753_v56 = vunpack.c.l.bf16 %v6612_v41  ;;  %v722_v0 = vadd.f32 %v721_v49, %v716_v48  ;;  %v6622_v30 = vld [vmem:[%s11929_s0 + $0x4] sm:$0x3]  ;;  %v771_v49 = vstv %s10102_s18  ;;  %s10186_s14 = sld [smem:[#allocation6 + $0x14]] }
  0x7f   :  { %v495_v50 = vrot.slane %v493_v45, 3  ;;  %v686_v47 = vmul.f32 %v685_v34, %v683_v33  ;;  %v767_v23 = vstv %s10077_s24  ;;  %v800_v40 = vunpack.c.l.bf16 %v6622_v30  ;;  %s10135_s24 = sld [smem:[#allocation6 + $0x12]] }
  0x80   :  { %v751_v2 = vmul.f32 %v750_v57, %v748_v55  ;;  %v756_v3 = vmul.f32 %v755_v58, %v753_v56  ;;  %v808_v56 = vstv %s10106_s10  ;;  %s10196_s2 = sld [smem:[#allocation3 + $0x58]] }
  0x81   :  { %v498_v59 = vsel %vm85_vm0, %v493_v45, %v495_v50  ;;  %v649_v45 = vadd.f32 %v648_v27, %v646_v26  ;;  %v724_v50 = vunpack.c.l.bf16 %v6608_v39  ;;  %v687_v62 = vadd.f32 %v686_v47, %v681_v46  ;;  %s10199_s11 = sld [smem:[#allocation3 + $0x59]] }
  0x82   :  { %500 = vst [vmem:[#allocation2 + $0x14] sm:$0x3] %v498_v59  ;;  %v6614_v59 = vld [vmem:[%s11929_s0 + $0x4] sm:$0x3]  ;;  %v757_v19 = vadd.f32 %v756_v3, %v751_v2  ;;  %s10205_s29 = sld [smem:[#allocation3 + $0x5a]] }
  0x83   :  { %v650_v61 = vmax.f32 %v649_v45, 0.0  ;;  %v727_v1 = vmul.f32 %v726_v52, %v724_v50  ;;  %v690_v12 = vadd.f32 %v689_v63, %v687_v62  ;;  %v6628_v45 = vld [vmem:[%s11929_s0 + $0x2] sm:$0x3]  ;;  %v870_v62 = vld [vmem:[%s11929_s0] sm:$0x3]  ;;  %s10214_s15 = sld [smem:[#allocation6 + $0x15]] }
  0x84   :  { %v530_v4 = vld.sshfl [vmem:[#allocation1] sm:$0xff pattern:$0x73625140]  ;;  %v531_v5 = vld.sshfl [vmem:[#allocation1 + $0x8] sm:$0xff pattern:$0x73625140]  ;;  %v835_v58 = vunpack.c.l.bf16 %v6628_v45  ;;  %v871_v13 = vunpack.c.l.bf16 %v870_v62 }
  0x85   :  { %v534_v11 = vpack.c.bf16 %v531_v5, %v530_v4  ;;  %570 = vst [vmem:[#allocation1] ss:$4 sm:$0xff] %v568_v51  ;;  %v759_v4 = vunpack.c.l.bf16 %v6614_v59  ;;  %v6616_v5 = vld [vmem:[%s11929_s0 + $0x6] sm:$0x3]  ;;  %v728_v17 = vadd.f32 %v727_v1, %v722_v0  ;;  %v691_v27 = vmax.f32 %v690_v12, 0.0  ;;  %s10234_s13 = sld [smem:[#allocation3 + $0x5e]] }
  0x86   :  { %v832_v59 = vstv %s10114_s26  ;;  %v6636_v63 = vld [vmem:[%s11929_s0 + $0x2] sm:$0x3]  ;;  %v6632_v12 = vld [vmem:[%s11929_s0 + $0x6] sm:$0x3]  ;;  %s10171_s26 = sld [smem:[#allocation6 + $0x13]] }
  0x87   :  { %v536_v21 = vrot.slane %v534_v11, 3  ;;  %v762_v20 = vmul.f32 %v761_v10, %v759_v4  ;;  %v731_v33 = vadd.f32 %v730_v22, %v728_v17  ;;  %s10242_s19 = sld [smem:[#allocation3 + $0x60]] }
  0x88   :  { %s10264_s8 = sld [smem:[#allocation3 + $0x62]] }
  0x89   :  { %v539_v28 = vsel %vm85_vm0, %v534_v11, %v536_v21  ;;  %v765_v21 = vunpack.c.l.bf16 %v6616_v5  ;;  %v763_v34 = vadd.f32 %v762_v20, %v757_v19  ;;  %v732_v47 = vmax.f32 %v731_v33, 0.0  ;;  %v6638_v20 = vld [vmem:[%s11929_s0 + $0x4] sm:$0x3]  ;;  %s10270_s23 = sld [smem:[#allocation3 + $0x63]] }
  0x8a   :  { %541 = vst [vmem:[#allocation2 + $0x16] sm:$0x3] %v539_v28  ;;  %v791_v28 = vstv %s10084_s16  ;;  %s10144_s16 = sld [smem:[#allocation3 + $0x4f]]  ;;  %v878_v19 = vstv %s10132_s30  ;;  %v882_v33 = vunpack.c.l.bf16 %v6638_v20 }
  0x8b   :  { %v768_v35 = vmul.f32 %v767_v23, %v765_v21  ;;  %v792_v38 = vmul.f32 %v791_v28, %v789_v24  ;;  %v812_v23 = vstv %s10135_s24  ;;  %s10277_s18 = sld [smem:[#allocation3 + $0x64]] }
  0x8c   :  { %v571_v42 = vld.sshfl [vmem:[#allocation1] sm:$0xff pattern:$0x73625140]  ;;  %v572_v43 = vld.sshfl [vmem:[#allocation1 + $0x8] sm:$0xff pattern:$0x73625140] }
  0x8d   :  { %v575_v44 = vpack.c.bf16 %v572_v43, %v571_v42  ;;  %611 = vst [vmem:[#allocation1] ss:$4 sm:$0xff] %v609_v25  ;;  %v794_v25 = vunpack.c.l.bf16 %v6620_v14  ;;  %v802_v42 = vstv %s10093_s7  ;;  %v6624_v43 = vld [vmem:[%s11929_s0 + $0x6] sm:$0x3]  ;;  %v769_v48 = vadd.f32 %v768_v35, %v763_v34  ;;  %s10280_s10 = sld [smem:[#allocation3 + $0x65]] }
  0x8e   :  { %v806_v52 = vunpack.c.l.bf16 %v6624_v43  ;;  %v876_v14 = vunpack.c.l.bf16 %v6636_v63  ;;  %v884_v34 = vstv %s10152_s9  ;;  %v6640_v35 = vld [vmem:[%s11929_s0 + $0x6] sm:$0x3]  ;;  %s10298_s25 = sld [smem:[#allocation6 + $0x18]] }
  0x8f   :  { %v577_v51 = vrot.slane %v575_v44, 3  ;;  %v797_v39 = vmul.f32 %v796_v29, %v794_v25  ;;  %v772_v2 = vadd.f32 %v771_v49, %v769_v48  ;;  %v885_v45 = vmul.f32 %v884_v34, %v882_v33  ;;  %s10308_s30 = sld [smem:[#allocation3 + $0x68]] }
  0x90   :  { %v809_v4 = vmul.f32 %v808_v56, %v806_v52  ;;  %v849_v28 = vstv %s10144_s16  ;;  %v879_v30 = vmul.f32 %v878_v19, %v876_v14  ;;  %v890_v48 = vstv %s10158_s21  ;;  %s10218_s21 = sld [smem:[#allocation3 + $0x5b]] }
  0x91   :  { %v580_v60 = vsel %vm85_vm0, %v575_v44, %v577_v51  ;;  %v829_v44 = vld [vmem:[%s11929_s0] sm:$0x3]  ;;  %v798_v50 = vadd.f32 %v797_v39, %v792_v38  ;;  %v803_v51 = vmul.f32 %v802_v42, %v800_v40  ;;  %v773_v21 = vmax.f32 %v772_v2, 0.0  ;;  %s10311_s24 = sld [smem:[#allocation3 + $0x69]] }
  0x92   :  { %582 = vst [vmem:[#allocation2 + $0x18] sm:$0x3] %v580_v60  ;;  %v830_v57 = vunpack.c.l.bf16 %v829_v44  ;;  %v837_v60 = vstv %s10116_s20  ;;  %s10174_s20 = sld [smem:[#allocation3 + $0x56]]  ;;  %v919_v52 = vstv %s10168_s17 }
  0x93   :  { %v804_v3 = vadd.f32 %v803_v51, %v798_v50  ;;  %v914_v51 = vstv %s10165_s27  ;;  %s10226_s27 = sld [smem:[#allocation3 + $0x5c]] }
  0x94   :  { %v612_v6 = vld.sshfl [vmem:[#allocation1] sm:$0xff pattern:$0x73625140]  ;;  %v613_v9 = vld.sshfl [vmem:[#allocation1 + $0x8] sm:$0xff pattern:$0x73625140] }
  0x95   :  { %v616_v11 = vpack.c.bf16 %v613_v9, %v612_v6  ;;  %652 = vst [vmem:[#allocation1] ss:$4 sm:$0xff] %v650_v61  ;;  %v6630_v61 = vld [vmem:[%s11929_s0 + $0x4] sm:$0x3]  ;;  %v833_v6 = vmul.f32 %v832_v59, %v830_v57  ;;  %v838_v9 = vmul.f32 %v837_v60, %v835_v58  ;;  %v810_v22 = vadd.f32 %v809_v4, %v804_v3  ;;  %s10228_s17 = sld [smem:[#allocation3 + $0x5d]] }
  0x96   :  { %v841_v10 = vunpack.c.l.bf16 %v6630_v61  ;;  %v853_v59 = vstv %s10171_s26  ;;  %s10317_s16 = sld [smem:[#allocation3 + $0x6a]] }
  0x97   :  { %v618_v18 = vrot.slane %v616_v11, 3  ;;  %v839_v25 = vadd.f32 %v838_v9, %v833_v6  ;;  %v952_v9 = vld [vmem:[%s11929_s0] sm:$0x3]  ;;  %s10326_s9 = sld [smem:[#allocation6 + $0x19]] }
  0x98   :  { %v925_v4 = vstv %s10174_s20  ;;  %v953_v20 = vunpack.c.l.bf16 %v952_v9  ;;  %s10346_s26 = sld [smem:[#allocation3 + $0x6e]] }
  0x99   :  { %v621_v26 = vsel %vm85_vm0, %v616_v11, %v618_v18  ;;  %v843_v11 = vstv %s10122_s1  ;;  %v873_v18 = vstv %s10130_s6  ;;  %s10189_s6 = sld [smem:[#allocation3 + $0x57]] }
  0x9a   :  { %623 = vst [vmem:[#allocation2 + $0x1a] sm:$0x3] %v621_v26  ;;  %v844_v26 = vmul.f32 %v843_v11, %v841_v10  ;;  %v874_v29 = vmul.f32 %v873_v18, %v871_v13  ;;  %v6652_v10 = vld [vmem:[%s11929_s0 + $0x2] sm:$0x3]  ;;  %v894_v18 = vstv %s10186_s14  ;;  %s10244_s14 = sld [smem:[#allocation3 + $0x61]] }
  0x9b   :  { %s10354_s22 = sld [smem:[#allocation3 + $0x70]] }
  0x9c   :  { %v653_v36 = vld.sshfl [vmem:[#allocation1] sm:$0xff pattern:$0x73625140]  ;;  %v654_v37 = vld.sshfl [vmem:[#allocation1 + $0x8] sm:$0xff pattern:$0x73625140]  ;;  %v845_v42 = vadd.f32 %v844_v26, %v839_v25  ;;  %v880_v44 = vadd.f32 %v879_v30, %v874_v29  ;;  %v960_v25 = vstv %s10199_s11 }
  0x9d   :  { %v657_v41 = vpack.c.bf16 %v654_v37, %v653_v36  ;;  %693 = vst [vmem:[#allocation1] ss:$4 sm:$0xff] %v691_v27  ;;  %v847_v27 = vunpack.c.l.bf16 %v6632_v12  ;;  %v911_v36 = vld [vmem:[%s11929_s0] sm:$0x3]  ;;  %v6644_v37 = vld [vmem:[%s11929_s0 + $0x2] sm:$0x3] }
  0x9e   :  { %v912_v49 = vunpack.c.l.bf16 %v911_v36  ;;  %v917_v50 = vunpack.c.l.bf16 %v6644_v37  ;;  %v886_v60 = vadd.f32 %v885_v45, %v880_v44  ;;  %v6654_v26 = vld [vmem:[%s11929_s0 + $0x4] sm:$0x3]  ;;  %v935_v45 = vstv %s10214_s15  ;;  %s10376_s12 = sld [smem:[#allocation3 + $0x72]] }
  0x9f   :  { %v659_v46 = vrot.slane %v657_v41, 3  ;;  %v850_v43 = vmul.f32 %v849_v28, %v847_v27  ;;  %v931_v19 = vstv %s10189_s6  ;;  %v964_v36 = vunpack.c.l.bf16 %v6654_v26  ;;  %s10247_s6 = sld [smem:[#allocation6 + $0x16]] }
  0xa0   :  { %v915_v62 = vmul.f32 %v914_v51, %v912_v49  ;;  %v920_v63 = vmul.f32 %v919_v52, %v917_v50  ;;  %v972_v50 = vstv %s10218_s21  ;;  %s10382_s7 = sld [smem:[#allocation3 + $0x73]] }
  0xa1   :  { %v662_v55 = vsel %vm85_vm0, %v657_v41, %v659_v46  ;;  %v813_v41 = vadd.f32 %v812_v23, %v810_v22  ;;  %v888_v46 = vunpack.c.l.bf16 %v6640_v35  ;;  %v851_v58 = vadd.f32 %v850_v43, %v845_v42  ;;  %s10389_s15 = sld [smem:[#allocation3 + $0x74]] }
  0xa2   :  { %664 = vst [vmem:[#allocation2 + $0x1c] sm:$0x3] %v662_v55  ;;  %v6646_v55 = vld [vmem:[%s11929_s0 + $0x4] sm:$0x3]  ;;  %v921_v13 = vadd.f32 %v920_v63, %v915_v62  ;;  %s10392_s21 = sld [smem:[#allocation3 + $0x75]] }
  0xa3   :  { %v814_v57 = vmax.f32 %v813_v41, 0.0  ;;  %v891_v61 = vmul.f32 %v890_v48, %v888_v46  ;;  %v854_v6 = vadd.f32 %v853_v59, %v851_v58  ;;  %v6660_v41 = vld [vmem:[%s11929_s0 + $0x2] sm:$0x3]  ;;  %v1034_v58 = vld [vmem:[%s11929_s0] sm:$0x3]  ;;  %s10410_s1 = sld [smem:[#allocation6 + $0x1c]] }
  0xa4   :  { %v694_v0 = vld.sshfl [vmem:[#allocation1] sm:$0xff pattern:$0x73625140]  ;;  %v695_v1 = vld.sshfl [vmem:[#allocation1 + $0x8] sm:$0xff pattern:$0x73625140]  ;;  %v999_v52 = vunpack.c.l.bf16 %v6660_v41  ;;  %v1035_v9 = vunpack.c.l.bf16 %v1034_v58 }
  0xa5   :  { %v698_v5 = vpack.c.bf16 %v695_v1, %v694_v0  ;;  %734 = vst [vmem:[#allocation1] ss:$4 sm:$0xff] %v732_v47  ;;  %v923_v0 = vunpack.c.l.bf16 %v6646_v55  ;;  %v6648_v1 = vld [vmem:[%s11929_s0 + $0x6] sm:$0x3]  ;;  %v892_v11 = vadd.f32 %v891_v61, %v886_v60  ;;  %v855_v23 = vmax.f32 %v854_v6, 0.0  ;;  %s10469_s28 = sld [smem:[#allocation6 + $0x1e]] }
  0xa6   :  { %v996_v55 = vstv %s10226_s27  ;;  %v6668_v59 = vld [vmem:[%s11929_s0 + $0x2] sm:$0x3]  ;;  %v6664_v6 = vld [vmem:[%s11929_s0 + $0x6] sm:$0x3]  ;;  %s10283_s27 = sld [smem:[#allocation6 + $0x17]] }
  0xa7   :  { %v700_v17 = vrot.slane %v698_v5, 3  ;;  %v926_v14 = vmul.f32 %v925_v4, %v923_v0  ;;  %v895_v27 = vadd.f32 %v894_v18, %v892_v11 }
  0xa9   :  { %v703_v24 = vsel %vm85_vm0, %v698_v5, %v700_v17  ;;  %v929_v17 = vunpack.c.l.bf16 %v6648_v1  ;;  %v927_v28 = vadd.f32 %v926_v14, %v921_v13  ;;  %v896_v43 = vmax.f32 %v895_v27, 0.0  ;;  %v6670_v14 = vld [vmem:[%s11929_s0 + $0x4] sm:$0x3] }
  0xaa   :  { %705 = vst [vmem:[#allocation2 + $0x1e] sm:$0x3] %v703_v24  ;;  %v955_v24 = vstv %s10196_s2  ;;  %s10256_s2 = sld [smem:[#allocation3 + $0x5f]]  ;;  %v1042_v13 = vstv %s10244_s14  ;;  %v1046_v27 = vunpack.c.l.bf16 %v6670_v14 }
  0xab   :  { %v932_v29 = vmul.f32 %v931_v19, %v929_v17  ;;  %v956_v34 = vmul.f32 %v955_v24, %v953_v20  ;;  %v976_v19 = vstv %s10247_s6  ;;  %s10420_s14 = sld [smem:[#allocation3 + $0x78]] }
  0xac   :  { %v735_v38 = vld.sshfl [vmem:[#allocation1] sm:$0xff pattern:$0x73625140]  ;;  %v736_v39 = vld.sshfl [vmem:[#allocation1 + $0x8] sm:$0xff pattern:$0x73625140] }
  0xad   :  { %v739_v40 = vpack.c.bf16 %v736_v39, %v735_v38  ;;  %775 = vst [vmem:[#allocation1] ss:$4 sm:$0xff] %v773_v21  ;;  %v958_v21 = vunpack.c.l.bf16 %v6652_v10  ;;  %v966_v38 = vstv %s10205_s29  ;;  %v6656_v39 = vld [vmem:[%s11929_s0 + $0x6] sm:$0x3]  ;;  %v933_v44 = vadd.f32 %v932_v29, %v927_v28  ;;  %s10423_s6 = sld [smem:[#allocation3 + $0x79]] }
  0xae   :  { %v970_v48 = vunpack.c.l.bf16 %v6656_v39  ;;  %v1040_v10 = vunpack.c.l.bf16 %v6668_v59  ;;  %v1048_v28 = vstv %s10264_s8  ;;  %v6672_v29 = vld [vmem:[%s11929_s0 + $0x6] sm:$0x3]  ;;  %s10438_s8 = sld [smem:[#allocation6 + $0x1d]] }
  0xaf   :  { %v741_v47 = vrot.slane %v739_v40, 3  ;;  %v961_v35 = vmul.f32 %v960_v25, %v958_v21  ;;  %v936_v62 = vadd.f32 %v935_v45, %v933_v44  ;;  %v1049_v41 = vmul.f32 %v1048_v28, %v1046_v27 }
  0xb0   :  { %v973_v0 = vmul.f32 %v972_v50, %v970_v48  ;;  %v1013_v24 = vstv %s10256_s2  ;;  %v1043_v26 = vmul.f32 %v1042_v13, %v1040_v10  ;;  %v1054_v44 = vstv %s10270_s23  ;;  %s10330_s23 = sld [smem:[#allocation3 + $0x6b]] }
  0xb1   :  { %v744_v56 = vsel %vm85_vm0, %v739_v40, %v741_v47  ;;  %v993_v40 = vld [vmem:[%s11929_s0] sm:$0x3]  ;;  %v962_v46 = vadd.f32 %v961_v35, %v956_v34  ;;  %v967_v47 = vmul.f32 %v966_v38, %v964_v36  ;;  %v937_v17 = vmax.f32 %v936_v62, 0.0  ;;  %s10429_s2 = sld [smem:[#allocation3 + $0x7a]] }
  0xb2   :  { %746 = vst [vmem:[#allocation2 + $0x20] sm:$0x3] %v744_v56  ;;  %v994_v51 = vunpack.c.l.bf16 %v993_v40  ;;  %v1001_v56 = vstv %s10228_s17  ;;  %s10286_s17 = sld [smem:[#allocation3 + $0x66]]  ;;  %v1083_v48 = vstv %s10280_s10 }
  0xb3   :  { %v968_v63 = vadd.f32 %v967_v47, %v962_v46  ;;  %v1078_v47 = vstv %s10277_s18  ;;  %s10338_s18 = sld [smem:[#allocation3 + $0x6c]] }
  0xb4   :  { %v776_v2 = vld.sshfl [vmem:[#allocation1] sm:$0xff pattern:$0x73625140]  ;;  %v777_v3 = vld.sshfl [vmem:[#allocation1 + $0x8] sm:$0xff pattern:$0x73625140] }
  0xb5   :  { %v780_v5 = vpack.c.bf16 %v777_v3, %v776_v2  ;;  %816 = vst [vmem:[#allocation1] ss:$4 sm:$0xff] %v814_v57  ;;  %v6662_v57 = vld [vmem:[%s11929_s0 + $0x4] sm:$0x3]  ;;  %v997_v2 = vmul.f32 %v996_v55, %v994_v51  ;;  %v1002_v3 = vmul.f32 %v1001_v56, %v999_v52  ;;  %v974_v18 = vadd.f32 %v973_v0, %v968_v63  ;;  %s10340_s10 = sld [smem:[#allocation3 + $0x6d]] }
  0xb6   :  { %v1005_v4 = vunpack.c.l.bf16 %v6662_v57  ;;  %v1017_v55 = vstv %s10283_s27 }
  0xb7   :  { %v782_v12 = vrot.slane %v780_v5, 3  ;;  %v1003_v21 = vadd.f32 %v1002_v3, %v997_v2  ;;  %v1116_v3 = vld [vmem:[%s11929_s0] sm:$0x3] }
  0xb8   :  { %v1089_v0 = vstv %s10286_s17  ;;  %v1117_v14 = vunpack.c.l.bf16 %v1116_v3 }
  0xb9   :  { %v785_v22 = vsel %vm85_vm0, %v780_v5, %v782_v12  ;;  %v1007_v5 = vstv %s10234_s13  ;;  %v1037_v12 = vstv %s10242_s19  ;;  %s10301_s19 = sld [smem:[#allocation3 + $0x67]] }
  0xba   :  { %787 = vst [vmem:[#allocation2 + $0x22] sm:$0x3] %v785_v22  ;;  %v1008_v22 = vmul.f32 %v1007_v5, %v1005_v4  ;;  %v1038_v25 = vmul.f32 %v1037_v12, %v1035_v9  ;;  %v6684_v4 = vld [vmem:[%s11929_s0 + $0x2] sm:$0x3]  ;;  %v1058_v12 = vstv %s10298_s25  ;;  %s10356_s25 = sld [smem:[#allocation3 + $0x71]] }
  0xbb   :  { %s10464_s13 = sld [smem:[#allocation3 + $0x7e]] }
  0xbc   :  { %v817_v30 = vld.sshfl [vmem:[#allocation1] sm:$0xff pattern:$0x73625140]  ;;  %v818_v33 = vld.sshfl [vmem:[#allocation1 + $0x8] sm:$0xff pattern:$0x73625140]  ;;  %v1009_v38 = vadd.f32 %v1008_v22, %v1003_v21  ;;  %v1044_v40 = vadd.f32 %v1043_v26, %v1038_v25  ;;  %v1124_v21 = vstv %s10311_s24 }
  0xbd   :  { %v821_v37 = vpack.c.bf16 %v818_v33, %v817_v30  ;;  %857 = vst [vmem:[#allocation1] ss:$4 sm:$0xff] %v855_v23  ;;  %v1011_v23 = vunpack.c.l.bf16 %v6664_v6  ;;  %v1075_v30 = vld [vmem:[%s11929_s0] sm:$0x3]  ;;  %v6676_v33 = vld [vmem:[%s11929_s0 + $0x2] sm:$0x3] }
  0xbe   :  { %v1076_v45 = vunpack.c.l.bf16 %v1075_v30  ;;  %v1081_v46 = vunpack.c.l.bf16 %v6676_v33  ;;  %v1050_v56 = vadd.f32 %v1049_v41, %v1044_v40  ;;  %v6686_v22 = vld [vmem:[%s11929_s0 + $0x4] sm:$0x3]  ;;  %v1099_v41 = vstv %s10326_s9 }
  0xbf   :  { %v823_v42 = vrot.slane %v821_v37, 3  ;;  %v1014_v39 = vmul.f32 %v1013_v24, %v1011_v23  ;;  %v1095_v13 = vstv %s10301_s19  ;;  %v1128_v30 = vunpack.c.l.bf16 %v6686_v22  ;;  %s10359_s19 = sld [smem:[#allocation6 + $0x1a]] }
  0xc0   :  { %v1079_v58 = vmul.f32 %v1078_v47, %v1076_v45  ;;  %v1084_v59 = vmul.f32 %v1083_v48, %v1081_v46  ;;  %v1136_v46 = vstv %s10330_s23  ;;  %s6466_s23 = sshll.u32 %s11934_s5, 4  ;;  %s6467_s23 = int_to_ptr.hbm [resolvable:$true] %s6466_s23 }
  0xc1   :  { %v826_v49 = vsel %vm85_vm0, %v821_v37, %v823_v42  ;;  %v977_v37 = vadd.f32 %v976_v19, %v974_v18  ;;  %v1052_v42 = vunpack.c.l.bf16 %v6672_v29  ;;  %v1015_v52 = vadd.f32 %v1014_v39, %v1009_v38 }
  0xc2   :  { %828 = vst [vmem:[#allocation2 + $0x24] sm:$0x3] %v826_v49  ;;  %v6678_v49 = vld [vmem:[%s11929_s0 + $0x4] sm:$0x3]  ;;  %v1085_v9 = vadd.f32 %v1084_v59, %v1079_v58 }
  0xc3   :  { %v978_v51 = vmax.f32 %v977_v37, 0.0  ;;  %v1055_v57 = vmul.f32 %v1054_v44, %v1052_v42  ;;  %v1018_v2 = vadd.f32 %v1017_v55, %v1015_v52  ;;  %v6692_v37 = vld [vmem:[%s11929_s0 + $0x2] sm:$0x3]  ;;  %v1198_v52 = vld [vmem:[%s11929_s0] sm:$0x3] }
  0xc4   :  { %v858_v60 = vld.sshfl [vmem:[#allocation1] sm:$0xff pattern:$0x73625140]  ;;  %v859_v61 = vld.sshfl [vmem:[#allocation1 + $0x8] sm:$0xff pattern:$0x73625140]  ;;  %v1163_v48 = vunpack.c.l.bf16 %v6692_v37  ;;  %v1199_v3 = vunpack.c.l.bf16 %v1198_v52 }
  0xc5   :  { %v862_v1 = vpack.c.bf16 %v859_v61, %v858_v60  ;;  %898 = vst [vmem:[#allocation1] ss:$4 sm:$0xff] %v896_v43  ;;  %v1087_v60 = vunpack.c.l.bf16 %v6678_v49  ;;  %v6680_v61 = vld [vmem:[%s11929_s0 + $0x6] sm:$0x3]  ;;  %v1056_v5 = vadd.f32 %v1055_v57, %v1050_v56  ;;  %v1019_v19 = vmax.f32 %v1018_v2, 0.0 }
  0xc6   :  { %v1160_v49 = vstv %s10338_s18  ;;  %v6700_v55 = vld [vmem:[%s11929_s0 + $0x2] sm:$0x3]  ;;  %v6696_v2 = vld [vmem:[%s11929_s0 + $0x6] sm:$0x3]  ;;  %s10395_s18 = sld [smem:[#allocation6 + $0x1b]] }
  0xc7   :  { %v864_v11 = vrot.slane %v862_v1, 3  ;;  %v1090_v10 = vmul.f32 %v1089_v0, %v1087_v60  ;;  %v1059_v23 = vadd.f32 %v1058_v12, %v1056_v5 }
  0xc9   :  { %v867_v20 = vsel %vm85_vm0, %v862_v1, %v864_v11  ;;  %v1093_v11 = vunpack.c.l.bf16 %v6680_v61  ;;  %v1091_v24 = vadd.f32 %v1090_v10, %v1085_v9  ;;  %v1060_v39 = vmax.f32 %v1059_v23, 0.0  ;;  %v6702_v10 = vld [vmem:[%s11929_s0 + $0x4] sm:$0x3] }
  0xca   :  { %869 = vst [vmem:[#allocation2 + $0x26] sm:$0x3] %v867_v20  ;;  %v1119_v20 = vstv %s10308_s30  ;;  %s10368_s30 = sld [smem:[#allocation3 + $0x6f]]  ;;  %v1206_v9 = vstv %s10356_s25  ;;  %v1210_v23 = vunpack.c.l.bf16 %v6702_v10 }
  0xcb   :  { %v1096_v25 = vmul.f32 %v1095_v13, %v1093_v11  ;;  %v1120_v28 = vmul.f32 %v1119_v20, %v1117_v14  ;;  %v1140_v13 = vstv %s10359_s19  ;;  %s6729_s25 = sld [smem:[#allocation3 + $0x7f]] }
  0xcc   :  { %v899_v34 = vld.sshfl [vmem:[#allocation1] sm:$0xff pattern:$0x73625140]  ;;  %v900_v35 = vld.sshfl [vmem:[#allocation1 + $0x8] sm:$0xff pattern:$0x73625140] }
  0xcd   :  { %v903_v36 = vpack.c.bf16 %v900_v35, %v899_v34  ;;  %939 = vst [vmem:[#allocation1] ss:$4 sm:$0xff] %v937_v17  ;;  %v1122_v17 = vunpack.c.l.bf16 %v6684_v4  ;;  %v1130_v34 = vstv %s10317_s16  ;;  %v6688_v35 = vld [vmem:[%s11929_s0 + $0x6] sm:$0x3]  ;;  %v1097_v40 = vadd.f32 %v1096_v25, %v1091_v24 }
  0xce   :  { %v1134_v44 = vunpack.c.l.bf16 %v6688_v35  ;;  %v1204_v4 = vunpack.c.l.bf16 %v6700_v55  ;;  %v1212_v24 = vstv %s10376_s12  ;;  %v6704_v25 = vld [vmem:[%s11929_s0 + $0x6] sm:$0x3] }
  0xcf   :  { %v905_v43 = vrot.slane %v903_v36, 3  ;;  %v1125_v29 = vmul.f32 %v1124_v21, %v1122_v17  ;;  %v1100_v58 = vadd.f32 %v1099_v41, %v1097_v40  ;;  %v1213_v37 = vmul.f32 %v1212_v24, %v1210_v23 }
  0xd0   :  { %v1137_v60 = vmul.f32 %v1136_v46, %v1134_v44  ;;  %v1177_v20 = vstv %s10368_s30  ;;  %v1207_v22 = vmul.f32 %v1206_v9, %v1204_v4  ;;  %v1218_v40 = vstv %s10382_s7  ;;  %s10442_s7 = sld [smem:[#allocation3 + $0x7b]] }
  0xd1   :  { %v908_v50 = vsel %vm85_vm0, %v903_v36, %v905_v43  ;;  %v1157_v36 = vld [vmem:[%s11929_s0] sm:$0x3]  ;;  %v1126_v42 = vadd.f32 %v1125_v29, %v1120_v28  ;;  %v1131_v43 = vmul.f32 %v1130_v34, %v1128_v30  ;;  %v1101_v11 = vmax.f32 %v1100_v58, 0.0 }
  0xd2   :  { %910 = vst [vmem:[#allocation2 + $0x28] sm:$0x3] %v908_v50  ;;  %v1158_v47 = vunpack.c.l.bf16 %v1157_v36  ;;  %v1165_v50 = vstv %s10340_s10  ;;  %s10398_s10 = sld [smem:[#allocation3 + $0x76]]  ;;  %v1247_v44 = vstv %s10392_s21 }
  0xd3   :  { %v1132_v59 = vadd.f32 %v1131_v43, %v1126_v42  ;;  %v1242_v43 = vstv %s10389_s15  ;;  %s10450_s15 = sld [smem:[#allocation3 + $0x7c]] }
  0xd4   :  { %v940_v62 = vld.sshfl [vmem:[#allocation1] sm:$0xff pattern:$0x73625140]  ;;  %v941_v63 = vld.sshfl [vmem:[#allocation1 + $0x8] sm:$0xff pattern:$0x73625140] }
  0xd5   :  { %v944_v1 = vpack.c.bf16 %v941_v63, %v940_v62  ;;  %980 = vst [vmem:[#allocation1] ss:$4 sm:$0xff] %v978_v51  ;;  %v6694_v51 = vld [vmem:[%s11929_s0 + $0x4] sm:$0x3]  ;;  %v1161_v62 = vmul.f32 %v1160_v49, %v1158_v47  ;;  %v1166_v63 = vmul.f32 %v1165_v50, %v1163_v48  ;;  %v1138_v12 = vadd.f32 %v1137_v60, %v1132_v59  ;;  %s10452_s21 = sld [smem:[#allocation3 + $0x7d]] }
  0xd6   :  { %v1169_v0 = vunpack.c.l.bf16 %v6694_v51  ;;  %v1181_v49 = vstv %s10395_s18 }
  0xd7   :  { %v946_v6 = vrot.slane %v944_v1, 3  ;;  %v1167_v17 = vadd.f32 %v1166_v63, %v1161_v62  ;;  %v1280_v63 = vld [vmem:[%s11929_s0] sm:$0x3] }
  0xd8   :  { %v1253_v60 = vstv %s10398_s10  ;;  %v1281_v10 = vunpack.c.l.bf16 %v1280_v63 }
  0xd9   :  { %v949_v18 = vsel %vm85_vm0, %v944_v1, %v946_v6  ;;  %v1171_v1 = vstv %s10346_s26  ;;  %v1201_v6 = vstv %s10354_s22  ;;  %s10413_s22 = sld [smem:[#allocation3 + $0x77]] }
  0xda   :  { %951 = vst [vmem:[#allocation2 + $0x2a] sm:$0x3] %v949_v18  ;;  %v1172_v18 = vmul.f32 %v1171_v1, %v1169_v0  ;;  %v1202_v21 = vmul.f32 %v1201_v6, %v1199_v3  ;;  %v6716_v0 = vld [vmem:[%s11929_s0 + $0x2] sm:$0x3]  ;;  %v1222_v6 = vstv %s10410_s1 }
  0xdc   :  { %v981_v26 = vld.sshfl [vmem:[#allocation1] sm:$0xff pattern:$0x73625140]  ;;  %v982_v27 = vld.sshfl [vmem:[#allocation1 + $0x8] sm:$0xff pattern:$0x73625140]  ;;  %v1173_v34 = vadd.f32 %v1172_v18, %v1167_v17  ;;  %v1208_v36 = vadd.f32 %v1207_v22, %v1202_v21  ;;  %v1288_v17 = vstv %s10423_s6 }
  0xdd   :  { %v985_v33 = vpack.c.bf16 %v982_v27, %v981_v26  ;;  %1021 = vst [vmem:[#allocation1] ss:$4 sm:$0xff] %v1019_v19  ;;  %v1175_v19 = vunpack.c.l.bf16 %v6696_v2  ;;  %v1239_v26 = vld [vmem:[%s11929_s0] sm:$0x3]  ;;  %v6708_v27 = vld [vmem:[%s11929_s0 + $0x2] sm:$0x3] }
  0xde   :  { %v1240_v41 = vunpack.c.l.bf16 %v1239_v26  ;;  %v1245_v42 = vunpack.c.l.bf16 %v6708_v27  ;;  %v1214_v50 = vadd.f32 %v1213_v37, %v1208_v36  ;;  %v6718_v18 = vld [vmem:[%s11929_s0 + $0x4] sm:$0x3]  ;;  %v1263_v37 = vstv %s10438_s8  ;;  %s6730_s6 = sld [smem:[#allocation6 + $0x1f]] }
  0xdf   :  { %v987_v38 = vrot.slane %v985_v33, 3  ;;  %v1178_v35 = vmul.f32 %v1177_v20, %v1175_v19  ;;  %v1259_v9 = vstv %s10413_s22  ;;  %v1292_v26 = vunpack.c.l.bf16 %v6718_v18 }
  0xe0   :  { %v1243_v52 = vmul.f32 %v1242_v43, %v1240_v41  ;;  %v1248_v55 = vmul.f32 %v1247_v44, %v1245_v42  ;;  %v1300_v42 = vstv %s10442_s7 }
  0xe1   :  { %v990_v45 = vsel %vm85_vm0, %v985_v33, %v987_v38  ;;  %v1141_v33 = vadd.f32 %v1140_v13, %v1138_v12  ;;  %v1216_v38 = vunpack.c.l.bf16 %v6704_v25  ;;  %v1179_v48 = vadd.f32 %v1178_v35, %v1173_v34 }
  0xe2   :  { %992 = vst [vmem:[#allocation2 + $0x2c] sm:$0x3] %v990_v45  ;;  %v6710_v45 = vld [vmem:[%s11929_s0 + $0x4] sm:$0x3]  ;;  %v1249_v3 = vadd.f32 %v1248_v55, %v1243_v52 }
  0xe3   :  { %v1142_v47 = vmax.f32 %v1141_v33, 0.0  ;;  %v1219_v51 = vmul.f32 %v1218_v40, %v1216_v38  ;;  %v1182_v62 = vadd.f32 %v1181_v49, %v1179_v48  ;;  %v6724_v33 = vld [vmem:[%s11929_s0 + $0x2] sm:$0x3] }
  0xe4   :  { %v1022_v56 = vld.sshfl [vmem:[#allocation1] sm:$0xff pattern:$0x73625140]  ;;  %v1023_v57 = vld.sshfl [vmem:[#allocation1 + $0x8] sm:$0xff pattern:$0x73625140]  ;;  %v1327_v44 = vunpack.c.l.bf16 %v6724_v33  ;;  %v288_v33 = vpack.c.bf16 %v9864_v32, %v9862_v31 }
  0xe5   :  { %v1026_v61 = vpack.c.bf16 %v1023_v57, %v1022_v56  ;;  %1062 = vst [vmem:[#allocation1] ss:$4 sm:$0xff] %v1060_v39  ;;  %v1251_v56 = vunpack.c.l.bf16 %v6710_v45  ;;  %v6712_v57 = vld [vmem:[%s11929_s0 + $0x6] sm:$0x3]  ;;  %v1220_v1 = vadd.f32 %v1219_v51, %v1214_v50  ;;  %v1183_v13 = vmax.f32 %v1182_v62, 0.0  ;;  %v1362_v31 = vld [vmem:[#allocation2] sm:$0xff] }
  0xe6   :  { %v1324_v45 = vstv %s10450_s15 }
  0xe7   :  { %v1028_v5 = vrot.slane %v1026_v61, 3  ;;  %v1254_v4 = vmul.f32 %v1253_v60, %v1251_v56  ;;  %v1223_v19 = vadd.f32 %v1222_v6, %v1220_v1  ;;  %v6728_v60 = vld [vmem:[%s11929_s0 + $0x6] sm:$0x3] }
  0xe9   :  { %v1031_v14 = vsel %vm85_vm0, %v1026_v61, %v1028_v5  ;;  %v1257_v5 = vunpack.c.l.bf16 %v6712_v57  ;;  %v1255_v20 = vadd.f32 %v1254_v4, %v1249_v3  ;;  %v1224_v35 = vmax.f32 %v1223_v19, 0.0 }
  0xea   :  { %1033 = vst [vmem:[#allocation2 + $0x2e] sm:$0x3] %v1031_v14  ;;  %v1283_v14 = vstv %s10420_s14  ;;  %v1339_v3 = vunpack.c.l.bf16 %v6728_v60  ;;  %v1304_v4 = vstv %s10469_s28 }
  0xeb   :  { %v1260_v21 = vmul.f32 %v1259_v9, %v1257_v5  ;;  %v1284_v24 = vmul.f32 %v1283_v14, %v1281_v10  ;;  %v1341_v5 = vstv %s6729_s25 }
  0xec   :  { %v1063_v28 = vld.sshfl [vmem:[#allocation1] sm:$0xff pattern:$0x73625140]  ;;  %v1064_v29 = vld.sshfl [vmem:[#allocation1 + $0x8] sm:$0xff pattern:$0x73625140] }
  0xed   :  { %v1067_v30 = vpack.c.bf16 %v1064_v29, %v1063_v28  ;;  %1103 = vst [vmem:[#allocation1] ss:$4 sm:$0xff] %v1101_v11  ;;  %v1286_v11 = vunpack.c.l.bf16 %v6716_v0  ;;  %v1294_v28 = vstv %s10429_s2  ;;  %v6720_v29 = vld [vmem:[%s11929_s0 + $0x6] sm:$0x3]  ;;  %v1261_v36 = vadd.f32 %v1260_v21, %v1255_v20 }
  0xee   :  { %v1298_v40 = vunpack.c.l.bf16 %v6720_v29  ;;  %v1345_v20 = vstv %s6730_s6 }
  0xef   :  { %v1069_v39 = vrot.slane %v1067_v30, 3  ;;  %v1289_v25 = vmul.f32 %v1288_v17, %v1286_v11  ;;  %v1264_v50 = vadd.f32 %v1263_v37, %v1261_v36 }
  0xf0   :  { %v1301_v52 = vmul.f32 %v1300_v42, %v1298_v40 }
  0xf1   :  { %v1072_v46 = vsel %vm85_vm0, %v1067_v30, %v1069_v39  ;;  %v1321_v30 = vld [vmem:[%s11929_s0] sm:$0x3]  ;;  %v1290_v38 = vadd.f32 %v1289_v25, %v1284_v24  ;;  %v1295_v39 = vmul.f32 %v1294_v28, %v1292_v26  ;;  %v1265_v62 = vmax.f32 %v1264_v50, 0.0 }
  0xf2   :  { %1074 = vst [vmem:[#allocation2 + $0x30] sm:$0x3] %v1072_v46  ;;  %v1322_v43 = vunpack.c.l.bf16 %v1321_v30  ;;  %v1329_v46 = vstv %s10452_s21  ;;  %v247_v30 = vpack.c.bf16 %v9833_v8, %v9831_v7 }
  0xf3   :  { %v1296_v51 = vadd.f32 %v1295_v39, %v1290_v38  ;;  %v1330_v57 = vmul.f32 %v1329_v46, %v1327_v44  ;;  %v290_v38 = vrot.slane %v288_v33, 3  ;;  %v8858_v46 = vld [vmem:[%s11932_s3 + $0x278] sm:$0xff] }
  0xf4   :  { %v1104_v58 = vld.sshfl [vmem:[#allocation1] sm:$0xff pattern:$0x73625140]  ;;  %v1105_v59 = vld.sshfl [vmem:[#allocation1 + $0x8] sm:$0xff pattern:$0x73625140]  ;;  %v1325_v56 = vmul.f32 %v1324_v45, %v1322_v43 }
  0xf5   :  { %v1108_v61 = vpack.c.bf16 %v1105_v59, %v1104_v58  ;;  %1144 = vst [vmem:[#allocation1] ss:$4 sm:$0xff] %v1142_v47  ;;  %v6726_v47 = vld [vmem:[%s11929_s0 + $0x4] sm:$0x3]  ;;  %v1335_v59 = vstv %s10464_s13  ;;  %v1302_v63 = vadd.f32 %v1301_v52, %v1296_v51  ;;  %v249_v37 = vrot.slane %v247_v30, 3  ;;  %v8850_v45 = vld [vmem:[%s11932_s3 + $0x238] sm:$0xff] }
  0xf6   :  { %v1333_v58 = vunpack.c.l.bf16 %v6726_v47  ;;  %v1331_v1 = vadd.f32 %v1330_v57, %v1325_v56  ;;  %v293_v42 = vsel %vm85_vm0, %v288_v33, %v290_v38  ;;  %v8866_v47 = vld [vmem:[%s11932_s3 + $0x2b8] sm:$0xff]  ;;  %v8857_v56 = vld [vmem:[%s11932_s3 + $0x270] sm:$0xff] }
  0xf7   :  { %v1110_v2 = vrot.slane %v1108_v61, 3  ;;  %v1305_v11 = vadd.f32 %v1304_v4, %v1302_v63  ;;  %295 = vst [vmem:[#allocation2 + $0xa] sm:$0x3] %v293_v42  ;;  %v8873_v63 = vld [vmem:[%s11932_s3 + $0x2f0] sm:$0xff]  ;;  %v8847_v4 = vld [vmem:[%s11932_s3 + $0x220] sm:$0xff]  ;;  %v8906_v33 = vld [vmem:[%s11932_s3 + $0x3f8] sm:$0xff] }
  0xf9   :  { %v1113_v12 = vsel %vm85_vm0, %v1108_v61, %v1110_v2  ;;  %v1336_v2 = vmul.f32 %v1335_v59, %v1333_v58  ;;  %v1306_v18 = vmax.f32 %v1305_v11, 0.0  ;;  %v8854_v11 = vld [vmem:[%s11932_s3 + $0x258] sm:$0xff] }
  0xfa   :  { %1115 = vst [vmem:[#allocation2 + $0x32] sm:$0x3] %v1113_v12 }
  0xfb   :  { %v1337_v12 = vadd.f32 %v1336_v2, %v1331_v1  ;;  %v8856_v1 = vld [vmem:[%s11932_s3 + $0x268] sm:$0xff] }
  0xfc   :  { %v1145_v22 = vld.sshfl [vmem:[#allocation1] sm:$0xff pattern:$0x73625140]  ;;  %v1146_v23 = vld.sshfl [vmem:[#allocation1 + $0x8] sm:$0xff pattern:$0x73625140] }
  0xfd   :  { %v1149_v27 = vpack.c.bf16 %v1146_v23, %v1145_v22  ;;  %1185 = vst [vmem:[#allocation1] ss:$4 sm:$0xff] %v1183_v13  ;;  %v1342_v13 = vmul.f32 %v1341_v5, %v1339_v3  ;;  %v8864_v2 = vld [vmem:[%s11932_s3 + $0x2a8] sm:$0xff]  ;;  %v8855_v5 = vld [vmem:[%s11932_s3 + $0x260] sm:$0xff] }
  0xfe   :  { %v8872_v3 = vld [vmem:[%s11932_s3 + $0x2e8] sm:$0xff] }
  0xff   :  { %v1151_v34 = vrot.slane %v1149_v27, 3  ;;  %v1343_v19 = vadd.f32 %v1342_v13, %v1337_v12  ;;  %v8862_v12 = vld [vmem:[%s11932_s3 + $0x298] sm:$0xff] }
 0x100   :  { %v8870_v13 = vld [vmem:[%s11932_s3 + $0x2d8] sm:$0xff] }
 0x101   :  { %v1154_v41 = vsel %vm85_vm0, %v1149_v27, %v1151_v34  ;;  %v1346_v24 = vadd.f32 %v1345_v20, %v1343_v19  ;;  %v329_v34 = vpack.c.bf16 %v9890_v54, %v9888_v53  ;;  %v8869_v19 = vld [vmem:[%s11932_s3 + $0x2d0] sm:$0xff]  ;;  %v8844_v20 = vld [vmem:[%s11932_s3 + $0x208] sm:$0xff] }
 0x102   :  { %1156 = vst [vmem:[#allocation2 + $0x34] sm:$0x3] %v1154_v41  ;;  %v252_v41 = vsel %vm85_vm0, %v247_v30, %v249_v37  ;;  %v8898_v30 = vld [vmem:[%s11932_s3 + $0x3b8] sm:$0xff] }
 0x103   :  { %v1347_v27 = vmax.f32 %v1346_v24, 0.0  ;;  %v331_v40 = vrot.slane %v329_v34, 3  ;;  %254 = vst [vmem:[#allocation2 + $0x8] sm:$0x3] %v252_v41  ;;  %v8843_v24 = vld [vmem:[%s11932_s3 + $0x200] sm:$0xff] }
 0x104   :  { %v1186_v48 = vld.sshfl [vmem:[#allocation1] sm:$0xff pattern:$0x73625140]  ;;  %v1187_v49 = vld.sshfl [vmem:[#allocation1 + $0x8] sm:$0xff pattern:$0x73625140] }
 0x105   :  { %v1190_v55 = vpack.c.bf16 %v1187_v49, %v1186_v48  ;;  %1226 = vst [vmem:[#allocation1] ss:$4 sm:$0xff] %v1224_v35  ;;  %v370_v35 = vpack.c.bf16 %v9929_v16, %v9927_v15  ;;  %v334_v32 = vsel %vm85_vm0, %v329_v34, %v331_v40  ;;  %v8874_v48 = vld [vmem:[%s11932_s3 + $0x2f8] sm:$0xff]  ;;  %v8905_v40 = vld [vmem:[%s11932_s3 + $0x3f0] sm:$0xff] }
 0x106   :  { %336 = vst [vmem:[#allocation2 + $0xc] sm:$0x3] %v334_v32  ;;  %v1364_v34 = vld [vmem:[#allocation2 + $0x10] sm:$0xff] }
 0x107   :  { %v1192_v61 = vrot.slane %v1190_v55, 3  ;;  %v372_v7 = vrot.slane %v370_v35, 3 }
 0x109   :  { %v1195_v0 = vsel %vm85_vm0, %v1190_v55, %v1192_v61  ;;  %v375_v15 = vsel %vm85_vm0, %v370_v35, %v372_v7  ;;  %v8849_v55 = vld [vmem:[%s11932_s3 + $0x230] sm:$0xff] }
 0x10a   :  { %1197 = vst [vmem:[#allocation2 + $0x36] sm:$0x3] %v1195_v0  ;;  %v8848_v0 = vld [vmem:[%s11932_s3 + $0x228] sm:$0xff]  ;;  %v8881_v35 = vld [vmem:[%s11932_s3 + $0x330] sm:$0xff] }
 0x10b   :  { %377 = vst [vmem:[#allocation2 + $0xe] sm:$0x3] %v375_v15  ;;  %v8896_v15 = vld [vmem:[%s11932_s3 + $0x3a8] sm:$0xff] }
 0x10c   :  { %v1227_v6 = vld.sshfl [vmem:[#allocation1] sm:$0xff pattern:$0x73625140]  ;;  %v1228_v9 = vld.sshfl [vmem:[#allocation1 + $0x8] sm:$0xff pattern:$0x73625140] }
 0x10d   :  { %v1231_v10 = vpack.c.bf16 %v1228_v9, %v1227_v6  ;;  %1267 = vst [vmem:[#allocation1] ss:$4 sm:$0xff] %v1265_v62  ;;  %v8865_v62 = vld [vmem:[%s11932_s3 + $0x2b0] sm:$0xff]  ;;  %v8863_v6 = vld [vmem:[%s11932_s3 + $0x2a0] sm:$0xff] }
 0x10e   :  { %v8871_v9 = vld [vmem:[%s11932_s3 + $0x2e0] sm:$0xff] }
 0x10f   :  { %v1233_v14 = vrot.slane %v1231_v10, 3 }
 0x111   :  { %v1236_v17 = vsel %vm85_vm0, %v1231_v10, %v1233_v14  ;;  %v8846_v10 = vld [vmem:[%s11932_s3 + $0x218] sm:$0xff]  ;;  %v8845_v14 = vld [vmem:[%s11932_s3 + $0x210] sm:$0xff] }
 0x112   :  { %1238 = vst [vmem:[#allocation2 + $0x38] sm:$0x3] %v1236_v17  ;;  %v1363_v61 = vld [vmem:[#allocation2 + $0x8] sm:$0xff] }
 0x113   :  { %v8853_v17 = vld [vmem:[%s11932_s3 + $0x250] sm:$0xff] }
 0x114   :  { %v1268_v21 = vld.sshfl [vmem:[#allocation1] sm:$0xff pattern:$0x73625140]  ;;  %v1269_v22 = vld.sshfl [vmem:[#allocation1 + $0x8] sm:$0xff pattern:$0x73625140] }
 0x115   :  { %v1272_v23 = vpack.c.bf16 %v1269_v22, %v1268_v21  ;;  %1308 = vst [vmem:[#allocation1] ss:$4 sm:$0xff] %v1306_v18  ;;  %v8861_v18 = vld [vmem:[%s11932_s3 + $0x290] sm:$0xff]  ;;  %v8852_v21 = vld [vmem:[%s11932_s3 + $0x248] sm:$0xff] }
 0x116   :  { %v8860_v22 = vld [vmem:[%s11932_s3 + $0x288] sm:$0xff] }
 0x117   :  { %v1274_v25 = vrot.slane %v1272_v23, 3 }
 0x119   :  { %v1277_v26 = vsel %vm85_vm0, %v1272_v23, %v1274_v25  ;;  %v8868_v23 = vld [vmem:[%s11932_s3 + $0x2c8] sm:$0xff]  ;;  %v8851_v25 = vld [vmem:[%s11932_s3 + $0x240] sm:$0xff] }
 0x11a   :  { %1279 = vst [vmem:[#allocation2 + $0x3a] sm:$0x3] %v1277_v26  ;;  %v8859_v26 = vld [vmem:[%s11932_s3 + $0x280] sm:$0xff] }
 0x11c   :  { %v1309_v28 = vld.sshfl [vmem:[#allocation1] sm:$0xff pattern:$0x73625140]  ;;  %v1310_v29 = vld.sshfl [vmem:[#allocation1 + $0x8] sm:$0xff pattern:$0x73625140] }
 0x11d   :  { %v1313_v36 = vpack.c.bf16 %v1310_v29, %v1309_v28  ;;  %1349 = vst [vmem:[#allocation1] ss:$4 sm:$0xff] %v1347_v27  ;;  %v8867_v27 = vld [vmem:[%s11932_s3 + $0x2c0] sm:$0xff]  ;;  %v8882_v28 = vld [vmem:[%s11932_s3 + $0x338] sm:$0xff] }
 0x11e   :  { %v8890_v29 = vld [vmem:[%s11932_s3 + $0x378] sm:$0xff] }
 0x11f   :  { %v1315_v39 = vrot.slane %v1313_v36, 3 }
 0x121   :  { %v1318_v8 = vsel %vm85_vm0, %v1313_v36, %v1315_v39  ;;  %v8889_v36 = vld [vmem:[%s11932_s3 + $0x370] sm:$0xff] }
 0x122   :  { %1320 = vst [vmem:[#allocation2 + $0x3c] sm:$0x3] %v1318_v8  ;;  %v8897_v39 = vld [vmem:[%s11932_s3 + $0x3b0] sm:$0xff] }
 0x124   :  { %v1350_v53 = vld.sshfl [vmem:[#allocation1] sm:$0xff pattern:$0x73625140]  ;;  %v1351_v54 = vld.sshfl [vmem:[#allocation1 + $0x8] sm:$0xff pattern:$0x73625140] }
 0x125   :  { %v1354_v16 = vpack.c.bf16 %v1351_v54, %v1350_v53  ;;  %2399 = vst [vmem:[#allocation1] ss:$9 sm:$0xff] %v1362_v31  ;;  %v8880_v53 = vld [vmem:[%s11932_s3 + $0x328] sm:$0xff] }
 0x126   :  { %v8888_v54 = vld [vmem:[%s11932_s3 + $0x368] sm:$0xff] }
 0x127   :  { %v1356_v43 = vrot.slane %v1354_v16, 3 }
 0x129   :  { %v1359_v44 = vsel %vm85_vm0, %v1354_v16, %v1356_v43  ;;  %v8904_v16 = vld [vmem:[%s11932_s3 + $0x3e8] sm:$0xff]  ;;  %v8879_v43 = vld [vmem:[%s11932_s3 + $0x320] sm:$0xff] }
 0x12a   :  { %1361 = vst [vmem:[#allocation2 + $0x3e] sm:$0x3] %v1359_v44  ;;  %v8887_v44 = vld [vmem:[%s11932_s3 + $0x360] sm:$0xff] }
 0x12c   :  { %v2400_v49 = vld [vmem:[#allocation1] sm:$0xff]  ;;  %v2401_v50 = vld [vmem:[#allocation1 + $0x9] sm:$0xff]  ;;  %v2402_v51 = vld [vmem:[#allocation1 + $0x12] sm:$0xff] }
 0x12d   :  { %5622 = vmatmul.bf16.vlgmr.msra.gmra.mxu0 %v2400_v49  ;;  %5635 = vmatmul.bf16.vlgmr.msra.gmra.mxu1 %v2401_v50  ;;  %v2403_v52 = vld [vmem:[#allocation1 + $0x1b] sm:$0xff]  ;;  %v2404_v57 = vld [vmem:[#allocation1 + $0x24] sm:$0xff]  ;;  %v2405_v59 = vld [vmem:[#allocation1 + $0x2d] sm:$0xff] }
 0x12e   :  { %5648 = vmatmul.bf16.vlgmr.msra.gmra.mxu2 %v2402_v51  ;;  %5661 = vmatmul.bf16.vlgmr.msra.gmra.mxu3 %v2403_v52  ;;  %v2406_v58 = vld [vmem:[#allocation1 + $0x36] sm:$0xff]  ;;  %v2407_v60 = vld [vmem:[#allocation1 + $0x3f] sm:$0xff] }
 0x12f   :  { %5718 = vmatpush.bf16.msra.mxu0 %v8850_v45  ;;  %5731 = vmatpush.bf16.msra.mxu1 %v8858_v46  ;;  %2409 = vst [vmem:[#allocation1] ss:$9 sm:$0xff] %v1363_v61  ;;  %v8895_v45 = vld [vmem:[%s11932_s3 + $0x3a0] sm:$0xff]  ;;  %v8894_v49 = vld [vmem:[%s11932_s3 + $0x398] sm:$0xff]  ;;  %v8877_v51 = vld [vmem:[%s11932_s3 + $0x310] sm:$0xff] }
 0x130   :  { %5744 = vmatpush.bf16.msra.mxu2 %v8866_v47  ;;  %5757 = vmatpush.bf16.msra.mxu3 %v8874_v48  ;;  %v8903_v46 = vld [vmem:[%s11932_s3 + $0x3e0] sm:$0xff]  ;;  %v8878_v47 = vld [vmem:[%s11932_s3 + $0x318] sm:$0xff]  ;;  %v8885_v52 = vld [vmem:[%s11932_s3 + $0x350] sm:$0xff] }
 0x131   :  { %v8886_v48 = vld [vmem:[%s11932_s3 + $0x358] sm:$0xff]  ;;  %v8875_v61 = vld [vmem:[%s11932_s3 + $0x300] sm:$0xff] }
 0x132   :  { %v8902_v50 = vld [vmem:[%s11932_s3 + $0x3d8] sm:$0xff] }
 0x133   :  { %5719 = vmatpush.bf16.msra.mxu0 %v8849_v55  ;;  %5732 = vmatpush.bf16.msra.mxu1 %v8857_v56  ;;  %v8893_v55 = vld [vmem:[%s11932_s3 + $0x390] sm:$0xff] }
 0x134   :  { %5745 = vmatpush.bf16.msra.mxu2 %v8865_v62  ;;  %5758 = vmatpush.bf16.msra.mxu3 %v8873_v63  ;;  %v8901_v56 = vld [vmem:[%s11932_s3 + $0x3d0] sm:$0xff]  ;;  %v8883_v62 = vld [vmem:[%s11932_s3 + $0x340] sm:$0xff] }
 0x135   :  { %v8891_v63 = vld [vmem:[%s11932_s3 + $0x380] sm:$0xff] }
 0x136   :  { %v2410_v37 = vld [vmem:[#allocation1] sm:$0xff]  ;;  %v2412_v38 = vld [vmem:[#allocation1 + $0x12] sm:$0xff]  ;;  %v2411_v41 = vld [vmem:[#allocation1 + $0x9] sm:$0xff] }
 0x137   :  { %5720 = vmatpush.bf16.msra.mxu0 %v8848_v0  ;;  %5733 = vmatpush.bf16.msra.mxu1 %v8856_v1  ;;  %v2413_v42 = vld [vmem:[#allocation1 + $0x1b] sm:$0xff]  ;;  %v10618_v7 = vld [vmem:[#allocation1 + $0x24] sm:$0xff]  ;;  %v10622_v31 = vld [vmem:[#allocation1 + $0x2d] sm:$0xff] }
 0x138   :  { %5746 = vmatpush.bf16.msra.mxu2 %v8864_v2  ;;  %5759 = vmatpush.bf16.msra.mxu3 %v8872_v3  ;;  %v10620_v8 = vld [vmem:[#allocation1 + $0x36] sm:$0xff]  ;;  %v10624_v32 = vld [vmem:[#allocation1 + $0x3f] sm:$0xff] }
 0x139   :  { %2419 = vst [vmem:[#allocation1] ss:$9 sm:$0xff] %v1364_v34  ;;  %v8899_v0 = vld [vmem:[%s11932_s3 + $0x3c0] sm:$0xff]  ;;  %v8914_v1 = vld [vmem:[%s11932_s3 + $0x438] sm:$0xff]  ;;  %v8932_v34 = vld [vmem:[%s11932_s3 + $0x4c8] sm:$0xff] }
 0x13a   :  { %v8922_v2 = vld [vmem:[%s11932_s3 + $0x478] sm:$0xff] }
 0x13b   :  { %5721 = vmatpush.bf16.msra.mxu0 %v8847_v4  ;;  %5734 = vmatpush.bf16.msra.mxu1 %v8855_v5  ;;  %v8930_v3 = vld [vmem:[%s11932_s3 + $0x4b8] sm:$0xff]  ;;  %v8913_v5 = vld [vmem:[%s11932_s3 + $0x430] sm:$0xff] }
 0x13c   :  { %5747 = vmatpush.bf16.msra.mxu2 %v8863_v6  ;;  %5760 = vmatpush.bf16.msra.mxu3 %v8871_v9  ;;  %v8938_v4 = vld [vmem:[%s11932_s3 + $0x4f8] sm:$0xff]  ;;  %v8921_v6 = vld [vmem:[%s11932_s3 + $0x470] sm:$0xff] }
 0x13d   :  { %5674 = vmatmul.bf16.vlgmr.msrb.gmra.mxu0 %v2404_v57  ;;  %5687 = vmatmul.bf16.vlgmr.msrb.gmra.mxu1 %v2405_v59  ;;  %v8876_v57 = vld [vmem:[%s11932_s3 + $0x308] sm:$0xff]  ;;  %v8929_v9 = vld [vmem:[%s11932_s3 + $0x4b0] sm:$0xff] }
 0x13e   :  { %5700 = vmatmul.bf16.vlgmr.msrb.gmra.mxu2 %v2406_v58  ;;  %5713 = vmatmul.bf16.vlgmr.msrb.gmra.mxu3 %v2407_v60  ;;  %v8884_v58 = vld [vmem:[%s11932_s3 + $0x348] sm:$0xff] }
 0x13f   :  { %5722 = vmatpush.bf16.msra.mxu0 %v8846_v10  ;;  %5735 = vmatpush.bf16.msra.mxu1 %v8854_v11  ;;  %v8892_v59 = vld [vmem:[%s11932_s3 + $0x388] sm:$0xff]  ;;  %v8937_v10 = vld [vmem:[%s11932_s3 + $0x4f0] sm:$0xff] }
 0x140   :  { %5748 = vmatpush.bf16.msra.mxu2 %v8862_v12  ;;  %5761 = vmatpush.bf16.msra.mxu3 %v8870_v13  ;;  %v8900_v60 = vld [vmem:[%s11932_s3 + $0x3c8] sm:$0xff] }
 0x141   :  { %v8912_v11 = vld [vmem:[%s11932_s3 + $0x428] sm:$0xff] }
 0x142   :  { %v8920_v12 = vld [vmem:[%s11932_s3 + $0x468] sm:$0xff] }
 0x143   :  { %5723 = vmatpush.bf16.msra.mxu0 %v8845_v14  ;;  %5736 = vmatpush.bf16.msra.mxu1 %v8853_v17  ;;  %v8928_v13 = vld [vmem:[%s11932_s3 + $0x4a8] sm:$0xff]  ;;  %v8911_v17 = vld [vmem:[%s11932_s3 + $0x420] sm:$0xff] }
 0x144   :  { %5749 = vmatpush.bf16.msra.mxu2 %v8861_v18  ;;  %5762 = vmatpush.bf16.msra.mxu3 %v8869_v19  ;;  %v8936_v14 = vld [vmem:[%s11932_s3 + $0x4e8] sm:$0xff]  ;;  %v8919_v18 = vld [vmem:[%s11932_s3 + $0x460] sm:$0xff] }
 0x145   :  { %v8927_v19 = vld [vmem:[%s11932_s3 + $0x4a0] sm:$0xff] }
 0x147   :  { %5724 = vmatpush.bf16.msra.mxu0 %v8844_v20  ;;  %5737 = vmatpush.bf16.msra.mxu1 %v8852_v21  ;;  %v8935_v20 = vld [vmem:[%s11932_s3 + $0x4e0] sm:$0xff]  ;;  %v8910_v21 = vld [vmem:[%s11932_s3 + $0x418] sm:$0xff] }
 0x148   :  { %5750 = vmatpush.bf16.msra.mxu2 %v8860_v22  ;;  %5763 = vmatpush.bf16.msra.mxu3 %v8868_v23  ;;  %v8918_v22 = vld [vmem:[%s11932_s3 + $0x458] sm:$0xff] }
 0x149   :  { %v8926_v23 = vld [vmem:[%s11932_s3 + $0x498] sm:$0xff] }
 0x14b   :  { %5725 = vmatpush.bf16.msra.mxu0 %v8843_v24  ;;  %5738 = vmatpush.bf16.msra.mxu1 %v8851_v25  ;;  %v8934_v24 = vld [vmem:[%s11932_s3 + $0x4d8] sm:$0xff]  ;;  %v8909_v25 = vld [vmem:[%s11932_s3 + $0x410] sm:$0xff] }
 0x14c   :  { %5751 = vmatpush.bf16.msra.mxu2 %v8859_v26  ;;  %5764 = vmatpush.bf16.msra.mxu3 %v8867_v27  ;;  %v8917_v26 = vld [vmem:[%s11932_s3 + $0x450] sm:$0xff] }
 0x14d   :  { %v8925_v27 = vld [vmem:[%s11932_s3 + $0x490] sm:$0xff] }
 0x14e   :  { %5726 = vmatmul.bf16.vlgmr.msra.gmra.mxu0 %v2410_v37  ;;  %5739 = vmatmul.bf16.vlgmr.msra.gmra.mxu1 %v2411_v41  ;;  %v8923_v37 = vld [vmem:[%s11932_s3 + $0x480] sm:$0xff] }
 0x14f   :  { %5770 = vmatpush.bf16.msrb.mxu0 %v8882_v28  ;;  %5783 = vmatpush.bf16.msrb.mxu1 %v8890_v29  ;;  %v8933_v28 = vld [vmem:[%s11932_s3 + $0x4d0] sm:$0xff]  ;;  %v8908_v29 = vld [vmem:[%s11932_s3 + $0x408] sm:$0xff]  ;;  %v1365_v41 = vld [vmem:[#allocation2 + $0x18] sm:$0xff] }
 0x150   :  { %5796 = vmatpush.bf16.msrb.mxu2 %v8898_v30  ;;  %5809 = vmatpush.bf16.msrb.mxu3 %v8906_v33  ;;  %v8916_v30 = vld [vmem:[%s11932_s3 + $0x448] sm:$0xff] }
 0x151   :  { %5752 = vmatmul.bf16.vlgmr.msra.gmra.mxu2 %v2412_v38  ;;  %5765 = vmatmul.bf16.vlgmr.msra.gmra.mxu3 %v2413_v42  ;;  %v8924_v33 = vld [vmem:[%s11932_s3 + $0x488] sm:$0xff]  ;;  %v8931_v38 = vld [vmem:[%s11932_s3 + $0x4c0] sm:$0xff]  ;;  %v8962_v42 = vld [vmem:[%s11932_s3 + $0x5b8] sm:$0xff] }
 0x153   :  { %5771 = vmatpush.bf16.msrb.mxu0 %v8881_v35  ;;  %5784 = vmatpush.bf16.msrb.mxu1 %v8889_v36  ;;  %v8907_v35 = vld [vmem:[%s11932_s3 + $0x400] sm:$0xff] }
 0x154   :  { %5797 = vmatpush.bf16.msrb.mxu2 %v8897_v39  ;;  %5810 = vmatpush.bf16.msrb.mxu3 %v8905_v40  ;;  %v8915_v36 = vld [vmem:[%s11932_s3 + $0x440] sm:$0xff]  ;;  %v8946_v39 = vld [vmem:[%s11932_s3 + $0x538] sm:$0xff] }
 0x155   :  { %v8954_v40 = vld [vmem:[%s11932_s3 + $0x578] sm:$0xff] }
 0x157   :  { %5772 = vmatpush.bf16.msrb.mxu0 %v8880_v53  ;;  %5785 = vmatpush.bf16.msrb.mxu1 %v8888_v54  ;;  %v2423_v53 = vld [vmem:[#allocation1 + $0x1b] sm:$0xff]  ;;  %v8945_v54 = vld [vmem:[%s11932_s3 + $0x530] sm:$0xff] }
 0x158   :  { %5798 = vmatpush.bf16.msrb.mxu2 %v8896_v15  ;;  %5811 = vmatpush.bf16.msrb.mxu3 %v8904_v16  ;;  %v8953_v15 = vld [vmem:[%s11932_s3 + $0x570] sm:$0xff] }
 0x159   :  { %v8961_v16 = vld [vmem:[%s11932_s3 + $0x5b0] sm:$0xff] }
 0x15b   :  { %5773 = vmatpush.bf16.msrb.mxu0 %v8879_v43  ;;  %5786 = vmatpush.bf16.msrb.mxu1 %v8887_v44  ;;  %v8969_v43 = vld [vmem:[%s11932_s3 + $0x5f0] sm:$0xff]  ;;  %v10822_v44 = vld [vmem:[#allocation1 + $0x24] sm:$0xff] }
 0x15c   :  { %5799 = vmatpush.bf16.msrb.mxu2 %v8895_v45  ;;  %5812 = vmatpush.bf16.msrb.mxu3 %v8903_v46  ;;  %v10824_v45 = vld [vmem:[#allocation1 + $0x36] sm:$0xff]  ;;  %v10826_v46 = vld [vmem:[#allocation1 + $0x2d] sm:$0xff] }
 0x15f   :  { %5774 = vmatpush.bf16.msrb.mxu0 %v8878_v47  ;;  %5787 = vmatpush.bf16.msrb.mxu1 %v8886_v48  ;;  %v10828_v47 = vld [vmem:[#allocation1 + $0x3f] sm:$0xff]  ;;  %v8944_v48 = vld [vmem:[%s11932_s3 + $0x528] sm:$0xff] }
 0x160   :  { %5800 = vmatpush.bf16.msrb.mxu2 %v8894_v49  ;;  %5813 = vmatpush.bf16.msrb.mxu3 %v8902_v50  ;;  %v8952_v49 = vld [vmem:[%s11932_s3 + $0x568] sm:$0xff] }
 0x161   :  { %v8960_v50 = vld [vmem:[%s11932_s3 + $0x5a8] sm:$0xff] }
 0x163   :  { %5775 = vmatpush.bf16.msrb.mxu0 %v8877_v51  ;;  %5788 = vmatpush.bf16.msrb.mxu1 %v8885_v52  ;;  %v8968_v51 = vld [vmem:[%s11932_s3 + $0x5e8] sm:$0xff]  ;;  %v8943_v52 = vld [vmem:[%s11932_s3 + $0x520] sm:$0xff] }
 0x164   :  { %5801 = vmatpush.bf16.msrb.mxu2 %v8893_v55  ;;  %5814 = vmatpush.bf16.msrb.mxu3 %v8901_v56  ;;  %v8951_v55 = vld [vmem:[%s11932_s3 + $0x560] sm:$0xff] }
 0x165   :  { %v8959_v56 = vld [vmem:[%s11932_s3 + $0x5a0] sm:$0xff] }
 0x167   :  { %5776 = vmatpush.bf16.msrb.mxu0 %v8876_v57  ;;  %5789 = vmatpush.bf16.msrb.mxu1 %v8884_v58  ;;  %v8967_v57 = vld [vmem:[%s11932_s3 + $0x5e0] sm:$0xff]  ;;  %v8942_v58 = vld [vmem:[%s11932_s3 + $0x518] sm:$0xff] }
 0x168   :  { %5802 = vmatpush.bf16.msrb.mxu2 %v8892_v59  ;;  %5815 = vmatpush.bf16.msrb.mxu3 %v8900_v60  ;;  %v8950_v59 = vld [vmem:[%s11932_s3 + $0x558] sm:$0xff] }
 0x169   :  { %v8958_v60 = vld [vmem:[%s11932_s3 + $0x598] sm:$0xff] }
 0x16b   :  { %5777 = vmatpush.bf16.msrb.mxu0 %v8875_v61  ;;  %5790 = vmatpush.bf16.msrb.mxu1 %v8883_v62  ;;  %v8966_v61 = vld [vmem:[%s11932_s3 + $0x5d8] sm:$0xff]  ;;  %v8941_v62 = vld [vmem:[%s11932_s3 + $0x510] sm:$0xff] }
 0x16c   :  { %5803 = vmatpush.bf16.msrb.mxu2 %v8891_v63  ;;  %5816 = vmatpush.bf16.msrb.mxu3 %v8899_v0  ;;  %v8949_v63 = vld [vmem:[%s11932_s3 + $0x550] sm:$0xff] }
 0x16d   :  { %v8957_v0 = vld [vmem:[%s11932_s3 + $0x590] sm:$0xff] }
 0x16e   :  { %5778 = vmatmul.bf16.vlgmr.msrb.gmra.mxu0 %v10618_v7  ;;  %5791 = vmatmul.bf16.vlgmr.msrb.gmra.mxu1 %v10622_v31  ;;  %v8970_v7 = vld [vmem:[%s11932_s3 + $0x5f8] sm:$0xff] }
 0x16f   :  { %5822 = vmatpush.bf16.msra.mxu0 %v8914_v1  ;;  %5835 = vmatpush.bf16.msra.mxu1 %v8922_v2  ;;  %v2422_v31 = vld [vmem:[#allocation1 + $0x12] sm:$0xff]  ;;  %v8940_v2 = vld [vmem:[%s11932_s3 + $0x508] sm:$0xff] }
 0x170   :  { %5848 = vmatpush.bf16.msra.mxu2 %v8930_v3  ;;  %5861 = vmatpush.bf16.msra.mxu3 %v8938_v4  ;;  %v8965_v1 = vld [vmem:[%s11932_s3 + $0x5d0] sm:$0xff]  ;;  %v8948_v3 = vld [vmem:[%s11932_s3 + $0x548] sm:$0xff] }
 0x171   :  { %5804 = vmatmul.bf16.vlgmr.msrb.gmra.mxu2 %v10620_v8  ;;  %5817 = vmatmul.bf16.vlgmr.msrb.gmra.mxu3 %v10624_v32  ;;  %v2420_v8 = vld [vmem:[#allocation1] sm:$0xff]  ;;  %v2421_v32 = vld [vmem:[#allocation1 + $0x9] sm:$0xff] }
 0x172   :  { %2429 = vst [vmem:[#allocation1] ss:$9 sm:$0xff] %v1365_v41  ;;  %v8956_v4 = vld [vmem:[%s11932_s3 + $0x588] sm:$0xff] }
 0x173   :  { %5823 = vmatpush.bf16.msra.mxu0 %v8913_v5  ;;  %5836 = vmatpush.bf16.msra.mxu1 %v8921_v6  ;;  %v8964_v5 = vld [vmem:[%s11932_s3 + $0x5c8] sm:$0xff]  ;;  %v8939_v6 = vld [vmem:[%s11932_s3 + $0x500] sm:$0xff] }
 0x174   :  { %5849 = vmatpush.bf16.msra.mxu2 %v8929_v9  ;;  %5862 = vmatpush.bf16.msra.mxu3 %v8937_v10  ;;  %v8947_v9 = vld [vmem:[%s11932_s3 + $0x540] sm:$0xff] }
 0x175   :  { %v8955_v10 = vld [vmem:[%s11932_s3 + $0x580] sm:$0xff] }
 0x177   :  { %5824 = vmatpush.bf16.msra.mxu0 %v8912_v11  ;;  %5837 = vmatpush.bf16.msra.mxu1 %v8920_v12  ;;  %v8963_v11 = vld [vmem:[%s11932_s3 + $0x5c0] sm:$0xff]  ;;  %v8978_v12 = vld [vmem:[%s11932_s3 + $0x638] sm:$0xff] }
 0x178   :  { %5850 = vmatpush.bf16.msra.mxu2 %v8928_v13  ;;  %5863 = vmatpush.bf16.msra.mxu3 %v8936_v14  ;;  %v8986_v13 = vld [vmem:[%s11932_s3 + $0x678] sm:$0xff] }
 0x179   :  { %v8994_v14 = vld [vmem:[%s11932_s3 + $0x6b8] sm:$0xff] }
 0x17b   :  { %5825 = vmatpush.bf16.msra.mxu0 %v8911_v17  ;;  %5838 = vmatpush.bf16.msra.mxu1 %v8919_v18  ;;  %v9002_v17 = vld [vmem:[%s11932_s3 + $0x6f8] sm:$0xff]  ;;  %v8977_v18 = vld [vmem:[%s11932_s3 + $0x630] sm:$0xff] }
 0x17c   :  { %5851 = vmatpush.bf16.msra.mxu2 %v8927_v19  ;;  %5864 = vmatpush.bf16.msra.mxu3 %v8935_v20  ;;  %v8985_v19 = vld [vmem:[%s11932_s3 + $0x670] sm:$0xff]  ;;  %v9294_v20 = vld [vmem:[%s11933_s4] ss:$0 sm:$0xff] }
 0x17f   :  { %5826 = vmatpush.bf16.msra.mxu0 %v8910_v21  ;;  %5839 = vmatpush.bf16.msra.mxu1 %v8918_v22  ;;  %v8993_v21 = vld [vmem:[%s11932_s3 + $0x6b0] sm:$0xff] }
 0x180   :  { %5852 = vmatpush.bf16.msra.mxu2 %v8926_v23  ;;  %5865 = vmatpush.bf16.msra.mxu3 %v8934_v24  ;;  %v9001_v22 = vld [vmem:[%s11932_s3 + $0x6f0] sm:$0xff] }
 0x183   :  { %5827 = vmatpush.bf16.msra.mxu0 %v8909_v25  ;;  %5840 = vmatpush.bf16.msra.mxu1 %v8917_v26  ;;  %v8976_v25 = vld [vmem:[%s11932_s3 + $0x628] sm:$0xff] }
 0x184   :  { %5853 = vmatpush.bf16.msra.mxu2 %v8925_v27  ;;  %5866 = vmatpush.bf16.msra.mxu3 %v8933_v28  ;;  %v8984_v26 = vld [vmem:[%s11932_s3 + $0x668] sm:$0xff] }
 0x185   :  { %v8992_v28 = vld [vmem:[%s11932_s3 + $0x6a8] sm:$0xff] }
 0x187   :  { %5828 = vmatpush.bf16.msra.mxu0 %v8908_v29  ;;  %5841 = vmatpush.bf16.msra.mxu1 %v8916_v30  ;;  %v9000_v29 = vld [vmem:[%s11932_s3 + $0x6e8] sm:$0xff] }
 0x188   :  { %5854 = vmatpush.bf16.msra.mxu2 %v8924_v33  ;;  %5867 = vmatpush.bf16.msra.mxu3 %v8932_v34  ;;  %v8975_v33 = vld [vmem:[%s11932_s3 + $0x620] sm:$0xff] }
 0x189   :  { %v8983_v34 = vld [vmem:[%s11932_s3 + $0x660] sm:$0xff] }
 0x18b   :  { %5829 = vmatpush.bf16.msra.mxu0 %v8907_v35  ;;  %5842 = vmatpush.bf16.msra.mxu1 %v8915_v36  ;;  %v8991_v35 = vld [vmem:[%s11932_s3 + $0x6a0] sm:$0xff] }
 0x18c   :  { %5855 = vmatpush.bf16.msra.mxu2 %v8923_v37  ;;  %5868 = vmatpush.bf16.msra.mxu3 %v8931_v38  ;;  %v8999_v36 = vld [vmem:[%s11932_s3 + $0x6e0] sm:$0xff] }
 0x18e   :  { %5830 = vmatmul.bf16.vlgmr.msra.gmra.mxu0 %v2420_v8  ;;  %5843 = vmatmul.bf16.vlgmr.msra.gmra.mxu1 %v2421_v32  ;;  %v8998_v32 = vld [vmem:[%s11932_s3 + $0x6d8] sm:$0xff] }
 0x18f   :  { %5874 = vmatpush.bf16.msrb.mxu0 %v8946_v39  ;;  %5887 = vmatpush.bf16.msrb.mxu1 %v8954_v40 }
 0x190   :  { %5900 = vmatpush.bf16.msrb.mxu2 %v8962_v42  ;;  %5913 = vmatpush.bf16.msrb.mxu3 %v8970_v7  ;;  %v8974_v42 = vld [vmem:[%s11932_s3 + $0x618] sm:$0xff] }
 0x191   :  { %5856 = vmatmul.bf16.vlgmr.msra.gmra.mxu2 %v2422_v31  ;;  %5869 = vmatmul.bf16.vlgmr.msra.gmra.mxu3 %v2423_v53  ;;  %v8982_v7 = vld [vmem:[%s11932_s3 + $0x658] sm:$0xff]  ;;  %v8973_v53 = vld [vmem:[%s11932_s3 + $0x610] sm:$0xff] }
 0x192   :  { %v8990_v31 = vld [vmem:[%s11932_s3 + $0x698] sm:$0xff] }
 0x193   :  { %5875 = vmatpush.bf16.msrb.mxu0 %v8945_v54  ;;  %5888 = vmatpush.bf16.msrb.mxu1 %v8953_v15  ;;  %v8981_v54 = vld [vmem:[%s11932_s3 + $0x650] sm:$0xff] }
 0x194   :  { %5901 = vmatpush.bf16.msrb.mxu2 %v8961_v16  ;;  %5914 = vmatpush.bf16.msrb.mxu3 %v8969_v43  ;;  %v8989_v15 = vld [vmem:[%s11932_s3 + $0x690] sm:$0xff] }
 0x195   :  { %v8997_v16 = vld [vmem:[%s11932_s3 + $0x6d0] sm:$0xff] }
 0x197   :  { %5876 = vmatpush.bf16.msrb.mxu0 %v8944_v48  ;;  %5889 = vmatpush.bf16.msrb.mxu1 %v8952_v49  ;;  %v8980_v48 = vld [vmem:[%s11932_s3 + $0x648] sm:$0xff] }
 0x198   :  { %5902 = vmatpush.bf16.msrb.mxu2 %v8960_v50  ;;  %5915 = vmatpush.bf16.msrb.mxu3 %v8968_v51  ;;  %v8988_v50 = vld [vmem:[%s11932_s3 + $0x688] sm:$0xff] }
 0x199   :  { %v8996_v51 = vld [vmem:[%s11932_s3 + $0x6c8] sm:$0xff] }
 0x19b   :  { %5877 = vmatpush.bf16.msrb.mxu0 %v8943_v52  ;;  %5890 = vmatpush.bf16.msrb.mxu1 %v8951_v55  ;;  %v8971_v55 = vld [vmem:[%s11932_s3 + $0x600] sm:$0xff] }
 0x19c   :  { %5903 = vmatpush.bf16.msrb.mxu2 %v8959_v56  ;;  %5916 = vmatpush.bf16.msrb.mxu3 %v8967_v57  ;;  %v8979_v56 = vld [vmem:[%s11932_s3 + $0x640] sm:$0xff] }
 0x19d   :  { %v8987_v57 = vld [vmem:[%s11932_s3 + $0x680] sm:$0xff] }
 0x19f   :  { %5878 = vmatpush.bf16.msrb.mxu0 %v8942_v58  ;;  %5891 = vmatpush.bf16.msrb.mxu1 %v8950_v59  ;;  %v8995_v58 = vld [vmem:[%s11932_s3 + $0x6c0] sm:$0xff]  ;;  %v9010_v59 = vld [vmem:[%s11932_s3 + $0x738] sm:$0xff] }
 0x1a0   :  { %5904 = vmatpush.bf16.msrb.mxu2 %v8958_v60  ;;  %5917 = vmatpush.bf16.msrb.mxu3 %v8966_v61  ;;  %v9018_v60 = vld [vmem:[%s11932_s3 + $0x778] sm:$0xff] }
 0x1a3   :  { %5879 = vmatpush.bf16.msrb.mxu0 %v8941_v62  ;;  %5892 = vmatpush.bf16.msrb.mxu1 %v8949_v63  ;;  %v1366_v63 = vld [vmem:[#allocation2 + $0x20] sm:$0xff] }
 0x1a4   :  { %5905 = vmatpush.bf16.msrb.mxu2 %v8957_v0  ;;  %5918 = vmatpush.bf16.msrb.mxu3 %v8965_v1  ;;  %v9026_v0 = vld [vmem:[%s11932_s3 + $0x7b8] sm:$0xff] }
 0x1a5   :  { %v9034_v1 = vld [vmem:[%s11932_s3 + $0x7f8] sm:$0xff] }
 0x1a7   :  { %5880 = vmatpush.bf16.msrb.mxu0 %v8940_v2  ;;  %5893 = vmatpush.bf16.msrb.mxu1 %v8948_v3 }
 0x1a8   :  { %5906 = vmatpush.bf16.msrb.mxu2 %v8956_v4  ;;  %5919 = vmatpush.bf16.msrb.mxu3 %v8964_v5  ;;  %v2430_v5 = vld [vmem:[#allocation1] sm:$0xff] }
 0x1aa   :  { %v5623_v23 = vpop.f32.mrf.mxu0  ;;  %v5636_v24 = vpop.f32.mrf.mxu1 }
 0x1ab   :  { %5881 = vmatpush.bf16.msrb.mxu0 %v8939_v6  ;;  %5894 = vmatpush.bf16.msrb.mxu1 %v8947_v9  ;;  %v5624_v27 = vadd.f32 %v9294_v20, %v5623_v23  ;;  %v2432_v6 = vld [vmem:[#allocation1 + $0x12] sm:$0xff]  ;;  %v2431_v9 = vld [vmem:[#allocation1 + $0x9] sm:$0xff] }
 0x1ac   :  { %5907 = vmatpush.bf16.msrb.mxu2 %v8955_v10  ;;  %5920 = vmatpush.bf16.msrb.mxu3 %v8963_v11  ;;  %v2433_v11 = vld [vmem:[#allocation1 + $0x1b] sm:$0xff]  ;;  %v11033_v20 = vld [vmem:[#allocation1 + $0x2d] sm:$0xff] }
 0x1ad   :  { %v5637_v30 = vadd.f32 %v5636_v24, %v5624_v27  ;;  %v9016_v23 = vld [vmem:[%s11932_s3 + $0x768] sm:$0xff] }
 0x1ae   :  { %5882 = vmatmul.bf16.vlgmr.msrb.gmra.mxu0 %v10822_v44  ;;  %5895 = vmatmul.bf16.vlgmr.msrb.gmra.mxu1 %v10826_v46  ;;  %v9032_v27 = vld [vmem:[%s11932_s3 + $0x7e8] sm:$0xff] }
 0x1af   :  { %5926 = vmatpush.bf16.msra.mxu0 %v8978_v12  ;;  %5939 = vmatpush.bf16.msra.mxu1 %v8986_v13  ;;  %v9009_v12 = vld [vmem:[%s11932_s3 + $0x730] sm:$0xff] }
 0x1b0   :  { %5952 = vmatpush.bf16.msra.mxu2 %v8994_v14  ;;  %5965 = vmatpush.bf16.msra.mxu3 %v9002_v17  ;;  %v9017_v13 = vld [vmem:[%s11932_s3 + $0x770] sm:$0xff] }
 0x1b1   :  { %5908 = vmatmul.bf16.vlgmr.msrb.gmra.mxu2 %v10824_v45  ;;  %5921 = vmatmul.bf16.vlgmr.msrb.gmra.mxu3 %v10828_v47  ;;  %v5649_v37 = vpop.f32.mrf.mxu2  ;;  %v5662_v38 = vpop.f32.mrf.mxu3  ;;  %v8972_v47 = vld [vmem:[%s11932_s3 + $0x608] sm:$0xff]  ;;  %v9025_v14 = vld [vmem:[%s11932_s3 + $0x7b0] sm:$0xff] }
 0x1b2   :  { %v5650_v39 = vadd.f32 %v5649_v37, %v5637_v30  ;;  %v5625_v40 = vpop.f32.mrf.mxu0  ;;  %v5638_v41 = vpop.f32.mrf.mxu1  ;;  %v9033_v17 = vld [vmem:[%s11932_s3 + $0x7f0] sm:$0xff]  ;;  %v9007_v30 = vld [vmem:[%s11932_s3 + $0x720] sm:$0xff] }
 0x1b3   :  { %5927 = vmatpush.bf16.msra.mxu0 %v8977_v18  ;;  %5940 = vmatpush.bf16.msra.mxu1 %v8985_v19  ;;  %v11029_v18 = vld [vmem:[#allocation1 + $0x24] sm:$0xff]  ;;  %v11031_v19 = vld [vmem:[#allocation1 + $0x36] sm:$0xff] }
 0x1b4   :  { %5953 = vmatpush.bf16.msra.mxu2 %v8993_v21  ;;  %5966 = vmatpush.bf16.msra.mxu3 %v9001_v22  ;;  %v5663_v8 = vadd.f32 %v5662_v38, %v5650_v39  ;;  %v11035_v21 = vld [vmem:[#allocation1 + $0x3f] sm:$0xff]  ;;  %v9008_v22 = vld [vmem:[%s11932_s3 + $0x728] sm:$0xff] }
 0x1b5   :  { %2439 = vst [vmem:[#allocation1] ss:$9 sm:$0xff] %v1366_v63  ;;  %v9006_v38 = vld [vmem:[%s11932_s3 + $0x718] sm:$0xff]  ;;  %v9065_v63 = vld [vmem:[%s11932_s3 + $0x8f0] sm:$0xff] }
 0x1b6   :  { %v9014_v39 = vld [vmem:[%s11932_s3 + $0x758] sm:$0xff] }
 0x1b7   :  { %5928 = vmatpush.bf16.msra.mxu0 %v8976_v25  ;;  %5941 = vmatpush.bf16.msra.mxu1 %v8984_v26  ;;  %v9024_v26 = vld [vmem:[%s11932_s3 + $0x7a8] sm:$0xff]  ;;  %v9022_v40 = vld [vmem:[%s11932_s3 + $0x798] sm:$0xff] }
 0x1b8   :  { %5954 = vmatpush.bf16.msra.mxu2 %v8992_v28  ;;  %5967 = vmatpush.bf16.msra.mxu3 %v9000_v29  ;;  %v9030_v41 = vld [vmem:[%s11932_s3 + $0x7d8] sm:$0xff] }
 0x1b9   :  { %v5651_v43 = vpop.f32.mrf.mxu2  ;;  %v5664_v44 = vpop.f32.mrf.mxu3 }
 0x1ba   :  { %v5675_v45 = vpop.f32.mrf.mxu0  ;;  %v5688_v46 = vpop.f32.mrf.mxu1  ;;  %v9029_v43 = vld [vmem:[%s11932_s3 + $0x7d0] sm:$0xff]  ;;  %v9004_v44 = vld [vmem:[%s11932_s3 + $0x708] sm:$0xff] }
 0x1bb   :  { %5929 = vmatpush.bf16.msra.mxu0 %v8975_v33  ;;  %5942 = vmatpush.bf16.msra.mxu1 %v8983_v34  ;;  %v5676_v49 = vadd.f32 %v5675_v45, %v5663_v8  ;;  %v9015_v33 = vld [vmem:[%s11932_s3 + $0x760] sm:$0xff]  ;;  %v9012_v45 = vld [vmem:[%s11932_s3 + $0x748] sm:$0xff] }
 0x1bc   :  { %5955 = vmatpush.bf16.msra.mxu2 %v8991_v35  ;;  %5968 = vmatpush.bf16.msra.mxu3 %v8999_v36  ;;  %v9023_v35 = vld [vmem:[%s11932_s3 + $0x7a0] sm:$0xff] }
 0x1bd   :  { %v5689_v52 = vadd.f32 %v5688_v46, %v5676_v49  ;;  %v9031_v36 = vld [vmem:[%s11932_s3 + $0x7e0] sm:$0xff]  ;;  %v9020_v46 = vld [vmem:[%s11932_s3 + $0x788] sm:$0xff] }
 0x1bf   :  { %5930 = vmatpush.bf16.msra.mxu0 %v8974_v42  ;;  %5943 = vmatpush.bf16.msra.mxu1 %v8982_v7 }
 0x1c0   :  { %5956 = vmatpush.bf16.msra.mxu2 %v8990_v31  ;;  %5969 = vmatpush.bf16.msra.mxu3 %v8998_v32 }
 0x1c1   :  { %v5701_v61 = vpop.f32.mrf.mxu2  ;;  %v5714_v62 = vpop.f32.mrf.mxu3 }
 0x1c2   :  { %v5702_v2 = vadd.f32 %v5701_v61, %v5689_v52  ;;  %v5677_v3 = vpop.f32.mrf.mxu0  ;;  %v5690_v4 = vpop.f32.mrf.mxu1  ;;  %v9019_v52 = vld [vmem:[%s11932_s3 + $0x780] sm:$0xff]  ;;  %v9049_v61 = vld [vmem:[%s11932_s3 + $0x870] sm:$0xff] }
 0x1c3   :  { %5931 = vmatpush.bf16.msra.mxu0 %v8973_v53  ;;  %5944 = vmatpush.bf16.msra.mxu1 %v8981_v54  ;;  %v9005_v53 = vld [vmem:[%s11932_s3 + $0x710] sm:$0xff]  ;;  %v9064_v3 = vld [vmem:[%s11932_s3 + $0x8e8] sm:$0xff] }
 0x1c4   :  { %5957 = vmatpush.bf16.msra.mxu2 %v8989_v15  ;;  %5970 = vmatpush.bf16.msra.mxu3 %v8997_v16  ;;  %v5715_v10 = vadd.f32 %v5714_v62, %v5702_v2  ;;  %v9013_v54 = vld [vmem:[%s11932_s3 + $0x750] sm:$0xff]  ;;  %v9056_v2 = vld [vmem:[%s11932_s3 + $0x8a8] sm:$0xff] }
 0x1c5   :  { %v9021_v16 = vld [vmem:[%s11932_s3 + $0x790] sm:$0xff] }
 0x1c6   :  { %v9057_v62 = vld [vmem:[%s11932_s3 + $0x8b0] sm:$0xff] }
 0x1c7   :  { %5932 = vmatpush.bf16.msra.mxu0 %v8972_v47  ;;  %5945 = vmatpush.bf16.msra.mxu1 %v8980_v48  ;;  %v9028_v47 = vld [vmem:[%s11932_s3 + $0x7c8] sm:$0xff] }
 0x1c8   :  { %5958 = vmatpush.bf16.msra.mxu2 %v8988_v50  ;;  %5971 = vmatpush.bf16.msra.mxu3 %v8996_v51  ;;  %v9003_v50 = vld [vmem:[%s11932_s3 + $0x700] sm:$0xff] }
 0x1c9   :  { %v5703_v24 = vpop.f32.mrf.mxu2  ;;  %v5716_v25 = vpop.f32.mrf.mxu3  ;;  %v9011_v51 = vld [vmem:[%s11932_s3 + $0x740] sm:$0xff] }
 0x1ca   :  { %v9037_v25 = vld [vmem:[%s11932_s3 + $0x810] sm:$0xff] }
 0x1cb   :  { %5933 = vmatpush.bf16.msra.mxu0 %v8971_v55  ;;  %5946 = vmatpush.bf16.msra.mxu1 %v8979_v56  ;;  %v5727_v28 = vpop.f32.mrf.mxu0  ;;  %v5740_v34 = vpop.f32.mrf.mxu1  ;;  %v9027_v55 = vld [vmem:[%s11932_s3 + $0x7c0] sm:$0xff]  ;;  %v9042_v56 = vld [vmem:[%s11932_s3 + $0x838] sm:$0xff] }
 0x1cc   :  { %5959 = vmatpush.bf16.msra.mxu2 %v8987_v57  ;;  %5972 = vmatpush.bf16.msra.mxu3 %v8995_v58  ;;  %v5728_v29 = vadd.f32 %v5727_v28, %v5715_v10  ;;  %v9050_v57 = vld [vmem:[%s11932_s3 + $0x878] sm:$0xff]  ;;  %v9053_v28 = vld [vmem:[%s11932_s3 + $0x890] sm:$0xff] }
 0x1cd   :  { %v9058_v58 = vld [vmem:[%s11932_s3 + $0x8b8] sm:$0xff] }
 0x1ce   :  { %5934 = vmatmul.bf16.vlgmr.msra.gmra.mxu0 %v2430_v5  ;;  %5947 = vmatmul.bf16.vlgmr.msra.gmra.mxu1 %v2431_v9  ;;  %v5741_v37 = vadd.f32 %v5740_v34, %v5728_v29  ;;  %v9047_v9 = vld [vmem:[%s11932_s3 + $0x860] sm:$0xff]  ;;  %v9061_v29 = vld [vmem:[%s11932_s3 + $0x8d0] sm:$0xff]  ;;  %v9052_v34 = vld [vmem:[%s11932_s3 + $0x888] sm:$0xff] }
 0x1cf   :  { %5978 = vmatpush.bf16.msrb.mxu0 %v9010_v59  ;;  %5991 = vmatpush.bf16.msrb.mxu1 %v9018_v60  ;;  %v9066_v59 = vld [vmem:[%s11932_s3 + $0x8f8] sm:$0xff]  ;;  %v9041_v60 = vld [vmem:[%s11932_s3 + $0x830] sm:$0xff] }
 0x1d0   :  { %6004 = vmatpush.bf16.msrb.mxu2 %v9026_v0  ;;  %6017 = vmatpush.bf16.msrb.mxu3 %v9034_v1  ;;  %v9040_v0 = vld [vmem:[%s11932_s3 + $0x828] sm:$0xff] }
 0x1d1   :  { %5960 = vmatmul.bf16.vlgmr.msra.gmra.mxu2 %v2432_v6  ;;  %5973 = vmatmul.bf16.vlgmr.msra.gmra.mxu3 %v2433_v11  ;;  %v9048_v1 = vld [vmem:[%s11932_s3 + $0x868] sm:$0xff]  ;;  %v9039_v6 = vld [vmem:[%s11932_s3 + $0x820] sm:$0xff] }
 0x1d2   :  { %v9055_v11 = vld [vmem:[%s11932_s3 + $0x8a0] sm:$0xff] }
 0x1d3   :  { %5979 = vmatpush.bf16.msrb.mxu0 %v9009_v12  ;;  %5992 = vmatpush.bf16.msrb.mxu1 %v9017_v13  ;;  %v5729_v31 = vpop.f32.mrf.mxu0  ;;  %v5742_v15 = vpop.f32.mrf.mxu1  ;;  %v9063_v12 = vld [vmem:[%s11932_s3 + $0x8e0] sm:$0xff] }
 0x1d4   :  { %6005 = vmatpush.bf16.msrb.mxu2 %v9025_v14  ;;  %6018 = vmatpush.bf16.msrb.mxu3 %v9033_v17  ;;  %v5753_v42 = vpop.f32.mrf.mxu2  ;;  %v5766_v8 = vpop.f32.mrf.mxu3  ;;  %v9038_v14 = vld [vmem:[%s11932_s3 + $0x818] sm:$0xff]  ;;  %v2441_v15 = vld [vmem:[#allocation1 + $0x9] sm:$0xff] }
 0x1d5   :  { %v5754_v7 = vadd.f32 %v5753_v42, %v5741_v37  ;;  %v9046_v17 = vld [vmem:[%s11932_s3 + $0x858] sm:$0xff] }
 0x1d6   :  { %v9074_v42 = vld [vmem:[%s11932_s3 + $0x938] sm:$0xff] }
 0x1d7   :  { %5980 = vmatpush.bf16.msrb.mxu0 %v9008_v22  ;;  %5993 = vmatpush.bf16.msrb.mxu1 %v9016_v23  ;;  %v5767_v32 = vadd.f32 %v5766_v8, %v5754_v7  ;;  %v9082_v7 = vld [vmem:[%s11932_s3 + $0x978] sm:$0xff]  ;;  %v1367_v8 = vld [vmem:[#allocation2 + $0x28] sm:$0xff] }
 0x1d8   :  { %6006 = vmatpush.bf16.msrb.mxu2 %v9024_v26  ;;  %6019 = vmatpush.bf16.msrb.mxu3 %v9032_v27  ;;  %v9045_v26 = vld [vmem:[%s11932_s3 + $0x850] sm:$0xff]  ;;  %v9090_v31 = vld [vmem:[%s11932_s3 + $0x9b8] sm:$0xff] }
 0x1db   :  { %5981 = vmatpush.bf16.msrb.mxu0 %v9007_v30  ;;  %5994 = vmatpush.bf16.msrb.mxu1 %v9015_v33  ;;  %v9036_v30 = vld [vmem:[%s11932_s3 + $0x808] sm:$0xff] }
 0x1dc   :  { %6007 = vmatpush.bf16.msrb.mxu2 %v9023_v35  ;;  %6020 = vmatpush.bf16.msrb.mxu3 %v9031_v36  ;;  %v5755_v48 = vpop.f32.mrf.mxu2  ;;  %v5768_v49 = vpop.f32.mrf.mxu3  ;;  %v9044_v33 = vld [vmem:[%s11932_s3 + $0x848] sm:$0xff] }
 0x1dd   :  { %v9060_v35 = vld [vmem:[%s11932_s3 + $0x8c8] sm:$0xff]  ;;  %v11237_v48 = vld [vmem:[#allocation1 + $0x36] sm:$0xff] }
 0x1de   :  { %v11239_v49 = vld [vmem:[#allocation1 + $0x2d] sm:$0xff] }
 0x1df   :  { %5982 = vmatpush.bf16.msrb.mxu0 %v9006_v38  ;;  %5995 = vmatpush.bf16.msrb.mxu1 %v9014_v39  ;;  %v9035_v38 = vld [vmem:[%s11932_s3 + $0x800] sm:$0xff] }
 0x1e0   :  { %6008 = vmatpush.bf16.msrb.mxu2 %v9022_v40  ;;  %6021 = vmatpush.bf16.msrb.mxu3 %v9030_v41  ;;  %v9043_v39 = vld [vmem:[%s11932_s3 + $0x840] sm:$0xff] }
 0x1e1   :  { %v9051_v40 = vld [vmem:[%s11932_s3 + $0x880] sm:$0xff] }
 0x1e2   :  { %v9059_v41 = vld [vmem:[%s11932_s3 + $0x8c0] sm:$0xff] }
 0x1e3   :  { %5983 = vmatpush.bf16.msrb.mxu0 %v9005_v53  ;;  %5996 = vmatpush.bf16.msrb.mxu1 %v9013_v54  ;;  %v2440_v53 = vld [vmem:[#allocation1] sm:$0xff]  ;;  %v2442_v54 = vld [vmem:[#allocation1 + $0x12] sm:$0xff] }
 0x1e4   :  { %6009 = vmatpush.bf16.msrb.mxu2 %v9021_v16  ;;  %6022 = vmatpush.bf16.msrb.mxu3 %v9029_v43  ;;  %v2443_v16 = vld [vmem:[#allocation1 + $0x1b] sm:$0xff]  ;;  %v9073_v43 = vld [vmem:[%s11932_s3 + $0x930] sm:$0xff] }
 0x1e7   :  { %5984 = vmatpush.bf16.msrb.mxu0 %v9004_v44  ;;  %5997 = vmatpush.bf16.msrb.mxu1 %v9012_v45  ;;  %v9081_v44 = vld [vmem:[%s11932_s3 + $0x970] sm:$0xff] }
 0x1e8   :  { %6010 = vmatpush.bf16.msrb.mxu2 %v9020_v46  ;;  %6023 = vmatpush.bf16.msrb.mxu3 %v9028_v47  ;;  %v9089_v45 = vld [vmem:[%s11932_s3 + $0x9b0] sm:$0xff]  ;;  %v11235_v47 = vld [vmem:[#allocation1 + $0x24] sm:$0xff] }
 0x1e9   :  { %v9097_v46 = vld [vmem:[%s11932_s3 + $0x9f0] sm:$0xff] }
 0x1eb   :  { %5985 = vmatpush.bf16.msrb.mxu0 %v9003_v50  ;;  %5998 = vmatpush.bf16.msrb.mxu1 %v9011_v51  ;;  %v5779_v4 = vpop.f32.mrf.mxu0  ;;  %v5792_v10 = vpop.f32.mrf.mxu1  ;;  %v11241_v50 = vld [vmem:[#allocation1 + $0x3f] sm:$0xff]  ;;  %v9072_v51 = vld [vmem:[%s11932_s3 + $0x928] sm:$0xff] }
 0x1ec   :  { %6011 = vmatpush.bf16.msrb.mxu2 %v9019_v52  ;;  %6024 = vmatpush.bf16.msrb.mxu3 %v9027_v55  ;;  %v5780_v5 = vadd.f32 %v5779_v4, %v5767_v32  ;;  %v9098_v32 = vld [vmem:[%s11932_s3 + $0x9f8] sm:$0xff]  ;;  %2449 = vst [vmem:[#allocation1] ss:$9 sm:$0xff] %v1367_v8  ;;  %v9080_v52 = vld [vmem:[%s11932_s3 + $0x968] sm:$0xff] }
 0x1ed   :  { %v9088_v55 = vld [vmem:[%s11932_s3 + $0x9a8] sm:$0xff]  ;;  %v9094_v4 = vld [vmem:[%s11932_s3 + $0x9d8] sm:$0xff] }
 0x1ee   :  { %5986 = vmatmul.bf16.vlgmr.msrb.gmra.mxu0 %v11029_v18  ;;  %5999 = vmatmul.bf16.vlgmr.msrb.gmra.mxu1 %v11033_v20  ;;  %v5793_v13 = vadd.f32 %v5792_v10, %v5780_v5  ;;  %v9054_v18 = vld [vmem:[%s11932_s3 + $0x898] sm:$0xff] }
 0x1ef   :  { %6030 = vmatpush.bf16.msra.mxu0 %v9042_v56  ;;  %6043 = vmatpush.bf16.msra.mxu1 %v9050_v57  ;;  %v9096_v56 = vld [vmem:[%s11932_s3 + $0x9e8] sm:$0xff] }
 0x1f0   :  { %6056 = vmatpush.bf16.msra.mxu2 %v9058_v58  ;;  %6069 = vmatpush.bf16.msra.mxu3 %v9066_v59  ;;  %v9071_v59 = vld [vmem:[%s11932_s3 + $0x920] sm:$0xff] }
 0x1f1   :  { %6012 = vmatmul.bf16.vlgmr.msrb.gmra.mxu2 %v11031_v19  ;;  %6025 = vmatmul.bf16.vlgmr.msrb.gmra.mxu3 %v11035_v21  ;;  %v9062_v19 = vld [vmem:[%s11932_s3 + $0x8d8] sm:$0xff] }
 0x1f3   :  { %6031 = vmatpush.bf16.msra.mxu0 %v9041_v60  ;;  %6044 = vmatpush.bf16.msra.mxu1 %v9049_v61  ;;  %v5781_v23 = vpop.f32.mrf.mxu0  ;;  %v5794_v27 = vpop.f32.mrf.mxu1  ;;  %v9079_v60 = vld [vmem:[%s11932_s3 + $0x960] sm:$0xff] }
 0x1f4   :  { %6057 = vmatpush.bf16.msra.mxu2 %v9057_v62  ;;  %6070 = vmatpush.bf16.msra.mxu3 %v9065_v63  ;;  %v5805_v20 = vpop.f32.mrf.mxu2  ;;  %v5818_v22 = vpop.f32.mrf.mxu3  ;;  %v9087_v62 = vld [vmem:[%s11932_s3 + $0x9a0] sm:$0xff] }
 0x1f5   :  { %v5806_v21 = vadd.f32 %v5805_v20, %v5793_v13  ;;  %v9095_v63 = vld [vmem:[%s11932_s3 + $0x9e0] sm:$0xff]  ;;  %v9077_v13 = vld [vmem:[%s11932_s3 + $0x950] sm:$0xff]  ;;  %v9076_v20 = vld [vmem:[%s11932_s3 + $0x948] sm:$0xff] }
 0x1f6   :  { %v9083_v27 = vld [vmem:[%s11932_s3 + $0x980] sm:$0xff] }
 0x1f7   :  { %6032 = vmatpush.bf16.msra.mxu0 %v9040_v0  ;;  %6045 = vmatpush.bf16.msra.mxu1 %v9048_v1  ;;  %v11173_v24 = vadd.f32 %v5818_v22, %v5806_v21  ;;  %v9070_v1 = vld [vmem:[%s11932_s3 + $0x918] sm:$0xff]  ;;  %v9084_v21 = vld [vmem:[%s11932_s3 + $0x988] sm:$0xff] }
 0x1f8   :  { %6058 = vmatpush.bf16.msra.mxu2 %v9056_v2  ;;  %6071 = vmatpush.bf16.msra.mxu3 %v9064_v3  ;;  %v9078_v2 = vld [vmem:[%s11932_s3 + $0x958] sm:$0xff]  ;;  %v9092_v22 = vld [vmem:[%s11932_s3 + $0x9c8] sm:$0xff] }
 0x1f9   :  { %v9086_v3 = vld [vmem:[%s11932_s3 + $0x998] sm:$0xff] }
 0x1fb   :  { %6033 = vmatpush.bf16.msra.mxu0 %v9039_v6  ;;  %6046 = vmatpush.bf16.msra.mxu1 %v9047_v9 }
 0x1fc   :  { %6059 = vmatpush.bf16.msra.mxu2 %v9055_v11  ;;  %6072 = vmatpush.bf16.msra.mxu3 %v9063_v12  ;;  %v5807_v36 = vpop.f32.mrf.mxu2  ;;  %v5820_v37 = vpop.f32.mrf.mxu3  ;;  %v9069_v12 = vld [vmem:[%s11932_s3 + $0x910] sm:$0xff] }
 0x1fd   :  { %v9113_v36 = vld [vmem:[%s11932_s3 + $0xa70] sm:$0xff] }
 0x1fe   :  { %v9121_v37 = vld [vmem:[%s11932_s3 + $0xab0] sm:$0xff] }
 0x1ff   :  { %6034 = vmatpush.bf16.msra.mxu0 %v9038_v14  ;;  %6047 = vmatpush.bf16.msra.mxu1 %v9046_v17  ;;  %v9085_v17 = vld [vmem:[%s11932_s3 + $0x990] sm:$0xff] }
 0x200   :  { %6060 = vmatpush.bf16.msra.mxu2 %v9054_v18  ;;  %6073 = vmatpush.bf16.msra.mxu3 %v9062_v19  ;;  %v9093_v18 = vld [vmem:[%s11932_s3 + $0x9d0] sm:$0xff]  ;;  %v9068_v19 = vld [vmem:[%s11932_s3 + $0x908] sm:$0xff] }
 0x203   :  { %6035 = vmatpush.bf16.msra.mxu0 %v9037_v25  ;;  %6048 = vmatpush.bf16.msra.mxu1 %v9045_v26  ;;  %v9067_v25 = vld [vmem:[%s11932_s3 + $0x900] sm:$0xff] }
 0x204   :  { %6061 = vmatpush.bf16.msra.mxu2 %v9053_v28  ;;  %6074 = vmatpush.bf16.msra.mxu3 %v9061_v29  ;;  %v9075_v26 = vld [vmem:[%s11932_s3 + $0x940] sm:$0xff]  ;;  %v9106_v29 = vld [vmem:[%s11932_s3 + $0xa38] sm:$0xff] }
 0x205   :  { %v9091_v28 = vld [vmem:[%s11932_s3 + $0x9c0] sm:$0xff] }
 0x207   :  { %6036 = vmatpush.bf16.msra.mxu0 %v9036_v30  ;;  %6049 = vmatpush.bf16.msra.mxu1 %v9044_v33  ;;  %v9114_v30 = vld [vmem:[%s11932_s3 + $0xa78] sm:$0xff] }
 0x208   :  { %6062 = vmatpush.bf16.msra.mxu2 %v9052_v34  ;;  %6075 = vmatpush.bf16.msra.mxu3 %v9060_v35  ;;  %v9122_v33 = vld [vmem:[%s11932_s3 + $0xab8] sm:$0xff]  ;;  %v9105_v35 = vld [vmem:[%s11932_s3 + $0xa30] sm:$0xff] }
 0x209   :  { %v9130_v34 = vld [vmem:[%s11932_s3 + $0xaf8] sm:$0xff] }
 0x20b   :  { %6037 = vmatpush.bf16.msra.mxu0 %v9035_v38  ;;  %6050 = vmatpush.bf16.msra.mxu1 %v9043_v39  ;;  %v5831_v57 = vpop.f32.mrf.mxu0  ;;  %v5844_v61 = vpop.f32.mrf.mxu1  ;;  %v9129_v38 = vld [vmem:[%s11932_s3 + $0xaf0] sm:$0xff]  ;;  %v9104_v39 = vld [vmem:[%s11932_s3 + $0xa28] sm:$0xff] }
 0x20c   :  { %6063 = vmatpush.bf16.msra.mxu2 %v9051_v40  ;;  %6076 = vmatpush.bf16.msra.mxu3 %v9059_v41  ;;  %v5832_v58 = vadd.f32 %v5831_v57, %v11173_v24  ;;  %v9112_v40 = vld [vmem:[%s11932_s3 + $0xa68] sm:$0xff]  ;;  %v9117_v57 = vld [vmem:[%s11932_s3 + $0xa90] sm:$0xff] }
 0x20d   :  { %v9120_v41 = vld [vmem:[%s11932_s3 + $0xaa8] sm:$0xff] }
 0x20e   :  { %6038 = vmatmul.bf16.vlgmr.msra.gmra.mxu0 %v2440_v53  ;;  %6051 = vmatmul.bf16.vlgmr.msra.gmra.mxu1 %v2441_v15  ;;  %v5845_v0 = vadd.f32 %v5844_v61, %v5832_v58  ;;  %v9127_v15 = vld [vmem:[%s11932_s3 + $0xae0] sm:$0xff]  ;;  %v9125_v58 = vld [vmem:[%s11932_s3 + $0xad0] sm:$0xff]  ;;  %v9116_v61 = vld [vmem:[%s11932_s3 + $0xa88] sm:$0xff] }
 0x20f   :  { %6082 = vmatpush.bf16.msrb.mxu0 %v9074_v42  ;;  %6095 = vmatpush.bf16.msrb.mxu1 %v9082_v7  ;;  %v9128_v42 = vld [vmem:[%s11932_s3 + $0xae8] sm:$0xff] }
 0x210   :  { %6108 = vmatpush.bf16.msrb.mxu2 %v9090_v31  ;;  %6121 = vmatpush.bf16.msrb.mxu3 %v9098_v32  ;;  %v9103_v31 = vld [vmem:[%s11932_s3 + $0xa20] sm:$0xff] }
 0x211   :  { %6064 = vmatmul.bf16.vlgmr.msra.gmra.mxu2 %v2442_v54  ;;  %6077 = vmatmul.bf16.vlgmr.msra.gmra.mxu3 %v2443_v16  ;;  %v9111_v32 = vld [vmem:[%s11932_s3 + $0xa60] sm:$0xff] }
 0x212   :  { %v9119_v54 = vld [vmem:[%s11932_s3 + $0xaa0] sm:$0xff] }
 0x213   :  { %6083 = vmatpush.bf16.msrb.mxu0 %v9073_v43  ;;  %6096 = vmatpush.bf16.msrb.mxu1 %v9081_v44  ;;  %v5833_v10 = vpop.f32.mrf.mxu0  ;;  %v5846_v14 = vpop.f32.mrf.mxu1  ;;  %v9102_v43 = vld [vmem:[%s11932_s3 + $0xa18] sm:$0xff] }
 0x214   :  { %6109 = vmatpush.bf16.msrb.mxu2 %v9089_v45  ;;  %6122 = vmatpush.bf16.msrb.mxu3 %v9097_v46  ;;  %v5857_v5 = vpop.f32.mrf.mxu2  ;;  %v5870_v9 = vpop.f32.mrf.mxu3  ;;  %v9110_v44 = vld [vmem:[%s11932_s3 + $0xa58] sm:$0xff]  ;;  %v2451_v14 = vld [vmem:[#allocation1 + $0x9] sm:$0xff] }
 0x215   :  { %v5858_v6 = vadd.f32 %v5857_v5, %v5845_v0  ;;  %v9118_v45 = vld [vmem:[%s11932_s3 + $0xa98] sm:$0xff] }
 0x216   :  { %v9126_v46 = vld [vmem:[%s11932_s3 + $0xad8] sm:$0xff] }
 0x217   :  { %6084 = vmatpush.bf16.msrb.mxu0 %v9072_v51  ;;  %6097 = vmatpush.bf16.msrb.mxu1 %v9080_v52  ;;  %v5871_v11 = vadd.f32 %v5870_v9, %v5858_v6  ;;  %v9101_v52 = vld [vmem:[%s11932_s3 + $0xa10] sm:$0xff]  ;;  %v9138_v5 = vld [vmem:[%s11932_s3 + $0xb38] sm:$0xff] }
 0x218   :  { %6110 = vmatpush.bf16.msrb.mxu2 %v9088_v55  ;;  %6123 = vmatpush.bf16.msrb.mxu3 %v9096_v56  ;;  %v9109_v55 = vld [vmem:[%s11932_s3 + $0xa50] sm:$0xff]  ;;  %v9146_v6 = vld [vmem:[%s11932_s3 + $0xb78] sm:$0xff] }
 0x219   :  { %v1368_v9 = vld [vmem:[#allocation2 + $0x30] sm:$0xff] }
 0x21a   :  { %v9154_v10 = vld [vmem:[%s11932_s3 + $0xbb8] sm:$0xff] }
 0x21b   :  { %6085 = vmatpush.bf16.msrb.mxu0 %v9071_v59  ;;  %6098 = vmatpush.bf16.msrb.mxu1 %v9079_v60  ;;  %v9100_v59 = vld [vmem:[%s11932_s3 + $0xa08] sm:$0xff] }
 0x21c   :  { %6111 = vmatpush.bf16.msrb.mxu2 %v9087_v62  ;;  %6124 = vmatpush.bf16.msrb.mxu3 %v9095_v63  ;;  %v5859_v23 = vpop.f32.mrf.mxu2  ;;  %v5872_v24 = vpop.f32.mrf.mxu3  ;;  %v9108_v60 = vld [vmem:[%s11932_s3 + $0xa48] sm:$0xff] }
 0x21d   :  { %v9124_v62 = vld [vmem:[%s11932_s3 + $0xac8] sm:$0xff]  ;;  %v11444_v23 = vld [vmem:[#allocation1 + $0x36] sm:$0xff] }
 0x21e   :  { %v11446_v24 = vld [vmem:[#allocation1 + $0x2d] sm:$0xff] }
 0x21f   :  { %6086 = vmatpush.bf16.msrb.mxu0 %v9070_v1  ;;  %6099 = vmatpush.bf16.msrb.mxu1 %v9078_v2  ;;  %v9099_v1 = vld [vmem:[%s11932_s3 + $0xa00] sm:$0xff] }
 0x220   :  { %6112 = vmatpush.bf16.msrb.mxu2 %v9086_v3  ;;  %6125 = vmatpush.bf16.msrb.mxu3 %v9094_v4  ;;  %v9107_v2 = vld [vmem:[%s11932_s3 + $0xa40] sm:$0xff] }
 0x221   :  { %v9115_v3 = vld [vmem:[%s11932_s3 + $0xa80] sm:$0xff] }
 0x222   :  { %v9123_v4 = vld [vmem:[%s11932_s3 + $0xac0] sm:$0xff] }
 0x223   :  { %6087 = vmatpush.bf16.msrb.mxu0 %v9069_v12  ;;  %6100 = vmatpush.bf16.msrb.mxu1 %v9077_v13  ;;  %v2450_v12 = vld [vmem:[#allocation1] sm:$0xff]  ;;  %v2452_v13 = vld [vmem:[#allocation1 + $0x12] sm:$0xff] }
 0x224   :  { %6113 = vmatpush.bf16.msrb.mxu2 %v9085_v17  ;;  %6126 = vmatpush.bf16.msrb.mxu3 %v9093_v18  ;;  %v2453_v17 = vld [vmem:[#allocation1 + $0x1b] sm:$0xff]  ;;  %v9137_v18 = vld [vmem:[%s11932_s3 + $0xb30] sm:$0xff] }
 0x227   :  { %6088 = vmatpush.bf16.msrb.mxu0 %v9068_v19  ;;  %6101 = vmatpush.bf16.msrb.mxu1 %v9076_v20  ;;  %v9145_v19 = vld [vmem:[%s11932_s3 + $0xb70] sm:$0xff] }
 0x228   :  { %6114 = vmatpush.bf16.msrb.mxu2 %v9084_v21  ;;  %6127 = vmatpush.bf16.msrb.mxu3 %v9092_v22  ;;  %v9153_v20 = vld [vmem:[%s11932_s3 + $0xbb0] sm:$0xff]  ;;  %v11442_v22 = vld [vmem:[#allocation1 + $0x24] sm:$0xff] }
 0x229   :  { %v9161_v21 = vld [vmem:[%s11932_s3 + $0xbf0] sm:$0xff] }
 0x22b   :  { %6089 = vmatpush.bf16.msrb.mxu0 %v9067_v25  ;;  %6102 = vmatpush.bf16.msrb.mxu1 %v9075_v26  ;;  %v5883_v7 = vpop.f32.mrf.mxu0  ;;  %v5896_v53 = vpop.f32.mrf.mxu1  ;;  %v11448_v25 = vld [vmem:[#allocation1 + $0x3f] sm:$0xff]  ;;  %v9136_v26 = vld [vmem:[%s11932_s3 + $0xb28] sm:$0xff] }
 0x22c   :  { %6115 = vmatpush.bf16.msrb.mxu2 %v9083_v27  ;;  %6128 = vmatpush.bf16.msrb.mxu3 %v9091_v28  ;;  %v5884_v8 = vadd.f32 %v5883_v7, %v5871_v11  ;;  %v9162_v11 = vld [vmem:[%s11932_s3 + $0xbf8] sm:$0xff]  ;;  %2459 = vst [vmem:[#allocation1] ss:$9 sm:$0xff] %v1368_v9  ;;  %v9144_v27 = vld [vmem:[%s11932_s3 + $0xb68] sm:$0xff] }
 0x22d   :  { %v9152_v28 = vld [vmem:[%s11932_s3 + $0xba8] sm:$0xff]  ;;  %v9158_v7 = vld [vmem:[%s11932_s3 + $0xbd8] sm:$0xff] }
 0x22e   :  { %6090 = vmatmul.bf16.vlgmr.msrb.gmra.mxu0 %v11235_v47  ;;  %6103 = vmatmul.bf16.vlgmr.msrb.gmra.mxu1 %v11239_v49  ;;  %v5897_v16 = vadd.f32 %v5896_v53, %v5884_v8 }
 0x22f   :  { %6134 = vmatpush.bf16.msra.mxu0 %v9106_v29  ;;  %6147 = vmatpush.bf16.msra.mxu1 %v9114_v30  ;;  %v9160_v29 = vld [vmem:[%s11932_s3 + $0xbe8] sm:$0xff] }
 0x230   :  { %6160 = vmatpush.bf16.msra.mxu2 %v9122_v33  ;;  %6173 = vmatpush.bf16.msra.mxu3 %v9130_v34  ;;  %v9135_v34 = vld [vmem:[%s11932_s3 + $0xb20] sm:$0xff] }
 0x231   :  { %6116 = vmatmul.bf16.vlgmr.msrb.gmra.mxu2 %v11237_v48  ;;  %6129 = vmatmul.bf16.vlgmr.msrb.gmra.mxu3 %v11241_v50 }
 0x233   :  { %6135 = vmatpush.bf16.msra.mxu0 %v9105_v35  ;;  %6148 = vmatpush.bf16.msra.mxu1 %v9113_v36  ;;  %v5885_v50 = vpop.f32.mrf.mxu0  ;;  %v5898_v56 = vpop.f32.mrf.mxu1  ;;  %v9143_v35 = vld [vmem:[%s11932_s3 + $0xb60] sm:$0xff] }
 0x234   :  { %6161 = vmatpush.bf16.msra.mxu2 %v9121_v37  ;;  %6174 = vmatpush.bf16.msra.mxu3 %v9129_v38  ;;  %v5909_v47 = vpop.f32.mrf.mxu2  ;;  %v5922_v49 = vpop.f32.mrf.mxu3  ;;  %v9151_v37 = vld [vmem:[%s11932_s3 + $0xba0] sm:$0xff] }
 0x235   :  { %v5910_v48 = vadd.f32 %v5909_v47, %v5897_v16  ;;  %v9159_v38 = vld [vmem:[%s11932_s3 + $0xbe0] sm:$0xff]  ;;  %v9141_v16 = vld [vmem:[%s11932_s3 + $0xb50] sm:$0xff]  ;;  %v9140_v47 = vld [vmem:[%s11932_s3 + $0xb48] sm:$0xff] }
 0x236   :  { %v9147_v56 = vld [vmem:[%s11932_s3 + $0xb80] sm:$0xff] }
 0x237   :  { %6136 = vmatpush.bf16.msra.mxu0 %v9104_v39  ;;  %6149 = vmatpush.bf16.msra.mxu1 %v9112_v40  ;;  %v11380_v51 = vadd.f32 %v5922_v49, %v5910_v48  ;;  %v9134_v40 = vld [vmem:[%s11932_s3 + $0xb18] sm:$0xff]  ;;  %v9148_v48 = vld [vmem:[%s11932_s3 + $0xb88] sm:$0xff] }
 0x238   :  { %6162 = vmatpush.bf16.msra.mxu2 %v9120_v41  ;;  %6175 = vmatpush.bf16.msra.mxu3 %v9128_v42  ;;  %v9142_v41 = vld [vmem:[%s11932_s3 + $0xb58] sm:$0xff]  ;;  %v9156_v49 = vld [vmem:[%s11932_s3 + $0xbc8] sm:$0xff] }
 0x239   :  { %v9150_v42 = vld [vmem:[%s11932_s3 + $0xb98] sm:$0xff] }
 0x23b   :  { %6137 = vmatpush.bf16.msra.mxu0 %v9103_v31  ;;  %6150 = vmatpush.bf16.msra.mxu1 %v9111_v32 }
 0x23c   :  { %6163 = vmatpush.bf16.msra.mxu2 %v9119_v54  ;;  %6176 = vmatpush.bf16.msra.mxu3 %v9127_v15  ;;  %v5911_v63 = vpop.f32.mrf.mxu2  ;;  %v5924_v0 = vpop.f32.mrf.mxu3  ;;  %v9133_v15 = vld [vmem:[%s11932_s3 + $0xb10] sm:$0xff] }
 0x23d   :  { %v9177_v63 = vld [vmem:[%s11932_s3 + $0xc70] sm:$0xff] }
 0x23e   :  { %v9185_v0 = vld [vmem:[%s11932_s3 + $0xcb0] sm:$0xff] }
 0x23f   :  { %6138 = vmatpush.bf16.msra.mxu0 %v9102_v43  ;;  %6151 = vmatpush.bf16.msra.mxu1 %v9110_v44  ;;  %v9149_v44 = vld [vmem:[%s11932_s3 + $0xb90] sm:$0xff] }
 0x240   :  { %6164 = vmatpush.bf16.msra.mxu2 %v9118_v45  ;;  %6177 = vmatpush.bf16.msra.mxu3 %v9126_v46  ;;  %v9157_v45 = vld [vmem:[%s11932_s3 + $0xbd0] sm:$0xff]  ;;  %v9132_v46 = vld [vmem:[%s11932_s3 + $0xb08] sm:$0xff] }
 0x243   :  { %6139 = vmatpush.bf16.msra.mxu0 %v9101_v52  ;;  %6152 = vmatpush.bf16.msra.mxu1 %v9109_v55  ;;  %v9131_v52 = vld [vmem:[%s11932_s3 + $0xb00] sm:$0xff] }
 0x244   :  { %6165 = vmatpush.bf16.msra.mxu2 %v9117_v57  ;;  %6178 = vmatpush.bf16.msra.mxu3 %v9125_v58  ;;  %v9139_v55 = vld [vmem:[%s11932_s3 + $0xb40] sm:$0xff]  ;;  %v9170_v58 = vld [vmem:[%s11932_s3 + $0xc38] sm:$0xff] }
 0x245   :  { %v9155_v57 = vld [vmem:[%s11932_s3 + $0xbc0] sm:$0xff] }
 0x247   :  { %6140 = vmatpush.bf16.msra.mxu0 %v9100_v59  ;;  %6153 = vmatpush.bf16.msra.mxu1 %v9108_v60  ;;  %v9178_v59 = vld [vmem:[%s11932_s3 + $0xc78] sm:$0xff] }
 0x248   :  { %6166 = vmatpush.bf16.msra.mxu2 %v9116_v61  ;;  %6179 = vmatpush.bf16.msra.mxu3 %v9124_v62  ;;  %v9186_v60 = vld [vmem:[%s11932_s3 + $0xcb8] sm:$0xff]  ;;  %v9169_v62 = vld [vmem:[%s11932_s3 + $0xc30] sm:$0xff] }
 0x249   :  { %v9194_v61 = vld [vmem:[%s11932_s3 + $0xcf8] sm:$0xff] }
 0x24b   :  { %6141 = vmatpush.bf16.msra.mxu0 %v9099_v1  ;;  %6154 = vmatpush.bf16.msra.mxu1 %v9107_v2  ;;  %v5935_v30 = vpop.f32.mrf.mxu0  ;;  %v5948_v36 = vpop.f32.mrf.mxu1  ;;  %v9193_v1 = vld [vmem:[%s11932_s3 + $0xcf0] sm:$0xff]  ;;  %v9168_v2 = vld [vmem:[%s11932_s3 + $0xc28] sm:$0xff] }
 0x24c   :  { %6167 = vmatpush.bf16.msra.mxu2 %v9115_v3  ;;  %6180 = vmatpush.bf16.msra.mxu3 %v9123_v4  ;;  %v5936_v33 = vadd.f32 %v5935_v30, %v11380_v51  ;;  %v9176_v3 = vld [vmem:[%s11932_s3 + $0xc68] sm:$0xff]  ;;  %v9181_v30 = vld [vmem:[%s11932_s3 + $0xc90] sm:$0xff] }
 0x24d   :  { %v9184_v4 = vld [vmem:[%s11932_s3 + $0xca8] sm:$0xff] }
 0x24e   :  { %6142 = vmatmul.bf16.vlgmr.msra.gmra.mxu0 %v2450_v12  ;;  %6155 = vmatmul.bf16.vlgmr.msra.gmra.mxu1 %v2451_v14  ;;  %v5949_v39 = vadd.f32 %v5948_v36, %v5936_v33  ;;  %v9191_v14 = vld [vmem:[%s11932_s3 + $0xce0] sm:$0xff]  ;;  %v9189_v33 = vld [vmem:[%s11932_s3 + $0xcd0] sm:$0xff]  ;;  %v9180_v36 = vld [vmem:[%s11932_s3 + $0xc88] sm:$0xff] }
 0x24f   :  { %6186 = vmatpush.bf16.msrb.mxu0 %v9138_v5  ;;  %6199 = vmatpush.bf16.msrb.mxu1 %v9146_v6  ;;  %v9192_v5 = vld [vmem:[%s11932_s3 + $0xce8] sm:$0xff] }
 0x250   :  { %6212 = vmatpush.bf16.msrb.mxu2 %v9154_v10  ;;  %6225 = vmatpush.bf16.msrb.mxu3 %v9162_v11  ;;  %v9167_v10 = vld [vmem:[%s11932_s3 + $0xc20] sm:$0xff] }
 0x251   :  { %6168 = vmatmul.bf16.vlgmr.msra.gmra.mxu2 %v2452_v13  ;;  %6181 = vmatmul.bf16.vlgmr.msra.gmra.mxu3 %v2453_v17  ;;  %v9175_v11 = vld [vmem:[%s11932_s3 + $0xc60] sm:$0xff] }
 0x252   :  { %v9183_v13 = vld [vmem:[%s11932_s3 + $0xca0] sm:$0xff] }
 0x253   :  { %6187 = vmatpush.bf16.msrb.mxu0 %v9137_v18  ;;  %6200 = vmatpush.bf16.msrb.mxu1 %v9145_v19  ;;  %v5937_v53 = vpop.f32.mrf.mxu0  ;;  %v5950_v43 = vpop.f32.mrf.mxu1  ;;  %v9166_v18 = vld [vmem:[%s11932_s3 + $0xc18] sm:$0xff] }
 0x254   :  { %6213 = vmatpush.bf16.msrb.mxu2 %v9153_v20  ;;  %6226 = vmatpush.bf16.msrb.mxu3 %v9161_v21  ;;  %v5961_v8 = vpop.f32.mrf.mxu2  ;;  %v5974_v32 = vpop.f32.mrf.mxu3  ;;  %v9174_v19 = vld [vmem:[%s11932_s3 + $0xc58] sm:$0xff]  ;;  %v2461_v43 = vld [vmem:[#allocation1 + $0x9] sm:$0xff] }
 0x255   :  { %v5962_v31 = vadd.f32 %v5961_v8, %v5949_v39  ;;  %v9182_v20 = vld [vmem:[%s11932_s3 + $0xc98] sm:$0xff] }
 0x256   :  { %v9190_v21 = vld [vmem:[%s11932_s3 + $0xcd8] sm:$0xff] }
 0x257   :  { %6188 = vmatpush.bf16.msrb.mxu0 %v9136_v26  ;;  %6201 = vmatpush.bf16.msrb.mxu1 %v9144_v27  ;;  %v5975_v54 = vadd.f32 %v5974_v32, %v5962_v31  ;;  %v9165_v27 = vld [vmem:[%s11932_s3 + $0xc10] sm:$0xff]  ;;  %v9202_v8 = vld [vmem:[%s11932_s3 + $0xd38] sm:$0xff]  ;;  %v1369_v32 = vld [vmem:[#allocation2 + $0x38] sm:$0xff] }
 0x258   :  { %6214 = vmatpush.bf16.msrb.mxu2 %v9152_v28  ;;  %6227 = vmatpush.bf16.msrb.mxu3 %v9160_v29  ;;  %v9173_v28 = vld [vmem:[%s11932_s3 + $0xc50] sm:$0xff]  ;;  %v9210_v31 = vld [vmem:[%s11932_s3 + $0xd78] sm:$0xff] }
 0x259   :  { %v9218_v53 = vld [vmem:[%s11932_s3 + $0xdb8] sm:$0xff] }
 0x25b   :  { %6189 = vmatpush.bf16.msrb.mxu0 %v9135_v34  ;;  %6202 = vmatpush.bf16.msrb.mxu1 %v9143_v35  ;;  %v9164_v34 = vld [vmem:[%s11932_s3 + $0xc08] sm:$0xff] }
 0x25c   :  { %6215 = vmatpush.bf16.msrb.mxu2 %v9151_v37  ;;  %6228 = vmatpush.bf16.msrb.mxu3 %v9159_v38  ;;  %v5963_v50 = vpop.f32.mrf.mxu2  ;;  %v5976_v51 = vpop.f32.mrf.mxu3  ;;  %v9172_v35 = vld [vmem:[%s11932_s3 + $0xc48] sm:$0xff] }
 0x25d   :  { %v9188_v37 = vld [vmem:[%s11932_s3 + $0xcc8] sm:$0xff]  ;;  %v11651_v50 = vld [vmem:[#allocation1 + $0x36] sm:$0xff] }
 0x25e   :  { %v11653_v51 = vld [vmem:[#allocation1 + $0x2d] sm:$0xff] }
 0x25f   :  { %6190 = vmatpush.bf16.msrb.mxu0 %v9134_v40  ;;  %6203 = vmatpush.bf16.msrb.mxu1 %v9142_v41  ;;  %v9163_v40 = vld [vmem:[%s11932_s3 + $0xc00] sm:$0xff] }
 0x260   :  { %6216 = vmatpush.bf16.msrb.mxu2 %v9150_v42  ;;  %6229 = vmatpush.bf16.msrb.mxu3 %v9158_v7  ;;  %v9171_v41 = vld [vmem:[%s11932_s3 + $0xc40] sm:$0xff] }
 0x261   :  { %v9179_v42 = vld [vmem:[%s11932_s3 + $0xc80] sm:$0xff] }
 0x262   :  { %v9187_v7 = vld [vmem:[%s11932_s3 + $0xcc0] sm:$0xff] }
 0x263   :  { %6191 = vmatpush.bf16.msrb.mxu0 %v9133_v15  ;;  %6204 = vmatpush.bf16.msrb.mxu1 %v9141_v16  ;;  %v2460_v15 = vld [vmem:[#allocation1] sm:$0xff]  ;;  %v2462_v16 = vld [vmem:[#allocation1 + $0x12] sm:$0xff] }
 0x264   :  { %6217 = vmatpush.bf16.msrb.mxu2 %v9149_v44  ;;  %6230 = vmatpush.bf16.msrb.mxu3 %v9157_v45  ;;  %v2463_v44 = vld [vmem:[#allocation1 + $0x1b] sm:$0xff]  ;;  %v9201_v45 = vld [vmem:[%s11932_s3 + $0xd30] sm:$0xff] }
 0x267   :  { %6192 = vmatpush.bf16.msrb.mxu0 %v9132_v46  ;;  %6205 = vmatpush.bf16.msrb.mxu1 %v9140_v47  ;;  %v9209_v46 = vld [vmem:[%s11932_s3 + $0xd70] sm:$0xff] }
 0x268   :  { %6218 = vmatpush.bf16.msrb.mxu2 %v9148_v48  ;;  %6231 = vmatpush.bf16.msrb.mxu3 %v9156_v49  ;;  %v9217_v47 = vld [vmem:[%s11932_s3 + $0xdb0] sm:$0xff]  ;;  %v11649_v49 = vld [vmem:[#allocation1 + $0x24] sm:$0xff] }
 0x269   :  { %v9225_v48 = vld [vmem:[%s11932_s3 + $0xdf0] sm:$0xff] }
 0x26b   :  { %6193 = vmatpush.bf16.msrb.mxu0 %v9131_v52  ;;  %6206 = vmatpush.bf16.msrb.mxu1 %v9139_v55  ;;  %v5987_v6 = vpop.f32.mrf.mxu0  ;;  %v6000_v12 = vpop.f32.mrf.mxu1  ;;  %v11655_v52 = vld [vmem:[#allocation1 + $0x3f] sm:$0xff]  ;;  %v9200_v55 = vld [vmem:[%s11932_s3 + $0xd28] sm:$0xff] }
 0x26c   :  { %6219 = vmatpush.bf16.msrb.mxu2 %v9147_v56  ;;  %6232 = vmatpush.bf16.msrb.mxu3 %v9155_v57  ;;  %v5988_v9 = vadd.f32 %v5987_v6, %v5975_v54  ;;  %v9226_v54 = vld [vmem:[%s11932_s3 + $0xdf8] sm:$0xff]  ;;  %2469 = vst [vmem:[#allocation1] ss:$9 sm:$0xff] %v1369_v32  ;;  %v9208_v56 = vld [vmem:[%s11932_s3 + $0xd68] sm:$0xff] }
 0x26d   :  { %v9216_v57 = vld [vmem:[%s11932_s3 + $0xda8] sm:$0xff]  ;;  %v9222_v6 = vld [vmem:[%s11932_s3 + $0xdd8] sm:$0xff] }
 0x26e   :  { %6194 = vmatmul.bf16.vlgmr.msrb.gmra.mxu0 %v11442_v22  ;;  %6207 = vmatmul.bf16.vlgmr.msrb.gmra.mxu1 %v11446_v24  ;;  %v6001_v17 = vadd.f32 %v6000_v12, %v5988_v9 }
 0x26f   :  { %6238 = vmatpush.bf16.msra.mxu0 %v9170_v58  ;;  %6251 = vmatpush.bf16.msra.mxu1 %v9178_v59  ;;  %v9224_v58 = vld [vmem:[%s11932_s3 + $0xde8] sm:$0xff] }
 0x270   :  { %6264 = vmatpush.bf16.msra.mxu2 %v9186_v60  ;;  %6277 = vmatpush.bf16.msra.mxu3 %v9194_v61  ;;  %v9199_v61 = vld [vmem:[%s11932_s3 + $0xd20] sm:$0xff] }
 0x271   :  { %6220 = vmatmul.bf16.vlgmr.msrb.gmra.mxu2 %v11444_v23  ;;  %6233 = vmatmul.bf16.vlgmr.msrb.gmra.mxu3 %v11448_v25 }
 0x273   :  { %6239 = vmatpush.bf16.msra.mxu0 %v9169_v62  ;;  %6252 = vmatpush.bf16.msra.mxu1 %v9177_v63  ;;  %v5989_v25 = vpop.f32.mrf.mxu0  ;;  %v6002_v29 = vpop.f32.mrf.mxu1  ;;  %v9207_v62 = vld [vmem:[%s11932_s3 + $0xd60] sm:$0xff] }
 0x274   :  { %6265 = vmatpush.bf16.msra.mxu2 %v9185_v0  ;;  %6278 = vmatpush.bf16.msra.mxu3 %v9193_v1  ;;  %v6013_v22 = vpop.f32.mrf.mxu2  ;;  %v6026_v24 = vpop.f32.mrf.mxu3  ;;  %v9215_v0 = vld [vmem:[%s11932_s3 + $0xda0] sm:$0xff] }
 0x275   :  { %v6014_v23 = vadd.f32 %v6013_v22, %v6001_v17  ;;  %v9223_v1 = vld [vmem:[%s11932_s3 + $0xde0] sm:$0xff]  ;;  %v9205_v17 = vld [vmem:[%s11932_s3 + $0xd50] sm:$0xff]  ;;  %v9204_v22 = vld [vmem:[%s11932_s3 + $0xd48] sm:$0xff] }
 0x276   :  { %v9211_v29 = vld [vmem:[%s11932_s3 + $0xd80] sm:$0xff] }
 0x277   :  { %6240 = vmatpush.bf16.msra.mxu0 %v9168_v2  ;;  %6253 = vmatpush.bf16.msra.mxu1 %v9176_v3  ;;  %v11587_v26 = vadd.f32 %v6026_v24, %v6014_v23  ;;  %v9198_v3 = vld [vmem:[%s11932_s3 + $0xd18] sm:$0xff]  ;;  %v9212_v23 = vld [vmem:[%s11932_s3 + $0xd88] sm:$0xff] }
 0x278   :  { %6266 = vmatpush.bf16.msra.mxu2 %v9184_v4  ;;  %6279 = vmatpush.bf16.msra.mxu3 %v9192_v5  ;;  %v9206_v4 = vld [vmem:[%s11932_s3 + $0xd58] sm:$0xff]  ;;  %v9220_v24 = vld [vmem:[%s11932_s3 + $0xdc8] sm:$0xff] }
 0x279   :  { %v9214_v5 = vld [vmem:[%s11932_s3 + $0xd98] sm:$0xff] }
 0x27b   :  { %6241 = vmatpush.bf16.msra.mxu0 %v9167_v10  ;;  %6254 = vmatpush.bf16.msra.mxu1 %v9175_v11 }
 0x27c   :  { %6267 = vmatpush.bf16.msra.mxu2 %v9183_v13  ;;  %6280 = vmatpush.bf16.msra.mxu3 %v9191_v14  ;;  %v6015_v38 = vpop.f32.mrf.mxu2  ;;  %v6028_v39 = vpop.f32.mrf.mxu3  ;;  %v9197_v14 = vld [vmem:[%s11932_s3 + $0xd10] sm:$0xff] }
 0x27d   :  { %v9241_v38 = vld [vmem:[%s11932_s3 + $0xe70] sm:$0xff] }
 0x27e   :  { %v9249_v39 = vld [vmem:[%s11932_s3 + $0xeb0] sm:$0xff] }
 0x27f   :  { %6242 = vmatpush.bf16.msra.mxu0 %v9166_v18  ;;  %6255 = vmatpush.bf16.msra.mxu1 %v9174_v19  ;;  %v9213_v19 = vld [vmem:[%s11932_s3 + $0xd90] sm:$0xff] }
 0x280   :  { %6268 = vmatpush.bf16.msra.mxu2 %v9182_v20  ;;  %6281 = vmatpush.bf16.msra.mxu3 %v9190_v21  ;;  %v9221_v20 = vld [vmem:[%s11932_s3 + $0xdd0] sm:$0xff]  ;;  %v9196_v21 = vld [vmem:[%s11932_s3 + $0xd08] sm:$0xff] }
 0x283   :  { %6243 = vmatpush.bf16.msra.mxu0 %v9165_v27  ;;  %6256 = vmatpush.bf16.msra.mxu1 %v9173_v28  ;;  %v9195_v27 = vld [vmem:[%s11932_s3 + $0xd00] sm:$0xff] }
 0x284   :  { %6269 = vmatpush.bf16.msra.mxu2 %v9181_v30  ;;  %6282 = vmatpush.bf16.msra.mxu3 %v9189_v33  ;;  %v9203_v28 = vld [vmem:[%s11932_s3 + $0xd40] sm:$0xff]  ;;  %v9234_v33 = vld [vmem:[%s11932_s3 + $0xe38] sm:$0xff] }
 0x285   :  { %v9219_v30 = vld [vmem:[%s11932_s3 + $0xdc0] sm:$0xff] }
 0x287   :  { %6244 = vmatpush.bf16.msra.mxu0 %v9164_v34  ;;  %6257 = vmatpush.bf16.msra.mxu1 %v9172_v35  ;;  %v9242_v34 = vld [vmem:[%s11932_s3 + $0xe78] sm:$0xff] }
 0x288   :  { %6270 = vmatpush.bf16.msra.mxu2 %v9180_v36  ;;  %6283 = vmatpush.bf16.msra.mxu3 %v9188_v37  ;;  %v9250_v35 = vld [vmem:[%s11932_s3 + $0xeb8] sm:$0xff]  ;;  %v9233_v37 = vld [vmem:[%s11932_s3 + $0xe30] sm:$0xff] }
 0x289   :  { %v9258_v36 = vld [vmem:[%s11932_s3 + $0xef8] sm:$0xff] }
 0x28b   :  { %6245 = vmatpush.bf16.msra.mxu0 %v9163_v40  ;;  %6258 = vmatpush.bf16.msra.mxu1 %v9171_v41  ;;  %v6039_v59 = vpop.f32.mrf.mxu0  ;;  %v6052_v63 = vpop.f32.mrf.mxu1  ;;  %v9257_v40 = vld [vmem:[%s11932_s3 + $0xef0] sm:$0xff]  ;;  %v9232_v41 = vld [vmem:[%s11932_s3 + $0xe28] sm:$0xff] }
 0x28c   :  { %6271 = vmatpush.bf16.msra.mxu2 %v9179_v42  ;;  %6284 = vmatpush.bf16.msra.mxu3 %v9187_v7  ;;  %v6040_v60 = vadd.f32 %v6039_v59, %v11587_v26  ;;  %v9240_v42 = vld [vmem:[%s11932_s3 + $0xe68] sm:$0xff]  ;;  %v9245_v59 = vld [vmem:[%s11932_s3 + $0xe90] sm:$0xff] }
 0x28d   :  { %v9248_v7 = vld [vmem:[%s11932_s3 + $0xea8] sm:$0xff] }
 0x28e   :  { %6246 = vmatmul.bf16.vlgmr.msra.gmra.mxu0 %v2460_v15  ;;  %6259 = vmatmul.bf16.vlgmr.msra.gmra.mxu1 %v2461_v43  ;;  %v6053_v2 = vadd.f32 %v6052_v63, %v6040_v60  ;;  %v9255_v43 = vld [vmem:[%s11932_s3 + $0xee0] sm:$0xff]  ;;  %v9253_v60 = vld [vmem:[%s11932_s3 + $0xed0] sm:$0xff]  ;;  %v9244_v63 = vld [vmem:[%s11932_s3 + $0xe88] sm:$0xff] }
 0x28f   :  { %6290 = vmatpush.bf16.msrb.mxu0 %v9202_v8  ;;  %6303 = vmatpush.bf16.msrb.mxu1 %v9210_v31  ;;  %v9256_v8 = vld [vmem:[%s11932_s3 + $0xee8] sm:$0xff] }
 0x290   :  { %6316 = vmatpush.bf16.msrb.mxu2 %v9218_v53  ;;  %6329 = vmatpush.bf16.msrb.mxu3 %v9226_v54  ;;  %v9231_v53 = vld [vmem:[%s11932_s3 + $0xe20] sm:$0xff] }
 0x291   :  { %6272 = vmatmul.bf16.vlgmr.msra.gmra.mxu2 %v2462_v16  ;;  %6285 = vmatmul.bf16.vlgmr.msra.gmra.mxu3 %v2463_v44  ;;  %v9239_v54 = vld [vmem:[%s11932_s3 + $0xe60] sm:$0xff] }
 0x292   :  { %v9247_v16 = vld [vmem:[%s11932_s3 + $0xea0] sm:$0xff] }
 0x293   :  { %6291 = vmatpush.bf16.msrb.mxu0 %v9201_v45  ;;  %6304 = vmatpush.bf16.msrb.mxu1 %v9209_v46  ;;  %v6041_v12 = vpop.f32.mrf.mxu0  ;;  %v6054_v18 = vpop.f32.mrf.mxu1  ;;  %v9230_v45 = vld [vmem:[%s11932_s3 + $0xe18] sm:$0xff] }
 0x294   :  { %6317 = vmatpush.bf16.msrb.mxu2 %v9217_v47  ;;  %6330 = vmatpush.bf16.msrb.mxu3 %v9225_v48  ;;  %v6065_v9 = vpop.f32.mrf.mxu2  ;;  %v6078_v11 = vpop.f32.mrf.mxu3  ;;  %v9238_v46 = vld [vmem:[%s11932_s3 + $0xe58] sm:$0xff] }
 0x295   :  { %v6066_v10 = vadd.f32 %v6065_v9, %v6053_v2  ;;  %v9246_v47 = vld [vmem:[%s11932_s3 + $0xe98] sm:$0xff] }
 0x296   :  { %v9254_v48 = vld [vmem:[%s11932_s3 + $0xed8] sm:$0xff] }
 0x297   :  { %6292 = vmatpush.bf16.msrb.mxu0 %v9200_v55  ;;  %6305 = vmatpush.bf16.msrb.mxu1 %v9208_v56  ;;  %v6079_v13 = vadd.f32 %v6078_v11, %v6066_v10  ;;  %v9229_v56 = vld [vmem:[%s11932_s3 + $0xe10] sm:$0xff]  ;;  %v9266_v9 = vld [vmem:[%s11932_s3 + $0xf38] sm:$0xff] }
 0x298   :  { %6318 = vmatpush.bf16.msrb.mxu2 %v9216_v57  ;;  %6331 = vmatpush.bf16.msrb.mxu3 %v9224_v58  ;;  %v9237_v57 = vld [vmem:[%s11932_s3 + $0xe50] sm:$0xff]  ;;  %v9274_v10 = vld [vmem:[%s11932_s3 + $0xf78] sm:$0xff] }
 0x299   :  { %v9282_v11 = vld [vmem:[%s11932_s3 + $0xfb8] sm:$0xff] }
 0x29a   :  { %v9290_v12 = vld [vmem:[%s11932_s3 + $0xff8] sm:$0xff] }
 0x29b   :  { %6293 = vmatpush.bf16.msrb.mxu0 %v9199_v61  ;;  %6306 = vmatpush.bf16.msrb.mxu1 %v9207_v62  ;;  %v9228_v61 = vld [vmem:[%s11932_s3 + $0xe08] sm:$0xff]  ;;  %v2473_v18 = vld [vmem:[#allocation1 + $0x1b] sm:$0xff] }
 0x29c   :  { %6319 = vmatpush.bf16.msrb.mxu2 %v9215_v0  ;;  %6332 = vmatpush.bf16.msrb.mxu3 %v9223_v1  ;;  %v6067_v25 = vpop.f32.mrf.mxu2  ;;  %v6080_v26 = vpop.f32.mrf.mxu3  ;;  %v9236_v62 = vld [vmem:[%s11932_s3 + $0xe48] sm:$0xff] }
 0x29d   :  { %v9252_v0 = vld [vmem:[%s11932_s3 + $0xec8] sm:$0xff] }
 0x29e   :  { %v9280_v25 = vld [vmem:[%s11932_s3 + $0xfa8] sm:$0xff] }
 0x29f   :  { %6294 = vmatpush.bf16.msrb.mxu0 %v9198_v3  ;;  %6307 = vmatpush.bf16.msrb.mxu1 %v9206_v4  ;;  %v9227_v3 = vld [vmem:[%s11932_s3 + $0xe00] sm:$0xff]  ;;  %v9288_v26 = vld [vmem:[%s11932_s3 + $0xfe8] sm:$0xff] }
 0x2a0   :  { %6320 = vmatpush.bf16.msrb.mxu2 %v9214_v5  ;;  %6333 = vmatpush.bf16.msrb.mxu3 %v9222_v6  ;;  %v9235_v4 = vld [vmem:[%s11932_s3 + $0xe40] sm:$0xff] }
 0x2a1   :  { %v9243_v5 = vld [vmem:[%s11932_s3 + $0xe80] sm:$0xff] }
 0x2a2   :  { %v9251_v6 = vld [vmem:[%s11932_s3 + $0xec0] sm:$0xff] }
 0x2a3   :  { %6295 = vmatpush.bf16.msrb.mxu0 %v9197_v14  ;;  %6308 = vmatpush.bf16.msrb.mxu1 %v9205_v17  ;;  %v2472_v14 = vld [vmem:[#allocation1 + $0x12] sm:$0xff]  ;;  %v2471_v17 = vld [vmem:[#allocation1 + $0x9] sm:$0xff] }
 0x2a4   :  { %6321 = vmatpush.bf16.msrb.mxu2 %v9213_v19  ;;  %6334 = vmatpush.bf16.msrb.mxu3 %v9221_v20  ;;  %v9265_v19 = vld [vmem:[%s11932_s3 + $0xf30] sm:$0xff] }
 0x2a5   :  { %v9273_v20 = vld [vmem:[%s11932_s3 + $0xf70] sm:$0xff] }
 0x2a7   :  { %6296 = vmatpush.bf16.msrb.mxu0 %v9196_v21  ;;  %6309 = vmatpush.bf16.msrb.mxu1 %v9204_v22  ;;  %v9281_v21 = vld [vmem:[%s11932_s3 + $0xfb0] sm:$0xff] }
 0x2a8   :  { %6322 = vmatpush.bf16.msrb.mxu2 %v9212_v23  ;;  %6335 = vmatpush.bf16.msrb.mxu3 %v9220_v24  ;;  %v9289_v22 = vld [vmem:[%s11932_s3 + $0xff0] sm:$0xff]  ;;  %v9264_v23 = vld [vmem:[%s11932_s3 + $0xf28] sm:$0xff] }
 0x2a9   :  { %v9272_v24 = vld [vmem:[%s11932_s3 + $0xf68] sm:$0xff] }
 0x2ab   :  { %6297 = vmatpush.bf16.msrb.mxu0 %v9195_v27  ;;  %6310 = vmatpush.bf16.msrb.mxu1 %v9203_v28  ;;  %v6091_v31 = vpop.f32.mrf.mxu0  ;;  %v6104_v15 = vpop.f32.mrf.mxu1 }
 0x2ac   :  { %6323 = vmatpush.bf16.msrb.mxu2 %v9211_v29  ;;  %6336 = vmatpush.bf16.msrb.mxu3 %v9219_v30  ;;  %v6092_v32 = vadd.f32 %v6091_v31, %v6079_v13  ;;  %v2470_v13 = vld [vmem:[#allocation1] sm:$0xff] }
 0x2ad   :  { %v9263_v29 = vld [vmem:[%s11932_s3 + $0xf20] sm:$0xff] }
 0x2ae   :  { %6298 = vmatmul.bf16.vlgmr.msrb.gmra.mxu0 %v11649_v49  ;;  %6311 = vmatmul.bf16.vlgmr.msrb.gmra.mxu1 %v11653_v51  ;;  %v6105_v44 = vadd.f32 %v6104_v15, %v6092_v32  ;;  %v9271_v30 = vld [vmem:[%s11932_s3 + $0xf60] sm:$0xff]  ;;  %v9261_v32 = vld [vmem:[%s11932_s3 + $0xf10] sm:$0xff] }
 0x2af   :  { %6342 = vmatpush.bf16.msra.mxu0 %v9234_v33  ;;  %6355 = vmatpush.bf16.msra.mxu1 %v9242_v34  ;;  %v9279_v34 = vld [vmem:[%s11932_s3 + $0xfa0] sm:$0xff]  ;;  %v9277_v15 = vld [vmem:[%s11932_s3 + $0xf90] sm:$0xff] }
 0x2b0   :  { %6368 = vmatpush.bf16.msra.mxu2 %v9250_v35  ;;  %6381 = vmatpush.bf16.msra.mxu3 %v9258_v36  ;;  %v9287_v35 = vld [vmem:[%s11932_s3 + $0xfe0] sm:$0xff] }
 0x2b1   :  { %6324 = vmatmul.bf16.vlgmr.msrb.gmra.mxu2 %v11651_v50  ;;  %6337 = vmatmul.bf16.vlgmr.msrb.gmra.mxu3 %v11655_v52 }
 0x2b3   :  { %6343 = vmatpush.bf16.msra.mxu0 %v9233_v37  ;;  %6356 = vmatpush.bf16.msra.mxu1 %v9241_v38  ;;  %v6093_v52 = vpop.f32.mrf.mxu0  ;;  %v6106_v58 = vpop.f32.mrf.mxu1  ;;  %v9262_v37 = vld [vmem:[%s11932_s3 + $0xf18] sm:$0xff] }
 0x2b4   :  { %6369 = vmatpush.bf16.msra.mxu2 %v9249_v39  ;;  %6382 = vmatpush.bf16.msra.mxu3 %v9257_v40  ;;  %v6117_v49 = vpop.f32.mrf.mxu2  ;;  %v6130_v51 = vpop.f32.mrf.mxu3  ;;  %v9270_v38 = vld [vmem:[%s11932_s3 + $0xf58] sm:$0xff]  ;;  %v9283_v52 = vld [vmem:[%s11932_s3 + $0xfc0] sm:$0xff] }
 0x2b5   :  { %v6118_v50 = vadd.f32 %v6117_v49, %v6105_v44  ;;  %v9278_v39 = vld [vmem:[%s11932_s3 + $0xf98] sm:$0xff]  ;;  %v9268_v44 = vld [vmem:[%s11932_s3 + $0xf48] sm:$0xff]  ;;  %v9259_v49 = vld [vmem:[%s11932_s3 + $0xf00] sm:$0xff] }
 0x2b6   :  { %v9286_v40 = vld [vmem:[%s11932_s3 + $0xfd8] sm:$0xff] }
 0x2b7   :  { %6344 = vmatpush.bf16.msra.mxu0 %v9232_v41  ;;  %6357 = vmatpush.bf16.msra.mxu1 %v9240_v42  ;;  %v6131_v55 = vadd.f32 %v6130_v51, %v6118_v50  ;;  %v9267_v50 = vld [vmem:[%s11932_s3 + $0xf40] sm:$0xff] }
 0x2b8   :  { %6370 = vmatpush.bf16.msra.mxu2 %v9248_v7  ;;  %6383 = vmatpush.bf16.msra.mxu3 %v9256_v8  ;;  %v9275_v51 = vld [vmem:[%s11932_s3 + $0xf80] sm:$0xff] }
 0x2b9   :  { %v2477_v58 = vld [vmem:[#allocation1 + $0x3f] sm:$0xff] }
 0x2bb   :  { %6345 = vmatpush.bf16.msra.mxu0 %v9231_v53  ;;  %6358 = vmatpush.bf16.msra.mxu1 %v9239_v54  ;;  %v9269_v53 = vld [vmem:[%s11932_s3 + $0xf50] sm:$0xff] }
 0x2bc   :  { %6371 = vmatpush.bf16.msra.mxu2 %v9247_v16  ;;  %6384 = vmatpush.bf16.msra.mxu3 %v9255_v43  ;;  %v6119_v1 = vpop.f32.mrf.mxu2  ;;  %v6132_v2 = vpop.f32.mrf.mxu3  ;;  %v9285_v16 = vld [vmem:[%s11932_s3 + $0xfd0] sm:$0xff]  ;;  %v9260_v43 = vld [vmem:[%s11932_s3 + $0xf08] sm:$0xff] }
 0x2bf   :  { %6346 = vmatpush.bf16.msra.mxu0 %v9230_v45  ;;  %6359 = vmatpush.bf16.msra.mxu1 %v9238_v46  ;;  %v9276_v45 = vld [vmem:[%s11932_s3 + $0xf88] sm:$0xff] }
 0x2c0   :  { %6372 = vmatpush.bf16.msra.mxu2 %v9246_v47  ;;  %6385 = vmatpush.bf16.msra.mxu3 %v9254_v48  ;;  %v9284_v46 = vld [vmem:[%s11932_s3 + $0xfc8] sm:$0xff]  ;;  %s9355_s3 = smov [#allocation8]  }
 0x2c1   :  { %s6464_s8 = sshll.u32 %s9355_s3, 4  ;;  %s6465_s8 = int_to_ptr.vmem [resolvable:$true] %s6464_s8 }
 0x2c3   :  { %6347 = vmatpush.bf16.msra.mxu0 %v9229_v56  ;;  %6360 = vmatpush.bf16.msra.mxu1 %v9237_v57  ;;  %v2475_v56 = vld [vmem:[#allocation1 + $0x2d] sm:$0xff]  ;;  %v2476_v57 = vld [vmem:[#allocation1 + $0x36] sm:$0xff] }
 0x2c4   :  { %6373 = vmatpush.bf16.msra.mxu2 %v9245_v59  ;;  %6386 = vmatpush.bf16.msra.mxu3 %v9253_v60 }
 0x2c7   :  { %6348 = vmatpush.bf16.msra.mxu0 %v9228_v61  ;;  %6361 = vmatpush.bf16.msra.mxu1 %v9236_v62 }
 0x2c8   :  { %6374 = vmatpush.bf16.msra.mxu2 %v9244_v63  ;;  %6387 = vmatpush.bf16.msra.mxu3 %v9252_v0 }
 0x2cb   :  { %6349 = vmatpush.bf16.msra.mxu0 %v9227_v3  ;;  %6362 = vmatpush.bf16.msra.mxu1 %v9235_v4  ;;  %v6143_v27 = vpop.f32.mrf.mxu0  ;;  %v6156_v33 = vpop.f32.mrf.mxu1 }
 0x2cc   :  { %6375 = vmatpush.bf16.msra.mxu2 %v9243_v5  ;;  %6388 = vmatpush.bf16.msra.mxu3 %v9251_v6  ;;  %v6144_v28 = vadd.f32 %v6143_v27, %v6131_v55  ;;  %v2474_v55 = vld [vmem:[#allocation1 + $0x24] sm:$0xff] }
 0x2ce   :  { %6350 = vmatmul.bf16.vlgmr.msra.gmra.mxu0 %v2470_v13  ;;  %6363 = vmatmul.bf16.vlgmr.msra.gmra.mxu1 %v2471_v17  ;;  %v6157_v36 = vadd.f32 %v6156_v33, %v6144_v28 }
 0x2cf   :  { %6394 = vmatpush.bf16.msrb.mxu0 %v9266_v9  ;;  %6407 = vmatpush.bf16.msrb.mxu1 %v9274_v10 }
 0x2d0   :  { %6420 = vmatpush.bf16.msrb.mxu2 %v9282_v11  ;;  %6433 = vmatpush.bf16.msrb.mxu3 %v9290_v12 }
 0x2d1   :  { %6376 = vmatmul.bf16.vlgmr.msra.gmra.mxu2 %v2472_v14  ;;  %6389 = vmatmul.bf16.vlgmr.msra.gmra.mxu3 %v2473_v18 }
 0x2d3   :  { %6395 = vmatpush.bf16.msrb.mxu0 %v9265_v19  ;;  %6408 = vmatpush.bf16.msrb.mxu1 %v9273_v20  ;;  %v6145_v8 = vpop.f32.mrf.mxu0  ;;  %v6158_v54 = vpop.f32.mrf.mxu1 }
 0x2d4   :  { %6421 = vmatpush.bf16.msrb.mxu2 %v9281_v21  ;;  %6434 = vmatpush.bf16.msrb.mxu3 %v9289_v22  ;;  %v6169_v41 = vpop.f32.mrf.mxu2  ;;  %v6182_v7 = vpop.f32.mrf.mxu3 }
 0x2d5   :  { %v6170_v42 = vadd.f32 %v6169_v41, %v6157_v36 }
 0x2d7   :  { %6396 = vmatpush.bf16.msrb.mxu0 %v9264_v23  ;;  %6409 = vmatpush.bf16.msrb.mxu1 %v9272_v24  ;;  %v6183_v31 = vadd.f32 %v6182_v7, %v6170_v42 }
 0x2d8   :  { %6422 = vmatpush.bf16.msrb.mxu2 %v9280_v25  ;;  %6435 = vmatpush.bf16.msrb.mxu3 %v9288_v26 }
 0x2db   :  { %6397 = vmatpush.bf16.msrb.mxu0 %v9263_v29  ;;  %6410 = vmatpush.bf16.msrb.mxu1 %v9271_v30 }
 0x2dc   :  { %6423 = vmatpush.bf16.msrb.mxu2 %v9279_v34  ;;  %6436 = vmatpush.bf16.msrb.mxu3 %v9287_v35  ;;  %v6171_v47 = vpop.f32.mrf.mxu2  ;;  %v6184_v48 = vpop.f32.mrf.mxu3 }
 0x2df   :  { %6398 = vmatpush.bf16.msrb.mxu0 %v9262_v37  ;;  %6411 = vmatpush.bf16.msrb.mxu1 %v9270_v38 }
 0x2e0   :  { %6424 = vmatpush.bf16.msrb.mxu2 %v9278_v39  ;;  %6437 = vmatpush.bf16.msrb.mxu3 %v9286_v40 }
 0x2e3   :  { %6399 = vmatpush.bf16.msrb.mxu0 %v9261_v32  ;;  %6412 = vmatpush.bf16.msrb.mxu1 %v9269_v53 }
 0x2e4   :  { %6425 = vmatpush.bf16.msrb.mxu2 %v9277_v15  ;;  %6438 = vmatpush.bf16.msrb.mxu3 %v9285_v16 }
 0x2e7   :  { %6400 = vmatpush.bf16.msrb.mxu0 %v9260_v43  ;;  %6413 = vmatpush.bf16.msrb.mxu1 %v9268_v44 }
 0x2e8   :  { %6426 = vmatpush.bf16.msrb.mxu2 %v9276_v45  ;;  %6439 = vmatpush.bf16.msrb.mxu3 %v9284_v46 }
 0x2eb   :  { %6401 = vmatpush.bf16.msrb.mxu0 %v9259_v49  ;;  %6414 = vmatpush.bf16.msrb.mxu1 %v9267_v50  ;;  %v6195_v59 = vpop.f32.mrf.mxu0  ;;  %v6208_v61 = vpop.f32.mrf.mxu1 }
 0x2ec   :  { %6427 = vmatpush.bf16.msrb.mxu2 %v9275_v51  ;;  %6440 = vmatpush.bf16.msrb.mxu3 %v9283_v52  ;;  %v6196_v60 = vadd.f32 %v6195_v59, %v6183_v31 }
 0x2ee   :  { %6402 = vmatmul.bf16.vlgmr.msrb.gmra.mxu0 %v2474_v55  ;;  %6415 = vmatmul.bf16.vlgmr.msrb.gmra.mxu1 %v2475_v56  ;;  %v6209_v62 = vadd.f32 %v6208_v61, %v6196_v60 }
 0x2ef   :  { %6428 = vmatmul.bf16.vlgmr.msrb.gmra.mxu2 %v2476_v57  ;;  %6441 = vmatmul.bf16.vlgmr.msrb.gmra.mxu3 %v2477_v58 }
 0x2f3   :  { %v6197_v2 = vpop.f32.mrf.mxu0  ;;  %v6210_v4 = vpop.f32.mrf.mxu1 }
 0x2f4   :  { %v6221_v63 = vpop.f32.mrf.mxu2  ;;  %v6234_v1 = vpop.f32.mrf.mxu3 }
 0x2f5   :  { %v6222_v0 = vadd.f32 %v6221_v63, %v6209_v62 }
 0x2f7   :  { %v6235_v3 = vadd.f32 %v6234_v1, %v6222_v0 }
 0x2fc   :  { %v6223_v5 = vpop.f32.mrf.mxu2  ;;  %v6236_v6 = vpop.f32.mrf.mxu3 }
 0x30b   :  { %v6247_v9 = vpop.f32.mrf.mxu0  ;;  %v6260_v11 = vpop.f32.mrf.mxu1 }
 0x30c   :  { %v6248_v10 = vadd.f32 %v6247_v9, %v6235_v3 }
 0x30e   :  { %v6261_v12 = vadd.f32 %v6260_v11, %v6248_v10 }
 0x313   :  { %v6249_v18 = vpop.f32.mrf.mxu0  ;;  %v6262_v20 = vpop.f32.mrf.mxu1 }
 0x314   :  { %v6273_v13 = vpop.f32.mrf.mxu2  ;;  %v6286_v17 = vpop.f32.mrf.mxu3 }
 0x315   :  { %v6274_v14 = vadd.f32 %v6273_v13, %v6261_v12 }
 0x317   :  { %v6287_v19 = vadd.f32 %v6286_v17, %v6274_v14 }
 0x31c   :  { %v6275_v21 = vpop.f32.mrf.mxu2  ;;  %v6288_v22 = vpop.f32.mrf.mxu3 }
 0x32b   :  { %v6299_v23 = vpop.f32.mrf.mxu0  ;;  %v6312_v24 = vpop.f32.mrf.mxu1 }
 0x32c   :  { %v6300_v36 = vadd.f32 %v6299_v23, %v6287_v19 }
 0x32e   :  { %v6313_v40 = vadd.f32 %v6312_v24, %v6300_v36 }
 0x333   :  { %v6301_v27 = vpop.f32.mrf.mxu0  ;;  %v6314_v28 = vpop.f32.mrf.mxu1 }
 0x334   :  { %v6325_v25 = vpop.f32.mrf.mxu2  ;;  %v6338_v26 = vpop.f32.mrf.mxu3 }
 0x335   :  { %v6326_v41 = vadd.f32 %v6325_v25, %v6313_v40 }
 0x337   :  { %v6339_v8 = vadd.f32 %v6338_v26, %v6326_v41 }
 0x33c   :  { %v6327_v29 = vpop.f32.mrf.mxu2  ;;  %v6340_v30 = vpop.f32.mrf.mxu3 }
 0x34b   :  { %v6351_v33 = vpop.f32.mrf.mxu0  ;;  %v6364_v34 = vpop.f32.mrf.mxu1 }
 0x34c   :  { %v6352_v31 = vadd.f32 %v6351_v33, %v6339_v8 }
 0x34e   :  { %v6365_v32 = vadd.f32 %v6364_v34, %v6352_v31 }
 0x353   :  { %v6353_v38 = vpop.f32.mrf.mxu0  ;;  %v6366_v39 = vpop.f32.mrf.mxu1 }
 0x354   :  { %v6377_v35 = vpop.f32.mrf.mxu2  ;;  %v6390_v37 = vpop.f32.mrf.mxu3 }
 0x355   :  { %v6378_v53 = vadd.f32 %v6377_v35, %v6365_v32 }
 0x357   :  { %v6391_v54 = vadd.f32 %v6390_v37, %v6378_v53 }
 0x35c   :  { %v6379_v42 = vpop.f32.mrf.mxu2  ;;  %v6392_v7 = vpop.f32.mrf.mxu3 }
 0x36b   :  { %v6403_v15 = vpop.f32.mrf.mxu0  ;;  %v6416_v16 = vpop.f32.mrf.mxu1 }
 0x36c   :  { %v6404_v43 = vadd.f32 %v6403_v15, %v6391_v54 }
 0x36e   :  { %v6417_v44 = vadd.f32 %v6416_v16, %v6404_v43 }
 0x372   :  { %v6429_v45 = vpop.f32.mrf.mxu2  ;;  %v6442_v46 = vpop.f32.mrf.mxu3 }
 0x373   :  { %v6430_v47 = vadd.f32 %v6429_v45, %v6417_v44  ;;  %v6405_v48 = vpop.f32.mrf.mxu0  ;;  %v6418_v49 = vpop.f32.mrf.mxu1 }
 0x375   :  { %v6443_v50 = vadd.f32 %v6442_v46, %v6430_v47 }
 0x377   :  { %v6447_v51 = vsel %vm6446_vm1, %v6443_v50, -inf }
 0x378   :  { %6448 = vmax.xlane.f32.xlu0 %v6447_v51 }
 0x37a   :  { %v6431_v52 = vpop.f32.mrf.mxu2  ;;  %v6444_v55 = vpop.f32.mrf.mxu3 }
 0x3eb   :  { %v6449_v56 = vpop.xlane.xlu0 %6448 }
 0x3ec   :  { %v6450_v57 = vsub.f32 %v6443_v50, %v6449_v56 }
 0x3ee   :  { %v6451_v58 = vmul.f32 1.442695, %v6450_v57 }
 0x3f0   :  { %9295 = vpow2.f32 %v6451_v58 }
 0x3f6   :  { %v9296_v59 = vpop.eup %9295 }
 0x3f7   :  { %v6453_v60 = vsel %vm6446_vm1, %v9296_v59, 0.0 }
 0x3f8   :  { %6454 = vadd.xlane.f32.xlu0 %v6453_v60 }
 0x46b   :  { %v6455_v61 = vpop.xlane.xlu0 %6454 }
 0x46c   :  { %9297 = vrcp.f32 %v6455_v61 }
 0x472   :  { %v9298_v62 = vpop.eup %9297 }
 0x473   :  { %v6457_v63 = vmul.f32 %v9298_v62, %v9296_v59 }
 0x475   :  { %6458 = vst [vmem:[#allocation8] sm:$0x3] %v6457_v63 }
 0x476   :  { %6469 = dma.vmem_to_hbm [thread:$0]  %s6465_s8, 32, %s6467_s23, [#allocation4]  }
 0x477   :  { %9351 = dma.done.wait [#allocation4], 32  }
 0x478   :  { %9352 = vsyncadd [#allocation4], 4294967264 }
 0x479   :  { %6474 = vsyncpa [#allocation4], 1 }
 0x47a   :  { %6475 = vsyncpa [#allocation5], 1 }
 0x47b   :  { %6476 = vsyncpa [#allocation7], 1 }

</bundles_post_ra>
